<compile_context>
chip_gen: v7x
topology: tpu7x:2x2x1
jax: 0.10.0
libtpu: 0.0.40
codegen_flags: <defaults>
</compile_context>

<pallas_src>
import numpy as np
import jax
import jax.numpy as jnp
from jax.experimental import pallas as pl
from jax.experimental.pallas import tpu as pltpu

LANES = 128        # each anchor's `no` output channels are zero-padded to 128 lanes


def _round_up(v, m):
    return (v + m - 1) // m * m


def _detect_level_kernel(x_ref, w_ref, coef_ref, gxy_ref, raw_ref, y_ref):
    """One (batch, spatial-tile) step of the Detect head (all anchors at once).

    x_ref   : (1, T_hw, C)           feature tokens of this batch / spatial tile
    w_ref   : (C, na*LANES)          1x1-conv weight, anchors side-by-side (lane-padded)
    coef_ref: (8, na*LANES)          rows = [bias, A, B, mask_x, mask_y, 0, 0, 0]
    gxy_ref : (T_hw, 8)              cols 0/1 = stride*(x-0.5), stride*(y-0.5)
    raw_ref : (1, na, T_hw, LANES)   raw conv output (pre-sigmoid)
    y_ref   : (1, na, T_hw, LANES)   decoded boxes / conf
    """
    coef = coef_ref[...]                   # (8, na*LANES)
    bias = coef[0:1, :]
    a_c = coef[1:2, :]                     # sig^2 coefficient (wh columns)
    b_c = coef[2:3, :]                     # sig   coefficient (xy / conf columns)
    mx = coef[3:4, :]                      # x-grid column mask
    my = coef[4:5, :]                      # y-grid column mask

    # 1x1 conv over channels == one wide MXU matmul covering all anchors.
    # TODO(synk): on v6e/v7x cast x/w to bf16 here (keep f32 accumulate) to halve
    # HBM reads; kept f32 so the 1e-4 check below stays exact.
    t = jnp.dot(x_ref[0], w_ref[...], preferred_element_type=jnp.float32) + bias

    sig = 1.0 / (1.0 + jnp.exp(-t))        # EUP exp + VPU divide

    g_blk = gxy_ref[...]                   # (T_hw, 8)
    g = g_blk[:, 0:1] * mx + g_blk[:, 1:2] * my          # (T_hw, na*LANES)

    # Fused decode:  xy = 2*stride*sig + stride*(grid-0.5)
    #                wh = 4*anchor*stride*sig^2 ; conf = sig ; pad cols = 0
    y = sig * (sig * a_c + b_c) + g

    # Per-anchor 128-lane column groups -> per-anchor output slabs (lane-dense,
    # vreg-aligned slices: no cross-lane movement).
    na = raw_ref.shape[1]
    for a in range(na):
        raw_ref[0, a, :, :] = t[:, a * LANES:(a + 1) * LANES]
        y_ref[0, a, :, :] = y[:, a * LANES:(a + 1) * LANES]


def detect_level_pallas(x_nchw, weight, bias, anchors_i, stride, na, no):
    """Run one Detect level: 1x1 conv + decode inside a single Pallas kernel.

    x_nchw : (bs, C, ny, nx) float32
    weight : (na*no, C)  1x1-conv weight (out-channel index = a*no + c)
    bias   : (na*no,)
    returns: raw (bs, na, ny, nx, no), y (bs, na*ny*nx, no)
    """
    bs, C, ny, nx = x_nchw.shape
    HW = ny * nx
    HW_pad = _round_up(HW, 8)
    assert no <= LANES
    stride = float(stride)

    # Spatial tile: whole level when small, else 512-row tiles (keeps the
    # double-buffered x / per-anchor output slabs comfortably inside VMEM on
    # v5e/v6e/v7x while amortizing per-step overhead).
    if HW_pad <= 1024:
        t_hw = HW_pad
    else:
        t_hw = max(t for t in (512, 256, 128, 64, 32, 16, 8) if HW_pad % t == 0)
    n_hw = HW_pad // t_hw

    # Token matrix (bs, HW_pad, C).
    # TODO(synk): this NCHW->NHWC transpose could be folded into the kernel with
    # an lhs-transposed matmul on the raw (bs, C, HW) layout.
    x_tok = jnp.transpose(x_nchw.reshape(bs, C, HW), (0, 2, 1)).astype(jnp.float32)
    if HW_pad != HW:
        x_tok = jnp.pad(x_tok, ((0, 0), (0, HW_pad - HW), (0, 0)))

    # 1x1-conv weight with anchors side-by-side along lanes: (C, na*LANES),
    # column j = a*LANES + c holds weight[a*no + c, :] (zero-padded for c >= no).
    w_anchor = jnp.transpose(weight.reshape(na, no, C), (0, 2, 1)).astype(jnp.float32)
    w_pad = jnp.zeros((na, C, LANES), jnp.float32).at[:, :, :no].set(w_anchor)
    w_all = jnp.transpose(w_pad, (1, 0, 2)).reshape(C, na * LANES)

    # Decode coefficient table (built host-side, passed as an input so the
    # kernel captures no array constants).  Shape (8, na*LANES).
    coef_np = np.zeros((8, na, LANES), np.float32)
    coef_np[1, :, 2] = 4.0 * anchors_i[:, 0] * stride      # A at w column
    coef_np[1, :, 3] = 4.0 * anchors_i[:, 1] * stride      # A at h column
    coef_np[2, :, 0:2] = 2.0 * stride                      # B at xy columns
    coef_np[2, :, 4:no] = 1.0                              # B at conf columns
    coef_np[3, :, 0] = 1.0                                 # mask_x
    coef_np[4, :, 1] = 1.0                                 # mask_y
    coef3 = jnp.asarray(coef_np).at[0, :, :no].set(
        bias.reshape(na, no).astype(jnp.float32))
    coef = coef3.reshape(8, na * LANES)

    # Precomputed grid term per spatial row (avoids per-step int div/mod on VPU).
    yv, xv = np.meshgrid(np.arange(ny), np.arange(nx), indexing="ij")
    gxy_np = np.zeros((HW_pad, 8), np.float32)
    gxy_np[:HW, 0] = (xv.reshape(-1).astype(np.float32) - 0.5) * stride
    gxy_np[:HW, 1] = (yv.reshape(-1).astype(np.float32) - 0.5) * stride
    gxy = jnp.asarray(gxy_np)

    grid = (bs, n_hw)

    raw_pad, y_pad = pl.pallas_call(
        _detect_level_kernel,
        out_shape=(
            jax.ShapeDtypeStruct((bs, na, HW_pad, LANES), jnp.float32),
            jax.ShapeDtypeStruct((bs, na, HW_pad, LANES), jnp.float32),
        ),
        grid_spec=pltpu.PrefetchScalarGridSpec(
            num_scalar_prefetch=0,
            grid=grid,
            in_specs=[
                pl.BlockSpec((1, t_hw, C), lambda b, s: (b, s, 0)),
                pl.BlockSpec((C, na * LANES), lambda b, s: (0, 0)),
                pl.BlockSpec((8, na * LANES), lambda b, s: (0, 0)),
                pl.BlockSpec((t_hw, 8), lambda b, s: (s, 0)),
            ],
            out_specs=[
                pl.BlockSpec((1, na, t_hw, LANES), lambda b, s: (b, 0, s, 0)),
                pl.BlockSpec((1, na, t_hw, LANES), lambda b, s: (b, 0, s, 0)),
            ],
        ),
        compiler_params=pltpu.CompilerParams(
            dimension_semantics=("parallel", "parallel")),
    )(x_tok, w_all, coef, gxy)

    # Outputs already come out in (b, a, hw, c) order: only slice off padding.
    raw = raw_pad[:, :, :HW, :no]
    y = y_pad[:, :, :HW, :no]
    return raw.reshape(bs, na, ny, nx, no), y.reshape(bs, na * HW, no)


def detect_forward_pallas(xs, weights, biases, anchors, strides, nc):
    """Detect.forward in eval mode: returns (cat(z, 1), x_list)."""
    na = anchors.shape[1]
    no = nc + 5
    z, outs = [], []
    for i, x in enumerate(xs):
        anchors_i = np.asarray(anchors[i], dtype=np.float32)
        raw, y = detect_level_pallas(x, weights[i], biases[i],
                                     anchors_i, float(strides[i]), na, no)
        outs.append(raw)
        z.append(y)
    # TODO(synk): the per-level calls could be fused into one pallas_call with
    # scalar-prefetch level tables; kept per-level for clarity.
    return jnp.concatenate(z, axis=1), outs


def detect_forward_ref(xs, weights, biases, anchors, strides, nc):
    """Pure-JAX reference mirroring the PyTorch Detect.forward (eval mode)."""
    na = anchors.shape[1]
    no = nc + 5
    z, outs = [], []
    for i, x in enumerate(xs):
        bs, C, ny, nx = x.shape
        t = jnp.einsum('bchw,oc->bohw', x, weights[i]) + biases[i][None, :, None, None]
        t = t.reshape(bs, na, no, ny, nx).transpose(0, 1, 3, 4, 2)
        outs.append(t)
        sig = jax.nn.sigmoid(t)
        yv, xv = jnp.meshgrid(jnp.arange(ny), jnp.arange(nx), indexing='ij')
        grid = (jnp.stack((xv, yv), 2).astype(jnp.float32)[None, None] - 0.5)
        anchor_grid = (anchors[i] * strides[i]).reshape(1, na, 1, 1, 2)
        xy = (sig[..., 0:2] * 2 + grid) * strides[i]
        wh = (sig[..., 2:4] * 2) ** 2 * anchor_grid
        conf = sig[..., 4:]
        y = jnp.concatenate([xy, wh, conf], axis=-1)
        z.append(y.reshape(bs, na * ny * nx, no))
    return jnp.concatenate(z, axis=1), outs


if __name__ == "__main__":
    key = jax.random.PRNGKey(0)

    # Small synthetic Detect config: nc=3 classes, 2 levels, 3 anchors/level.
    nc = 3
    no = nc + 5                                   # 8
    anchors = jnp.asarray(
        [[10., 13., 16., 30., 33., 23.],
         [30., 61., 62., 45., 59., 119.]], dtype=jnp.float32).reshape(2, 3, 2)
    na = anchors.shape[1]                         # 3
    strides = [8.0, 16.0]
    ch = (8, 16)
    spatial = [(16, 16), (8, 8)]
    bs = 2

    # Deterministic inputs and 1x1-conv parameters.
    keys = jax.random.split(key, 2 + 2 * len(ch))
    xs, weights, biases = [], [], []
    for i, (c, (ny, nx)) in enumerate(zip(ch, spatial)):
        xs.append(jax.random.normal(keys[2 * i], (bs, c, ny, nx), dtype=jnp.float32))
        weights.append(0.1 * jax.random.normal(keys[2 * i + 1], (na * no, c),
                                               dtype=jnp.float32))
        biases.append(0.01 * jnp.arange(na * no, dtype=jnp.float32))

    out, raws = detect_forward_pallas(xs, weights, biases, anchors, strides, nc)
    jax.block_until_ready(out)
    for r in raws:
        jax.block_until_ready(r)

    # Verify against the pure-JAX reference of the PyTorch forward (eval mode).
    out_ref, raws_ref = detect_forward_ref(xs, weights, biases, anchors, strides, nc)
    np.testing.assert_allclose(np.asarray(out), np.asarray(out_ref),
                               rtol=1e-4, atol=1e-4)
    for r, rr in zip(raws, raws_ref):
        np.testing.assert_allclose(np.asarray(r), np.asarray(rr),
                                   rtol=1e-4, atol=1e-4)

    # Expected shapes (eval mode): cat(z,1) -> (bs, sum(na*ny*nx), no)
    total = sum(na * ny * nx for (ny, nx) in spatial)
    assert out.shape == (bs, total, no)
    assert raws[0].shape == (bs, na, 16, 16, no)
    assert raws[1].shape == (bs, na, 8, 8, no)

    # TODO(synk): training-mode output is just `raws` (no decode); Segment's Proto
    # branch is out of scope for the plain Detect head.
    print("KERNEL_OK")
</pallas_src>

<mosaic_0001>
module attributes {stable_mosaic.version = 11 : i64} {
  func.func @_detect_level_kernel(%arg0: i32, %arg1: i32, %arg2: memref<1x256x8xf32, #tpu.memory_space<vmem>>, %arg3: memref<8x384xf32, #tpu.memory_space<vmem>>, %arg4: memref<8x384xf32, #tpu.memory_space<vmem>>, %arg5: memref<256x8xf32, #tpu.memory_space<vmem>>, %arg6: memref<1x3x256x128xf32, #tpu.memory_space<vmem>>, %arg7: memref<1x3x256x128xf32, #tpu.memory_space<vmem>>) attributes {dimension_semantics = [#tpu.dimension_semantics<parallel>, #tpu.dimension_semantics<parallel>], iteration_bounds = array<i64: 2, 1>, scalar_prefetch = 0 : i64, scratch_operands = 0 : i64, tpu.core_type = #tpu.core_type<tc>, window_params = [{transform_indices = @transform_0, window_bounds = array<i64: 1, 256, 8>}, {pipeline_mode = #tpu.pipeline_mode<synchronous>, transform_indices = @transform_1, window_bounds = array<i64: 8, 384>}, {pipeline_mode = #tpu.pipeline_mode<synchronous>, transform_indices = @transform_2, window_bounds = array<i64: 8, 384>}, {transform_indices = @transform_3, window_bounds = array<i64: 256, 8>}, {transform_indices = @transform_4, window_bounds = array<i64: 1, 3, 256, 128>}, {transform_indices = @transform_5, window_bounds = array<i64: 1, 3, 256, 128>}]} {
    %c0 = arith.constant 0 : index
    %c0_0 = arith.constant 0 : index
    %0 = vector.load %arg4[%c0, %c0_0] : memref<8x384xf32, #tpu.memory_space<vmem>>, vector<8x384xf32>
    %1 = vector.extract_strided_slice %0 {offsets = [0, 0], sizes = [1, 384], strides = [1, 1]} : vector<8x384xf32> to vector<1x384xf32>
    %2 = vector.extract_strided_slice %0 {offsets = [1, 0], sizes = [1, 384], strides = [1, 1]} : vector<8x384xf32> to vector<1x384xf32>
    %3 = vector.extract_strided_slice %0 {offsets = [2, 0], sizes = [1, 384], strides = [1, 1]} : vector<8x384xf32> to vector<1x384xf32>
    %4 = vector.extract_strided_slice %0 {offsets = [3, 0], sizes = [1, 384], strides = [1, 1]} : vector<8x384xf32> to vector<1x384xf32>
    %5 = vector.extract_strided_slice %0 {offsets = [4, 0], sizes = [1, 384], strides = [1, 1]} : vector<8x384xf32> to vector<1x384xf32>
    %c0_1 = arith.constant 0 : index
    %c0_2 = arith.constant 0 : index
    %c0_3 = arith.constant 0 : index
    %6 = vector.load %arg2[%c0_1, %c0_2, %c0_3] : memref<1x256x8xf32, #tpu.memory_space<vmem>>, vector<1x256x8xf32>
    %7 = vector.shape_cast %6 : vector<1x256x8xf32> to vector<256x8xf32>
    %c0_4 = arith.constant 0 : index
    %c0_5 = arith.constant 0 : index
    %8 = vector.load %arg3[%c0_4, %c0_5] : memref<8x384xf32, #tpu.memory_space<vmem>>, vector<8x384xf32>
    %cst = arith.constant dense<0.000000e+00> : vector<256x384xf32>
    %9 = tpu.matmul %7, %8, %cst {dimension_numbers = #tpu.dot_dimension_numbers<[1], [0], [0], [1], [0, 0, 1, 1], [], []>} : vector<256x8xf32>, vector<8x384xf32>, vector<256x384xf32> -> vector<256x384xf32>
    %10 = vector.broadcast %1 : vector<1x384xf32> to vector<256x384xf32>
    %11 = arith.addf %9, %10 : vector<256x384xf32>
    %cst_6 = arith.constant 0.000000e+00 : f32
    %12 = vector.broadcast %cst_6 : f32 to vector<256x384xf32>
    %13 = arith.subf %12, %11 : vector<256x384xf32>
    %14 = math.exp %13 : vector<256x384xf32>
    %cst_7 = arith.constant 1.000000e+00 : f32
    %15 = vector.broadcast %cst_7 : f32 to vector<256x384xf32>
    %16 = arith.addf %15, %14 : vector<256x384xf32>
    %cst_8 = arith.constant 1.000000e+00 : f32
    %17 = vector.broadcast %cst_8 : f32 to vector<256x384xf32>
    %18 = arith.divf %17, %16 : vector<256x384xf32>
    %c0_9 = arith.constant 0 : index
    %c0_10 = arith.constant 0 : index
    %19 = vector.load %arg5[%c0_9, %c0_10] : memref<256x8xf32, #tpu.memory_space<vmem>>, vector<256x8xf32>
    %20 = vector.extract_strided_slice %19 {offsets = [0, 0], sizes = [256, 1], strides = [1, 1]} : vector<256x8xf32> to vector<256x1xf32>
    %21 = vector.broadcast %20 : vector<256x1xf32> to vector<256x384xf32>
    %22 = vector.broadcast %4 : vector<1x384xf32> to vector<256x384xf32>
    %23 = arith.mulf %21, %22 : vector<256x384xf32>
    %24 = vector.extract_strided_slice %19 {offsets = [0, 1], sizes = [256, 1], strides = [1, 1]} : vector<256x8xf32> to vector<256x1xf32>
    %25 = vector.broadcast %24 : vector<256x1xf32> to vector<256x384xf32>
    %26 = vector.broadcast %5 : vector<1x384xf32> to vector<256x384xf32>
    %27 = arith.mulf %25, %26 : vector<256x384xf32>
    %28 = arith.addf %23, %27 : vector<256x384xf32>
    %29 = vector.broadcast %2 : vector<1x384xf32> to vector<256x384xf32>
    %30 = arith.mulf %18, %29 : vector<256x384xf32>
    %31 = vector.broadcast %3 : vector<1x384xf32> to vector<256x384xf32>
    %32 = arith.addf %30, %31 : vector<256x384xf32>
    %33 = arith.mulf %18, %32 : vector<256x384xf32>
    %34 = arith.addf %33, %28 : vector<256x384xf32>
    %35 = vector.extract_strided_slice %11 {offsets = [0, 0], sizes = [256, 128], strides = [1, 1]} : vector<256x384xf32> to vector<256x128xf32>
    %c0_11 = arith.constant 0 : index
    %c0_12 = arith.constant 0 : index
    %c0_13 = arith.constant 0 : index
    %c0_14 = arith.constant 0 : index
    %36 = vector.load %arg6[%c0_11, %c0_12, %c0_13, %c0_14] : memref<1x3x256x128xf32, #tpu.memory_space<vmem>>, vector<1x1x256x128xf32>
    %37 = vector.shape_cast %36 : vector<1x1x256x128xf32> to vector<256x128xf32>
    %38 = vector.shape_cast %35 : vector<256x128xf32> to vector<1x1x256x128xf32>
    tpu.vector_store %arg6[%c0_11, %c0_12, %c0_13, %c0_14], %38 {strides = array<i32>} : memref<1x3x256x128xf32, #tpu.memory_space<vmem>>, vector<1x1x256x128xf32>,
    %39 = vector.extract_strided_slice %34 {offsets = [0, 0], sizes = [256, 128], strides = [1, 1]} : vector<256x384xf32> to vector<256x128xf32>
    %c0_15 = arith.constant 0 : index
    %c0_16 = arith.constant 0 : index
    %c0_17 = arith.constant 0 : index
    %c0_18 = arith.constant 0 : index
    %40 = vector.load %arg7[%c0_15, %c0_16, %c0_17, %c0_18] : memref<1x3x256x128xf32, #tpu.memory_space<vmem>>, vector<1x1x256x128xf32>
    %41 = vector.shape_cast %40 : vector<1x1x256x128xf32> to vector<256x128xf32>
    %42 = vector.shape_cast %39 : vector<256x128xf32> to vector<1x1x256x128xf32>
    tpu.vector_store %arg7[%c0_15, %c0_16, %c0_17, %c0_18], %42 {strides = array<i32>} : memref<1x3x256x128xf32, #tpu.memory_space<vmem>>, vector<1x1x256x128xf32>,
    %43 = vector.extract_strided_slice %11 {offsets = [0, 128], sizes = [256, 128], strides = [1, 1]} : vector<256x384xf32> to vector<256x128xf32>
    %c0_19 = arith.constant 0 : index
    %c1 = arith.constant 1 : index
    %c0_20 = arith.constant 0 : index
    %c0_21 = arith.constant 0 : index
    %44 = vector.load %arg6[%c0_19, %c1, %c0_20, %c0_21] : memref<1x3x256x128xf32, #tpu.memory_space<vmem>>, vector<1x1x256x128xf32>
    %45 = vector.shape_cast %44 : vector<1x1x256x128xf32> to vector<256x128xf32>
    %46 = vector.shape_cast %43 : vector<256x128xf32> to vector<1x1x256x128xf32>
    tpu.vector_store %arg6[%c0_19, %c1, %c0_20, %c0_21], %46 {strides = array<i32>} : memref<1x3x256x128xf32, #tpu.memory_space<vmem>>, vector<1x1x256x128xf32>,
    %47 = vector.extract_strided_slice %34 {offsets = [0, 128], sizes = [256, 128], strides = [1, 1]} : vector<256x384xf32> to vector<256x128xf32>
    %c0_22 = arith.constant 0 : index
    %c1_23 = arith.constant 1 : index
    %c0_24 = arith.constant 0 : index
    %c0_25 = arith.constant 0 : index
    %48 = vector.load %arg7[%c0_22, %c1_23, %c0_24, %c0_25] : memref<1x3x256x128xf32, #tpu.memory_space<vmem>>, vector<1x1x256x128xf32>
    %49 = vector.shape_cast %48 : vector<1x1x256x128xf32> to vector<256x128xf32>
    %50 = vector.shape_cast %47 : vector<256x128xf32> to vector<1x1x256x128xf32>
    tpu.vector_store %arg7[%c0_22, %c1_23, %c0_24, %c0_25], %50 {strides = array<i32>} : memref<1x3x256x128xf32, #tpu.memory_space<vmem>>, vector<1x1x256x128xf32>,
    %51 = vector.extract_strided_slice %11 {offsets = [0, 256], sizes = [256, 128], strides = [1, 1]} : vector<256x384xf32> to vector<256x128xf32>
    %c0_26 = arith.constant 0 : index
    %c2 = arith.constant 2 : index
    %c0_27 = arith.constant 0 : index
    %c0_28 = arith.constant 0 : index
    %52 = vector.load %arg6[%c0_26, %c2, %c0_27, %c0_28] : memref<1x3x256x128xf32, #tpu.memory_space<vmem>>, vector<1x1x256x128xf32>
    %53 = vector.shape_cast %52 : vector<1x1x256x128xf32> to vector<256x128xf32>
    %54 = vector.shape_cast %51 : vector<256x128xf32> to vector<1x1x256x128xf32>
    tpu.vector_store %arg6[%c0_26, %c2, %c0_27, %c0_28], %54 {strides = array<i32>} : memref<1x3x256x128xf32, #tpu.memory_space<vmem>>, vector<1x1x256x128xf32>,
    %55 = vector.extract_strided_slice %34 {offsets = [0, 256], sizes = [256, 128], strides = [1, 1]} : vector<256x384xf32> to vector<256x128xf32>
    %c0_29 = arith.constant 0 : index
    %c2_30 = arith.constant 2 : index
    %c0_31 = arith.constant 0 : index
    %c0_32 = arith.constant 0 : index
    %56 = vector.load %arg7[%c0_29, %c2_30, %c0_31, %c0_32] : memref<1x3x256x128xf32, #tpu.memory_space<vmem>>, vector<1x1x256x128xf32>
    %57 = vector.shape_cast %56 : vector<1x1x256x128xf32> to vector<256x128xf32>
    %58 = vector.shape_cast %55 : vector<256x128xf32> to vector<1x1x256x128xf32>
    tpu.vector_store %arg7[%c0_29, %c2_30, %c0_31, %c0_32], %58 {strides = array<i32>} : memref<1x3x256x128xf32, #tpu.memory_space<vmem>>, vector<1x1x256x128xf32>,
    return
  }
  func.func @transform_0(%arg0: i32, %arg1: i32) -> (i32, i32, i32) {
    %c0_i32 = arith.constant 0 : i32
    %c0_i32_0 = arith.constant 0 : i32
    return %arg0, %arg1, %c0_i32 : i32, i32, i32
  }
  func.func @transform_1(%arg0: i32, %arg1: i32) -> (i32, i32) {
    %c0_i32 = arith.constant 0 : i32
    %c0_i32_0 = arith.constant 0 : i32
    %c0_i32_1 = arith.constant 0 : i32
    return %c0_i32, %c0_i32_0 : i32, i32
  }
  func.func @transform_2(%arg0: i32, %arg1: i32) -> (i32, i32) {
    %c0_i32 = arith.constant 0 : i32
    %c0_i32_0 = arith.constant 0 : i32
    %c0_i32_1 = arith.constant 0 : i32
    return %c0_i32, %c0_i32_0 : i32, i32
  }
  func.func @transform_3(%arg0: i32, %arg1: i32) -> (i32, i32) {
    %c0_i32 = arith.constant 0 : i32
    %c0_i32_0 = arith.constant 0 : i32
    return %arg1, %c0_i32 : i32, i32
  }
  func.func @transform_4(%arg0: i32, %arg1: i32) -> (i32, i32, i32, i32) {
    %c0_i32 = arith.constant 0 : i32
    %c0_i32_0 = arith.constant 0 : i32
    %c0_i32_1 = arith.constant 0 : i32
    return %arg0, %c0_i32, %arg1, %c0_i32_0 : i32, i32, i32, i32
  }
  func.func @transform_5(%arg0: i32, %arg1: i32) -> (i32, i32, i32, i32) {
    %c0_i32 = arith.constant 0 : i32
    %c0_i32_0 = arith.constant 0 : i32
    %c0_i32_1 = arith.constant 0 : i32
    return %arg0, %c0_i32, %arg1, %c0_i32_0 : i32, i32, i32, i32
  }
}

</mosaic_0001>

<bundles_post_ra>
// kernel: tpu_custom_call.1
= control target key start
LH: loop header
LB: loop body
LE: loop exit
PB: predicated region body
PF: predicated region fallthrough
CT: control target
= control target key end

     0   :  { %11 = vsyncpa [#allocation3], 0  ;;  %s5977_s0 = inlined_call_operand.vmem [shape: f32[2,256,8], index: 0, kind: input, shape index: {}]   ;;  %s5978_s1 = inlined_call_operand.vmem [shape: f32[8,384], index: 1, kind: input, shape index: {}]   ;;  %s5979_s2 = inlined_call_operand.vmem [shape: f32[8,384], index: 2, kind: input, shape index: {}]   ;;  %s5980_s3 = inlined_call_operand.vmem [shape: f32[256,8], index: 3, kind: input, shape index: {}]   ;;  %s5981_s4 = inlined_call_operand.hbm [shape: f32[2,3,256,128], index: 4, kind: output, shape index: {0}]   ;;  %s5982_s5 = inlined_call_operand.hbm [shape: f32[2,3,256,128], index: 5, kind: output, shape index: {1}]  }
   0x1   :  { %13 = vsyncpa [#allocation3 + $0x1], 0 }
   0x2   :  { %14 = vsyncpa [#allocation5], 0 }
   0x3   :  { %16 = vsyncpa [#allocation5 + $0x1], 0  ;;  %s3794_s18 = smov 0   ;;  %s3796_s19 = smov 0  }
   0x4   :  { %s3798_s20 = smov 0   ;;  %s3800_s21 = smov 0  }
   0x5   :  { %s3802_s22 = smov 0   ;;  %s3804_s23 = smov 0  }
   0x6 LB: > { %s2899_s24 = sadd.s32 4294967295, %s3755_s23   ;;  %s2900_s25 = sadd.s32 4294967294, %s3755_s23   ;;  %s3755_s23 = sphi %s3804_s23, %s22_s23   ;;  %s3751_s22 = sphi %s3802_s22, %s6327_s22   ;;  %s3747_s21 = sphi %s3800_s21, %s6326_s21   ;;  %s3743_s20 = sphi %s3798_s20, %s6325_s20   ;;  %s3739_s19 = sphi %s3796_s19, %s6324_s19   ;;  %s3735_s18 = sphi %s3794_s18, %s6323_s18  }
   0x7   : > { %s34_s26 = sadd.s32 1, %s3751_s22  ;;  %s139_s27 = sadd.s32 1, %s3743_s20 }
   0x8   : > { %p36_p0 = scmp.ge.s32.totalorder %s34_s26, 2  ;;  %p149_p1 = scmp.ne.s32.totalorder %s3743_s20, %s3739_s19 }
   0x9   : > { %p150_p2 = scmp.eq.s32.totalorder %s2899_s24, 1  ;;  %p155_p3 = scmp.ne.s32.totalorder %s3739_s19, %s3735_s18 }
   0xa   : > { %s6329_s26 = smov (%p36_p0, %s34_s26), 0  ;;  %p156_p5 = scmp.eq.s32.totalorder %s2900_s25, 1 }
   0xb   : > { %p3834_p4 = por %p150_p2, %p149_p1  ;;  %s134_s29 = ssub.s32 %s3751_s22, %s6329_s26 }
   0xc   : > { %p2904_p6 = scmp.ge.s32.totalorder %s3755_s23, 1  ;;  %p137_p7 = scmp.eq.s32.totalorder %s134_s29, 0 }
   0xd   : > { %p3841_p8 = por %p156_p5, %p155_p3  ;;  %p230_p9 = scmp.lt.s32.totalorder %s3755_s23, 3 }
   0xe   : > { %s3847_s6 = scalar_select %p137_p7, %s3743_s20, %s139_s27  }
   0xf   : > { %p231_p10 = pnand %p2904_p6, %p230_p9 }
  0x11   : > { %234 = sbr.rel (%p231_p10) target bundleno = 557 (0x22d), region = 36 }
  0x18   : > { %v3852_v0 = vld [vmem:[%s5980_s3 + $0x10] sm:$0xff]  ;;  %v3857_v1 = vld [vmem:[%s5980_s3] sm:$0xff]  ;;  %v326_v2 = vld [vmem:[%s5978_s1 + $0x8] sm:$0xff]  ;;  %p273_p11 = scmp.lt.s32.totalorder %s3747_s21, 1  ;;  %v3757_v3 = vmov 0   ;;  %vm340_vm0 = vcmask 64512  }
  0x19   : > { %3258 = vset.pattern.permute.xlu1 %v3757_v3  ;;  %3257 = vset.pattern.permute.xlu0 %v3757_v3  ;;  %v325_v4 = vld [vmem:[%s5978_s1] sm:$0xff]  ;;  %v3872_v5 = vld [vmem:[%s5980_s3 + $0x18] sm:$0xff]  ;;  %v3877_v6 = vld [vmem:[%s5980_s3 + $0x8] sm:$0xff]  ;;  %v3758_v8 = vmov 0.0   ;;  %v3759_v61 = vmov 1   ;;  %s4729_s16 = sand.u32 1, %s3739_s19  }
  0x1a   : > { %1539 = vperm.xlu1 %3258, %v3852_v0   ;;  %1529 = vperm.xlu0 %3257, %v3857_v1   ;;  %s274_s15 = scalar_select %p273_p11, %s3747_s21, 1  ;;  %v327_v7 = vld [vmem:[%s5978_s1 + $0x10] sm:$0xff]  ;;  %v3902_v11 = vld [vmem:[%s5980_s3 + $0x28] sm:$0xff]  ;;  %v3907_v12 = vld [vmem:[%s5980_s3 + $0x20] sm:$0xff] }
  0x1b   : > { %3187 = vmatprep.subr.mxu1 %v326_v2  ;;  %437 = vmatprep.subr.mxu0 %v326_v2  ;;  %v3926_v15 = vld [vmem:[%s5980_s3 + $0x38] sm:$0xff]  ;;  %v3931_v16 = vld [vmem:[%s5980_s3 + $0x30] sm:$0xff]  ;;  %v3950_v19 = vld [vmem:[%s5980_s3 + $0x48] sm:$0xff]  ;;  %s3189_s17 = smul.u32 768, %s4729_s16  ;;  %s3760_s12 = smov [#allocation2]  }
  0x1c   : > { %3188 = vmatpush1.msra.mxu1 %v325_v4  ;;  %438 = vmatpush1.msra.mxu0 %v325_v4  ;;  %s3103_s7 = sshll.u32 %s274_s15, 8  ;;  %v3955_v20 = vld [vmem:[%s5980_s3 + $0x40] sm:$0xff]  ;;  %v3974_v23 = vld [vmem:[%s5980_s3 + $0x58] sm:$0xff]  ;;  %v3979_v24 = vld [vmem:[%s5980_s3 + $0x50] sm:$0xff]  ;;  %s3190_s27 = smul.u32 12288, %s3747_s21 }
  0x1d   : > { %501 = vmatprep.mubr.f32.mxu0 %v3758_v8  ;;  %645 = vmatprep.mubr.f32.mxu1 %v3758_v8  ;;  %s3887_s10 = scalar_lea.vmem %s5977_s0, %s3103_s7  ;;  %v3995_v27 = vld [vmem:[%s5980_s3 + $0x68] sm:$0xff]  ;;  %v4000_v28 = vld [vmem:[%s5980_s3 + $0x60] sm:$0xff]  ;;  %v4016_v31 = vld [vmem:[%s5980_s3 + $0x78] sm:$0xff]  ;;  %s4822_s24 = scalar_lea.vmem [#allocation2], %s3189_s17 }
  0x1e   : > { %1544 = vperm.xlu1 %3258, %v3872_v5   ;;  %1534 = vperm.xlu0 %3257, %v3877_v6   ;;  %v3892_v9 = vld [vmem:[%s3887_s10] sm:$0xff]  ;;  %v3913_v13 = vld [vmem:[%s3887_s10 + $0x8] sm:$0xff]  ;;  %v3937_v17 = vld [vmem:[%s3887_s10 + $0x10] sm:$0xff]  ;;  %s5028_s25 = scalar_lea.vmem [#allocation4], %s3189_s17  ;;  %s2752_s29 = sshll.u32 %s4822_s24, 4  ;;  %s5819_s29 = int_to_ptr.vmem [resolvable:$true] %s2752_s29 }
  0x1f   : > { %v3895_v10 = vld [vmem:[%s3887_s10 + $0xc0] sm:$0xff]  ;;  %3137 = vmatprep.subr.mxu1 %v327_v7  ;;  %2907 = vmatmul.mubr.msk.f32.vlgmr.msra.gmra.mrb[0].mxu0 %vm340_vm0, %v3892_v9  ;;  %v3917_v14 = vld [vmem:[%s3887_s10 + $0xc8] sm:$0xff]  ;;  %v3941_v18 = vld [vmem:[%s3887_s10 + $0xd0] sm:$0xff]  ;;  %s5817_s9 = scalar_lea.hbm %s5981_s4, %s3190_s27  ;;  %s3645_s11 = scalar_lea.vmem %s5819_s29, 12288 }
  0x20   : > { %2931 = vmatmul.mubr.msk.f32.vlgmr.msra.gmra.mrb[0].mxu1 %vm340_vm0, %v3895_v10  ;;  %507 = vmatprep.mubr.f32.mxu0 %v3758_v8  ;;  %v3961_v21 = vld [vmem:[%s3887_s10 + $0x18] sm:$0xff]  ;;  %v297_v25 = vld [vmem:[%s3887_s10 + $0x20] sm:$0xff]  ;;  %v298_v29 = vld [vmem:[%s3887_s10 + $0x28] sm:$0xff]  ;;  %p3646_p12 = scmp.ne.s32.totalorder %s5819_s29, %s3645_s11  ;;  %s3649_s13 = sshll.u32 %s3760_s12, 4  ;;  %s3650_s13 = int_to_ptr.vmem [resolvable:$false] %s3649_s13 }
  0x21   : > { %3138 = vmatpush3.msra.mxu1 %v327_v7  ;;  %651 = vmatprep.mubr.f32.mxu1 %v3758_v8  ;;  %v3965_v22 = vld [vmem:[%s3887_s10 + $0xd8] sm:$0xff]  ;;  %v3987_v26 = vld [vmem:[%s3887_s10 + $0xe0] sm:$0xff]  ;;  %v4008_v30 = vld [vmem:[%s3887_s10 + $0xe8] sm:$0xff]  ;;  %s3651_s14 = scalar_lea.vmem %s3650_s13, 24576  ;;  %p3652_p1 = scmp.lt.s32.totalorder %s5819_s29, %s3650_s13 }
  0x22   : > { %1554 = vperm.xlu1 %3258, %v3902_v11   ;;  %1549 = vperm.xlu0 %3257, %v3907_v12   ;;  %v4021_v32 = vld [vmem:[%s5980_s3 + $0x70] sm:$0xff]  ;;  %v4037_v35 = vld [vmem:[%s5980_s3 + $0x88] sm:$0xff]  ;;  %v4042_v36 = vld [vmem:[%s5980_s3 + $0x80] sm:$0xff]  ;;  %p3647_p13 = pnand %p3646_p12, %p3834_p4  ;;  %p3653_p2 = scmp.lt.s32.totalorder %s3651_s14, %s3645_s11 }
  0x23   : > { %2908 = vmatmul.mubr.msk.f32.gmra.mrb[2].mxu0 %vm340_vm0, %v3913_v13  ;;  %v299_v33 = vld [vmem:[%s3887_s10 + $0x30] sm:$0xff]  ;;  %v300_v37 = vld [vmem:[%s3887_s10 + $0x38] sm:$0xff]  ;;  %v301_v41 = vld [vmem:[%s3887_s10 + $0x40] sm:$0xff] }
  0x24   : > { %2932 = vmatmul.mubr.msk.f32.gmra.mrb[2].mxu1 %vm340_vm0, %v3917_v14  ;;  %513 = vmatprep.mubr.f32.mxu0 %v3758_v8  ;;  %v4029_v34 = vld [vmem:[%s3887_s10 + $0xf0] sm:$0xff]  ;;  %v4050_v38 = vld [vmem:[%s3887_s10 + $0xf8] sm:$0xff]  ;;  %v4077_v42 = vld [vmem:[%s5980_s3 + $0xa8] sm:$0xff]  ;;  %p3648_p0 = pneg %p3647_p13  ;;  %p3654_p3 = por %p3653_p2, %p3652_p1 }
  0x25   : > { %657 = vmatprep.mubr.f32.mxu1 %v3758_v8  ;;  %v4058_v39 = vld [vmem:[%s5980_s3 + $0x98] sm:$0xff]  ;;  %v4063_v40 = vld [vmem:[%s5980_s3 + $0x90] sm:$0xff]  ;;  %v4082_v43 = vld [vmem:[%s5980_s3 + $0xa0] sm:$0xff] }
  0x26   : > { %1564 = vperm.xlu1 %3258, %v3926_v15   ;;  %1559 = vperm.xlu0 %3257, %v3931_v16   ;;  %v302_v44 = vld [vmem:[%s3887_s10 + $0x48] sm:$0xff]  ;;  %v4096_v45 = vld [vmem:[%s5980_s3 + $0xb8] sm:$0xff]  ;;  %v4101_v46 = vld [vmem:[%s5980_s3 + $0xb0] sm:$0xff]  ;;  %p3655_p5 = pnand %p3654_p3, %p3648_p0 }
  0x27   : > { %2909 = vmatmul.mubr.msk.f32.gmra.mrb[4].mxu0 %vm340_vm0, %v3937_v17  ;;  %v303_v47 = vld [vmem:[%s3887_s10 + $0x50] sm:$0xff]  ;;  %v4114_v48 = vld [vmem:[%s5980_s3 + $0xc8] sm:$0xff]  ;;  %v4119_v49 = vld [vmem:[%s5980_s3 + $0xc0] sm:$0xff] }
  0x28   : > { %2933 = vmatmul.mubr.msk.f32.gmra.mrb[4].mxu1 %vm340_vm0, %v3941_v18  ;;  %519 = vmatprep.mubr.f32.mxu0 %v3758_v8  ;;  %v304_v50 = vld [vmem:[%s3887_s10 + $0x58] sm:$0xff]  ;;  %v4136_v52 = vld [vmem:[%s5980_s3 + $0xd0] sm:$0xff]  ;;  %v305_v53 = vld [vmem:[%s3887_s10 + $0x60] sm:$0xff] }
  0x29   : > { %663 = vmatprep.mubr.f32.mxu1 %v3758_v8  ;;  %v4131_v51 = vld [vmem:[%s5980_s3 + $0xd8] sm:$0xff]  ;;  %v4148_v54 = vld [vmem:[%s5980_s3 + $0xe8] sm:$0xff]  ;;  %v4153_v55 = vld [vmem:[%s5980_s3 + $0xe0] sm:$0xff] }
  0x2a   : > { %1574 = vperm.xlu1 %3258, %v3950_v19   ;;  %1569 = vperm.xlu0 %3257, %v3955_v20   ;;  %v306_v56 = vld [vmem:[%s3887_s10 + $0x68] sm:$0xff]  ;;  %v4165_v57 = vld [vmem:[%s5980_s3 + $0xf8] sm:$0xff]  ;;  %v4170_v58 = vld [vmem:[%s5980_s3 + $0xf0] sm:$0xff] }
  0x2b   : > { %2910 = vmatmul.mubr.msk.f32.gmra.mrb[6].mxu0 %vm340_vm0, %v3961_v21  ;;  %v307_v59 = vld [vmem:[%s3887_s10 + $0x70] sm:$0xff]  ;;  %v308_v60 = vld [vmem:[%s3887_s10 + $0x78] sm:$0xff]  ;;  %v309_v62 = vld [vmem:[%s3887_s10 + $0x80] sm:$0xff] }
  0x2c   : > { %2934 = vmatmul.mubr.msk.f32.gmra.mrb[6].mxu1 %vm340_vm0, %v3965_v22  ;;  %525 = vmatprep.mubr.f32.mxu0 %v3758_v8  ;;  %v310_v63 = vld [vmem:[%s3887_s10 + $0x88] sm:$0xff]  ;;  %v311_v2 = vld [vmem:[%s3887_s10 + $0x90] sm:$0xff]  ;;  %v313_v3 = vld [vmem:[%s3887_s10 + $0xa0] sm:$0xff] }
  0x2d   : > { %669 = vmatprep.mubr.f32.mxu1 %v3758_v8  ;;  %v315_v4 = vld [vmem:[%s3887_s10 + $0xb0] sm:$0xff] }
  0x2e   : > { %1584 = vperm.xlu1 %3258, %v3974_v23   ;;  %1579 = vperm.xlu0 %3257, %v3979_v24  }
  0x2f   : > { %2911 = vmatmul.mubr.msk.f32.gmra.mrb[8].mxu0 %vm340_vm0, %v297_v25 }
  0x30   : > { %2935 = vmatmul.mubr.msk.f32.gmra.mrb[8].mxu1 %vm340_vm0, %v3987_v26  ;;  %531 = vmatprep.mubr.f32.mxu0 %v3758_v8 }
  0x31   : > { %675 = vmatprep.mubr.f32.mxu1 %v3758_v8 }
  0x32   : > { %1594 = vperm.xlu1 %3258, %v3995_v27   ;;  %1589 = vperm.xlu0 %3257, %v4000_v28  }
  0x33   : > { %2912 = vmatmul.mubr.msk.f32.gmra.mrb[10].mxu0 %vm340_vm0, %v298_v29 }
  0x34   : > { %2936 = vmatmul.mubr.msk.f32.gmra.mrb[10].mxu1 %vm340_vm0, %v4008_v30  ;;  %537 = vmatprep.mubr.f32.mxu0 %v3758_v8 }
  0x35   : > { %681 = vmatprep.mubr.f32.mxu1 %v3758_v8 }
  0x36   : > { %1604 = vperm.xlu1 %3258, %v4016_v31   ;;  %1599 = vperm.xlu0 %3257, %v4021_v32  }
  0x37   : > { %2913 = vmatmul.mubr.msk.f32.gmra.mrb[12].mxu0 %vm340_vm0, %v299_v33 }
  0x38   : > { %2937 = vmatmul.mubr.msk.f32.gmra.mrb[12].mxu1 %vm340_vm0, %v4029_v34  ;;  %543 = vmatprep.mubr.f32.mxu0 %v3758_v8 }
  0x39   : > { %687 = vmatprep.mubr.f32.mxu1 %v3758_v8 }
  0x3a   : > { %1614 = vperm.xlu1 %3258, %v4037_v35   ;;  %1609 = vperm.xlu0 %3257, %v4042_v36  }
  0x3b   : > { %2914 = vmatmul.mubr.msk.f32.gmra.mrb[14].mxu0 %vm340_vm0, %v300_v37 }
  0x3c   : > { %2938 = vmatmul.mubr.msk.f32.gmra.mrb[14].mxu1 %vm340_vm0, %v4050_v38  ;;  %549 = vmatprep.mubr.f32.mxu0 %v3758_v8 }
  0x3d   : > { %3139 = vmatprep.mubr.msk.f32.mxu1 %vm340_vm0, %v3892_v9  ;;  %v4269_v9 = vld [vmem:[%s5979_s2 + $0x10] sm:$0xff] }
  0x3e   : > { %1624 = vperm.xlu1 %3258, %v4058_v39   ;;  %1619 = vperm.xlu0 %3257, %v4063_v40  }
  0x3f   : > { %2915 = vmatmul.mubr.msk.f32.gmra.mrb[16].mxu0 %vm340_vm0, %v301_v41 }
  0x40   : > { %3140 = vmatmul.mubr.msk.f32.vlgmr.msra.gmra.mrb[16].mxu1 %vm340_vm0, %v3913_v13  ;;  %555 = vmatprep.mubr.f32.mxu0 %v3758_v8 }
  0x41   : > { %3142 = vmatprep.mubr.msk.f32.mxu1 %vm340_vm0, %v3937_v17 }
  0x42   : > { %1634 = vperm.xlu1 %3258, %v4077_v42   ;;  %1629 = vperm.xlu0 %3257, %v4082_v43  }
  0x43   : > { %2916 = vmatmul.mubr.msk.f32.gmra.mrb[18].mxu0 %vm340_vm0, %v302_v44 }
  0x44   : > { %3143 = vmatmul.mubr.msk.f32.gmra.mrb[18].mxu1 %vm340_vm0, %v3961_v21  ;;  %561 = vmatprep.mubr.f32.mxu0 %v3758_v8 }
  0x45   : > { %3145 = vmatprep.mubr.msk.f32.mxu1 %vm340_vm0, %v297_v25 }
  0x46   : > { %1644 = vperm.xlu1 %3258, %v4096_v45   ;;  %1639 = vperm.xlu0 %3257, %v4101_v46  }
  0x47   : > { %2917 = vmatmul.mubr.msk.f32.gmra.mrb[20].mxu0 %vm340_vm0, %v303_v47 }
  0x48   : > { %3146 = vmatmul.mubr.msk.f32.gmra.mrb[20].mxu1 %vm340_vm0, %v298_v29  ;;  %567 = vmatprep.mubr.f32.mxu0 %v3758_v8 }
  0x49   : > { %3148 = vmatprep.mubr.msk.f32.mxu1 %vm340_vm0, %v299_v33 }
  0x4a   : > { %1654 = vperm.xlu1 %3258, %v4114_v48   ;;  %1649 = vperm.xlu0 %3257, %v4119_v49  }
  0x4b   : > { %2918 = vmatmul.mubr.msk.f32.gmra.mrb[22].mxu0 %vm340_vm0, %v304_v50 }
  0x4c   : > { %3149 = vmatmul.mubr.msk.f32.gmra.mrb[22].mxu1 %vm340_vm0, %v300_v37  ;;  %573 = vmatprep.mubr.f32.mxu0 %v3758_v8 }
  0x4d   : > { %3151 = vmatprep.mubr.msk.f32.mxu1 %vm340_vm0, %v301_v41 }
  0x4e   : > { %1664 = vperm.xlu1 %3258, %v4131_v51   ;;  %1659 = vperm.xlu0 %3257, %v4136_v52  }
  0x4f   : > { %2919 = vmatmul.mubr.msk.f32.gmra.mrb[24].mxu0 %vm340_vm0, %v305_v53 }
  0x50   : > { %3152 = vmatmul.mubr.msk.f32.gmra.mrb[24].mxu1 %vm340_vm0, %v302_v44  ;;  %579 = vmatprep.mubr.f32.mxu0 %v3758_v8 }
  0x51   : > { %3154 = vmatprep.mubr.msk.f32.mxu1 %vm340_vm0, %v303_v47 }
  0x52   : > { %1674 = vperm.xlu1 %3258, %v4148_v54   ;;  %1669 = vperm.xlu0 %3257, %v4153_v55  }
  0x53   : > { %2920 = vmatmul.mubr.msk.f32.gmra.mrb[26].mxu0 %vm340_vm0, %v306_v56 }
  0x54   : > { %3155 = vmatmul.mubr.msk.f32.gmra.mrb[26].mxu1 %vm340_vm0, %v304_v50  ;;  %585 = vmatprep.mubr.f32.mxu0 %v3758_v8 }
  0x55   : > { %3157 = vmatprep.mubr.msk.f32.mxu1 %vm340_vm0, %v305_v53 }
  0x56   : > { %1684 = vperm.xlu1 %3258, %v4165_v57   ;;  %1679 = vperm.xlu0 %3257, %v4170_v58  }
  0x57   : > { %2921 = vmatmul.mubr.msk.f32.gmra.mrb[28].mxu0 %vm340_vm0, %v307_v59 }
  0x58   : > { %3158 = vmatmul.mubr.msk.f32.gmra.mrb[28].mxu1 %vm340_vm0, %v306_v56  ;;  %591 = vmatprep.mubr.f32.mxu0 %v3758_v8 }
  0x59   : > { %3160 = vmatprep.mubr.msk.f32.mxu1 %vm340_vm0, %v307_v59 }
  0x5a   : > { %3260 = vset.pattern.permute.xlu1 %v3759_v61  ;;  %3259 = vset.pattern.permute.xlu0 %v3759_v61 }
  0x5b   : > { %1800 = vperm.xlu1 %3260, %v3877_v6   ;;  %1796 = vperm.xlu0 %3259, %v3857_v1   ;;  %v312_v1 = vld [vmem:[%s3887_s10 + $0x98] sm:$0xff]  ;;  %v328_v6 = vlaneseq }
  0x5c   : > { %2922 = vmatmul.mubr.msk.f32.gmra.mrb[30].mxu0 %vm340_vm0, %v308_v60  ;;  %3161 = vmatmul.mubr.msk.f32.gmra.mrb[30].mxu1 %vm340_vm0, %v308_v60 }
  0x5d   : > { %597 = vmatprep.mubr.f32.mxu0 %v3758_v8  ;;  %3163 = vmatprep.mubr.msk.f32.mxu1 %vm340_vm0, %v309_v62  ;;  %v4259_v7 = vshrl.u32 %v328_v6, 7 }
  0x5f   : > { %1804 = vperm.xlu1 %3260, %v3852_v0   ;;  %1808 = vperm.xlu0 %3259, %v3872_v5   ;;  %v314_v0 = vld [vmem:[%s3887_s10 + $0xa8] sm:$0xff]  ;;  %v316_v5 = vld [vmem:[%s3887_s10 + $0xb8] sm:$0xff]  ;;  %s2732_s10 = scalar_lea.sflag [#allocation3], %s4729_s16 }
  0x60   : > { %2923 = vmatmul.mubr.msk.f32.gmra.mrb[32].mxu0 %vm340_vm0, %v309_v62  ;;  %3164 = vmatmul.mubr.msk.f32.gmra.mrb[32].mxu1 %vm340_vm0, %v310_v63 }
  0x61   : > { %603 = vmatprep.mubr.f32.mxu0 %v3758_v8  ;;  %3166 = vmatprep.mubr.msk.f32.mxu1 %vm340_vm0, %v311_v2 }
  0x63   : > { %1812 = vperm.xlu1 %3260, %v3907_v12   ;;  %1816 = vperm.xlu0 %3259, %v3902_v11  }
  0x64   : > { %2924 = vmatmul.mubr.msk.f32.gmra.mrb[34].mxu0 %vm340_vm0, %v310_v63  ;;  %3167 = vmatmul.mubr.msk.f32.gmra.mrb[34].mxu1 %vm340_vm0, %v312_v1 }
  0x65   : > { %609 = vmatprep.mubr.f32.mxu0 %v3758_v8  ;;  %3169 = vmatprep.mubr.msk.f32.mxu1 %vm340_vm0, %v313_v3 }
  0x67   : > { %1820 = vperm.xlu1 %3260, %v3931_v16   ;;  %1824 = vperm.xlu0 %3259, %v3926_v15  }
  0x68   : > { %2925 = vmatmul.mubr.msk.f32.gmra.mrb[36].mxu0 %vm340_vm0, %v311_v2  ;;  %3170 = vmatmul.mubr.msk.f32.gmra.mrb[36].mxu1 %vm340_vm0, %v314_v0 }
  0x69   : > { %615 = vmatprep.mubr.f32.mxu0 %v3758_v8  ;;  %3172 = vmatprep.mubr.msk.f32.mxu1 %vm340_vm0, %v315_v4 }
  0x6b   : > { %1828 = vperm.xlu1 %3260, %v3955_v20   ;;  %1832 = vperm.xlu0 %3259, %v3950_v19   ;;  %v4304_v19 = vld [vmem:[%s5979_s2 + $0x8] sm:$0xff] }
  0x6c   : > { %2926 = vmatmul.mubr.msk.f32.gmra.mrb[38].mxu0 %vm340_vm0, %v312_v1  ;;  %3173 = vmatmul.mubr.msk.f32.gmra.mrb[38].mxu1 %vm340_vm0, %v316_v5 }
  0x6d   : > { %621 = vmatprep.mubr.f32.mxu0 %v3758_v8  ;;  %3175 = vmatprep.mubr.msk.f32.mxu1 %vm340_vm0, %v3895_v10 }
  0x6f   : > { %1836 = vperm.xlu1 %3260, %v3979_v24   ;;  %1840 = vperm.xlu0 %3259, %v3974_v23  }
  0x70   : > { %2927 = vmatmul.mubr.msk.f32.gmra.mrb[40].mxu0 %vm340_vm0, %v313_v3  ;;  %3176 = vmatmul.mubr.msk.f32.gmra.mrb[40].mxu1 %vm340_vm0, %v3917_v14 }
  0x71   : > { %627 = vmatprep.mubr.f32.mxu0 %v3758_v8  ;;  %3178 = vmatprep.mubr.msk.f32.mxu1 %vm340_vm0, %v3941_v18  ;;  %v4299_v18 = vld [vmem:[%s5979_s2] sm:$0xff] }
  0x73   : > { %1844 = vperm.xlu1 %3260, %v4000_v28   ;;  %1848 = vperm.xlu0 %3259, %v3995_v27  }
  0x74   : > { %2928 = vmatmul.mubr.msk.f32.gmra.mrb[42].mxu0 %vm340_vm0, %v314_v0  ;;  %3179 = vmatmul.mubr.msk.f32.gmra.mrb[42].mxu1 %vm340_vm0, %v3965_v22 }
  0x75   : > { %633 = vmatprep.mubr.f32.mxu0 %v3758_v8  ;;  %3181 = vmatprep.mubr.msk.f32.mxu1 %vm340_vm0, %v3987_v26 }
  0x77   : > { %1852 = vperm.xlu1 %3260, %v4021_v32   ;;  %1856 = vperm.xlu0 %3259, %v4016_v31  }
  0x78   : > { %2929 = vmatmul.mubr.msk.f32.gmra.mrb[44].mxu0 %vm340_vm0, %v315_v4  ;;  %3182 = vmatmul.mubr.msk.f32.gmra.mrb[44].mxu1 %vm340_vm0, %v4008_v30 }
  0x79   : > { %639 = vmatprep.mubr.f32.mxu0 %v3758_v8  ;;  %3184 = vmatprep.mubr.msk.f32.mxu1 %vm340_vm0, %v4029_v34  ;;  %v1689_v8 = vsub.s32 3, %v4259_v7 }
  0x7b   : > { %1860 = vperm.xlu1 %3260, %v4042_v36   ;;  %1864 = vperm.xlu0 %3259, %v4037_v35   ;;  %v4272_v10 = vrot.slane %v4269_v9, %v1689_v8  ;;  %v4315_v23 = vrot.slane %v4299_v18, %v1689_v8  ;;  %v4318_v24 = vrot.slane %v4304_v19, %v1689_v8 }
  0x7c   : > { %2930 = vmatmul.mubr.msk.f32.gmra.mrb[46].mxu0 %vm340_vm0, %v316_v5  ;;  %3185 = vmatmul.mubr.msk.f32.gmra.mrb[46].mxu1 %vm340_vm0, %v4050_v38 }
  0x7f   : > { %1868 = vperm.xlu1 %3260, %v4063_v40   ;;  %1872 = vperm.xlu0 %3259, %v4058_v39  }
  0x83   : > { %1876 = vperm.xlu1 %3260, %v4082_v43   ;;  %1880 = vperm.xlu0 %3259, %v4077_v42  }
  0x87   : > { %1884 = vperm.xlu1 %3260, %v4101_v46   ;;  %1888 = vperm.xlu0 %3259, %v4096_v45  }
  0x8b   : > { %1892 = vperm.xlu1 %3260, %v4119_v49   ;;  %1896 = vperm.xlu0 %3259, %v4114_v48  }
  0x8f   : > { %1900 = vperm.xlu1 %3260, %v4136_v52   ;;  %1904 = vperm.xlu0 %3259, %v4131_v51  }
  0x93   : > { %1908 = vperm.xlu1 %3260, %v4153_v55   ;;  %1912 = vperm.xlu0 %3259, %v4148_v54  }
  0x97   : > { %1916 = vperm.xlu1 %3260, %v4170_v58   ;;  %1920 = vperm.xlu0 %3259, %v4165_v57  }
  0x99   : > { %v4276_v11 = vpop.permute.xlu1 %1539  ;;  %v4278_v12 = vpop.permute.xlu0 %1529 }
  0x9a   : > { %v4282_v13 = vmul.f32 %v4272_v10, %v4276_v11  ;;  %v4286_v14 = vmul.f32 %v4272_v10, %v4278_v12 }
  0x9d   : > { %v4288_v15 = vpop.permute.xlu1 %1544  ;;  %v4290_v16 = vpop.permute.xlu0 %1534 }
  0x9e   : > { %v4294_v17 = vmul.f32 %v4272_v10, %v4288_v15  ;;  %v4308_v20 = vmul.f32 %v4272_v10, %v4290_v16 }
  0xa1   : > { %v4310_v21 = vpop.permute.xlu1 %1554  ;;  %v4312_v22 = vpop.permute.xlu0 %1549 }
  0xa2   : > { %v4322_v25 = vmul.f32 %v4272_v10, %v4310_v21  ;;  %v4326_v26 = vmul.f32 %v4272_v10, %v4312_v22 }
  0xa5   : > { %v1565_v27 = vpop.permute.xlu1 %1564  ;;  %v1560_v28 = vpop.permute.xlu0 %1559 }
  0xa6   : > { %v4329_v29 = vmul.f32 %v4315_v23, %v1565_v27  ;;  %v4332_v30 = vmul.f32 %v4318_v24, %v1565_v27  ;;  %v4335_v31 = vmul.f32 %v4272_v10, %v1565_v27  ;;  %v4338_v32 = vmul.f32 %v4315_v23, %v1560_v28 }
  0xa7   : > { %v4341_v33 = vmul.f32 %v4318_v24, %v1560_v28  ;;  %v4344_v34 = vmul.f32 %v4272_v10, %v1560_v28 }
  0xa9   : > { %v1575_v35 = vpop.permute.xlu1 %1574  ;;  %v1570_v36 = vpop.permute.xlu0 %1569 }
  0xaa   : > { %v4347_v37 = vmul.f32 %v4315_v23, %v1575_v35  ;;  %v4350_v38 = vmul.f32 %v4318_v24, %v1575_v35  ;;  %v4353_v39 = vmul.f32 %v4272_v10, %v1575_v35  ;;  %v4356_v40 = vmul.f32 %v4315_v23, %v1570_v36 }
  0xab   : > { %v4359_v41 = vmul.f32 %v4318_v24, %v1570_v36  ;;  %v4362_v42 = vmul.f32 %v4272_v10, %v1570_v36 }
  0xad   : > { %v1585_v43 = vpop.permute.xlu1 %1584  ;;  %v1580_v44 = vpop.permute.xlu0 %1579 }
  0xae   : > { %v4365_v45 = vmul.f32 %v4315_v23, %v1585_v43  ;;  %v4368_v46 = vmul.f32 %v4318_v24, %v1585_v43  ;;  %v4371_v47 = vmul.f32 %v4272_v10, %v1585_v43  ;;  %v4374_v48 = vmul.f32 %v4315_v23, %v1580_v44 }
  0xaf   : > { %v4377_v49 = vmul.f32 %v4318_v24, %v1580_v44  ;;  %v4380_v50 = vmul.f32 %v4272_v10, %v1580_v44 }
  0xb1   : > { %v1595_v51 = vpop.permute.xlu1 %1594  ;;  %v1590_v52 = vpop.permute.xlu0 %1589 }
  0xb2   : > { %v4383_v53 = vmul.f32 %v4315_v23, %v1595_v51  ;;  %v4386_v54 = vmul.f32 %v4318_v24, %v1595_v51  ;;  %v4389_v55 = vmul.f32 %v4272_v10, %v1595_v51  ;;  %v4392_v56 = vmul.f32 %v4315_v23, %v1590_v52 }
  0xb3   : > { %v4395_v57 = vmul.f32 %v4318_v24, %v1590_v52  ;;  %v4398_v58 = vmul.f32 %v4272_v10, %v1590_v52 }
  0xb4   : > { %5993 = vst [vmem:[#allocation8_spill] sm:$0xff] %v4383_v53  ;;  %5994 = vst [vmem:[#allocation9_spill] sm:$0xff] %v4386_v54 }
  0xb5   : > { %5995 = vst [vmem:[#allocation10_spill] sm:$0xff] %v4389_v55  ;;  %5996 = vst [vmem:[#allocation11_spill] sm:$0xff] %v4392_v56  ;;  %v1605_v59 = vpop.permute.xlu1 %1604  ;;  %v1600_v60 = vpop.permute.xlu0 %1599  ;;  %v4603_v55 = vmul.f32 %v4318_v24, %v4312_v22 }
  0xb6   : > { %5997 = vst [vmem:[#allocation12_spill] sm:$0xff] %v4395_v57  ;;  %5998 = vst [vmem:[#allocation13_spill] sm:$0xff] %v4398_v58  ;;  %v4401_v61 = vmul.f32 %v4315_v23, %v1605_v59  ;;  %v4404_v62 = vmul.f32 %v4318_v24, %v1605_v59  ;;  %v4407_v63 = vmul.f32 %v4272_v10, %v1605_v59 }
  0xb7   : > { %v4410_v2 = vmul.f32 %v4315_v23, %v1600_v60  ;;  %v4413_v1 = vmul.f32 %v4318_v24, %v1600_v60  ;;  %v4416_v3 = vmul.f32 %v4272_v10, %v1600_v60 }
  0xb8   : > { %5999 = vst [vmem:[#allocation14_spill] sm:$0xff] %v4401_v61  ;;  %6000 = vst [vmem:[#allocation15_spill] sm:$0xff] %v4404_v62 }
  0xb9   : > { %6001 = vst [vmem:[#allocation16_spill] sm:$0xff] %v4407_v63  ;;  %6002 = vst [vmem:[#allocation17_spill] sm:$0xff] %v4410_v2  ;;  %v1615_v0 = vpop.permute.xlu1 %1614  ;;  %v1610_v4 = vpop.permute.xlu0 %1609  ;;  %v1702_v2 = vmul.f32 %v4315_v23, %v4290_v16 }
  0xba   : > { %6003 = vst [vmem:[#allocation18_spill] sm:$0xff] %v4413_v1  ;;  %6004 = vst [vmem:[#allocation19_spill] sm:$0xff] %v4416_v3  ;;  %v4419_v5 = vmul.f32 %v4315_v23, %v1615_v0  ;;  %v4422_v6 = vmul.f32 %v4318_v24, %v1615_v0  ;;  %v4425_v8 = vmul.f32 %v4272_v10, %v1615_v0 }
  0xbb   : > { %v4428_v27 = vmul.f32 %v4315_v23, %v1610_v4  ;;  %v4431_v28 = vmul.f32 %v4318_v24, %v1610_v4  ;;  %v4434_v35 = vmul.f32 %v4272_v10, %v1610_v4  ;;  %v1709_v1 = vmul.f32 %v4318_v24, %v4288_v15 }
  0xbc   : > { %6005 = vst [vmem:[#allocation20_spill] sm:$0xff] %v4419_v5  ;;  %6006 = vst [vmem:[#allocation21_spill] sm:$0xff] %v4422_v6  ;;  %v330_v5 = vsub.s32 0, %v4259_v7 }
  0xbd   : > { %6007 = vst [vmem:[#allocation22_spill] sm:$0xff] %v4425_v8  ;;  %6008 = vst [vmem:[#allocation23_spill] sm:$0xff] %v4428_v27  ;;  %v1625_v36 = vpop.permute.xlu1 %1624  ;;  %v1620_v43 = vpop.permute.xlu0 %1619 }
  0xbe   : > { %6009 = vst [vmem:[#allocation24_spill] sm:$0xff] %v4431_v28  ;;  %6010 = vst [vmem:[#allocation25_spill] sm:$0xff] %v4434_v35  ;;  %v4437_v44 = vmul.f32 %v4315_v23, %v1625_v36  ;;  %v4440_v51 = vmul.f32 %v4318_v24, %v1625_v36  ;;  %v4443_v52 = vmul.f32 %v4272_v10, %v1625_v36  ;;  %v4520_v28 = vsub.s32 2, %v4259_v7 }
  0xbf   : > { %v4446_v59 = vmul.f32 %v4315_v23, %v1620_v43  ;;  %v4449_v60 = vmul.f32 %v4318_v24, %v1620_v43  ;;  %v4452_v0 = vmul.f32 %v4272_v10, %v1620_v43 }
  0xc0   : > { %6011 = vst [vmem:[#allocation26_spill] sm:$0xff] %v4437_v44  ;;  %6012 = vst [vmem:[#allocation27_spill] sm:$0xff] %v4440_v51 }
  0xc1   : > { %6013 = vst [vmem:[#allocation28_spill] sm:$0xff] %v4443_v52  ;;  %6014 = vst [vmem:[#allocation29_spill] sm:$0xff] %v4446_v59  ;;  %v1635_v4 = vpop.permute.xlu1 %1634  ;;  %v1630_v8 = vpop.permute.xlu0 %1629 }
  0xc2   : > { %6015 = vst [vmem:[#allocation30_spill] sm:$0xff] %v4449_v60  ;;  %6016 = vst [vmem:[#allocation31_spill] sm:$0xff] %v4452_v0  ;;  %v4455_v6 = vmul.f32 %v4315_v23, %v1635_v4  ;;  %v4458_v44 = vmul.f32 %v4318_v24, %v1635_v4  ;;  %v4461_v36 = vmul.f32 %v4272_v10, %v1635_v4 }
  0xc3   : > { %v4464_v52 = vmul.f32 %v4315_v23, %v1630_v8  ;;  %v4467_v51 = vmul.f32 %v4318_v24, %v1630_v8  ;;  %v4470_v43 = vmul.f32 %v4272_v10, %v1630_v8 }
  0xc4   : > { %6017 = vst [vmem:[#allocation32_spill] sm:$0xff] %v4455_v6  ;;  %6018 = vst [vmem:[#allocation33_spill] sm:$0xff] %v4458_v44 }
  0xc5   : > { %6019 = vst [vmem:[#allocation34_spill] sm:$0xff] %v4461_v36  ;;  %6020 = vst [vmem:[#allocation35_spill] sm:$0xff] %v4464_v52  ;;  %v1645_v0 = vpop.permute.xlu1 %1644  ;;  %v1640_v60 = vpop.permute.xlu0 %1639 }
  0xc6   : > { %6021 = vst [vmem:[#allocation36_spill] sm:$0xff] %v4467_v51  ;;  %6022 = vst [vmem:[#allocation37_spill] sm:$0xff] %v4470_v43  ;;  %v4473_v59 = vmul.f32 %v4315_v23, %v1645_v0  ;;  %v4476_v6 = vmul.f32 %v4318_v24, %v1645_v0  ;;  %v4479_v4 = vmul.f32 %v4272_v10, %v1645_v0 }
  0xc7   : > { %v4482_v36 = vmul.f32 %v4315_v23, %v1640_v60  ;;  %v4485_v44 = vmul.f32 %v4318_v24, %v1640_v60  ;;  %v4488_v8 = vmul.f32 %v4272_v10, %v1640_v60 }
  0xc8   : > { %6023 = vst [vmem:[#allocation38_spill] sm:$0xff] %v4473_v59  ;;  %6024 = vst [vmem:[#allocation39_spill] sm:$0xff] %v4476_v6 }
  0xc9   : > { %6025 = vst [vmem:[#allocation40_spill] sm:$0xff] %v4479_v4  ;;  %6026 = vst [vmem:[#allocation41_spill] sm:$0xff] %v4482_v36  ;;  %v1655_v43 = vpop.permute.xlu1 %1654  ;;  %v1650_v51 = vpop.permute.xlu0 %1649 }
  0xca   : > { %6027 = vst [vmem:[#allocation42_spill] sm:$0xff] %v4485_v44  ;;  %6028 = vst [vmem:[#allocation43_spill] sm:$0xff] %v4488_v8  ;;  %v4491_v52 = vmul.f32 %v4272_v10, %v1655_v43  ;;  %v4494_v59 = vmul.f32 %v4272_v10, %v1650_v51  ;;  %v4609_v54 = vmul.f32 %v4315_v23, %v1655_v43 }
  0xcb   : > { %v4612_v53 = vmul.f32 %v4318_v24, %v1655_v43 }
  0xcc   : > { %6029 = vst [vmem:[#allocation44_spill] sm:$0xff] %v4491_v52  ;;  %6030 = vst [vmem:[#allocation45_spill] sm:$0xff] %v4494_v59  ;;  %v1925_v59 = vsub.s32 4, %v4259_v7 }
  0xcd   : > { %v1665_v6 = vpop.permute.xlu1 %1664  ;;  %v1660_v0 = vpop.permute.xlu0 %1659  ;;  %6047 = vst [vmem:[#allocation62_spill] sm:$0xff] %v4609_v54  ;;  %6048 = vst [vmem:[#allocation63_spill] sm:$0xff] %v4612_v53 }
  0xce   : > { %v4497_v4 = vmul.f32 %v4272_v10, %v1665_v6  ;;  %v4500_v36 = vmul.f32 %v4272_v10, %v1660_v0  ;;  %v4634_v53 = vmul.f32 %v4318_v24, %v1660_v0 }
  0xd0   : > { %6031 = vst [vmem:[#allocation46_spill] sm:$0xff] %v4497_v4  ;;  %6032 = vst [vmem:[#allocation47_spill] sm:$0xff] %v4500_v36  ;;  %v4517_v36 = vsub.s32 1, %v4259_v7  ;;  %v4541_v7 = vrot.slane %v4269_v9, %v1925_v59 }
  0xd1   : > { %v4502_v44 = vpop.permute.xlu1 %1674  ;;  %v4504_v60 = vpop.permute.xlu0 %1669  ;;  %6053 = vst [vmem:[#allocation68_spill] sm:$0xff] %v4634_v53 }
  0xd2   : > { %v4508_v8 = vmul.f32 %v4272_v10, %v4502_v44  ;;  %v4512_v52 = vmul.f32 %v4272_v10, %v4504_v60  ;;  %v4654_v54 = vmul.f32 %v4315_v23, %v4502_v44 }
  0xd4   : > { %6033 = vst [vmem:[#allocation48_spill] sm:$0xff] %v4508_v8  ;;  %6034 = vst [vmem:[#allocation49_spill] sm:$0xff] %v4512_v52 }
  0xd5   : > { %v1685_v4 = vpop.permute.xlu1 %1684  ;;  %v1680_v35 = vpop.permute.xlu0 %1679  ;;  %6057 = vst [vmem:[#allocation72_spill] sm:$0xff] %v4654_v54 }
  0xd6   : > { %v4523_v27 = vmul.f32 %v4315_v23, %v1685_v4  ;;  %v4526_v8 = vmul.f32 %v4318_v24, %v1685_v4  ;;  %v4529_v52 = vmul.f32 %v4272_v10, %v1685_v4  ;;  %v4532_v63 = vmul.f32 %v4315_v23, %v1680_v35 }
  0xd7   : > { %v4535_v62 = vmul.f32 %v4318_v24, %v1680_v35  ;;  %v4538_v61 = vmul.f32 %v4272_v10, %v1680_v35  ;;  %v4550_v4 = vrot.slane %v4299_v18, %v330_v5  ;;  %v4558_v10 = vrot.slane %v4299_v18, %v4520_v28 }
  0xd8   : > { %6035 = vst [vmem:[#allocation50_spill] sm:$0xff] %v4523_v27  ;;  %6036 = vst [vmem:[#allocation51_spill] sm:$0xff] %v4526_v8  ;;  %v4544_v27 = vrot.slane %v4299_v18, %v1925_v59  ;;  %v4547_v8 = vrot.slane %v4304_v19, %v1925_v59  ;;  %v4561_v35 = vrot.slane %v4304_v19, %v330_v5 }
  0xd9   : > { %6037 = vst [vmem:[#allocation52_spill] sm:$0xff] %v4529_v52  ;;  %6038 = vst [vmem:[#allocation53_spill] sm:$0xff] %v4532_v63  ;;  %v4554_v52 = vrot.slane %v4299_v18, %v4517_v36  ;;  %v1705_v59 = vmul.f32 %v4315_v23, %v4276_v11  ;;  %v1699_v63 = vmul.f32 %v4315_v23, %v4278_v12 }
  0xda   : > { %6039 = vst [vmem:[#allocation54_spill] sm:$0xff] %v4535_v62  ;;  %6040 = vst [vmem:[#allocation55_spill] sm:$0xff] %v4538_v61  ;;  %v4565_v61 = vrot.slane %v4304_v19, %v4517_v36  ;;  %v1706_v62 = vmul.f32 %v4318_v24, %v4276_v11  ;;  %v1797_v3 = vpop.permute.xlu0 %1796  ;;  %v4575_v18 = vrot.slane %v4304_v19, %v4520_v28 }
  0xdb   : > { %6041 = vst [vmem:[#allocation56_spill] sm:$0xff] %v4554_v52  ;;  %6042 = vst [vmem:[#allocation57_spill] sm:$0xff] %v4558_v10  ;;  %v1801_v52 = vpop.permute.xlu1 %1800  ;;  %v1700_v10 = vmul.f32 %v4318_v24, %v4278_v12  ;;  %v4590_v19 = vmul.f32 %v4315_v23, %v4310_v21  ;;  %v1937_v12 = vmul.f32 %v4541_v7, %v1797_v3 }
  0xdc   : > { %6043 = vst [vmem:[#allocation58_spill] sm:$0xff] %v4561_v35  ;;  %6044 = vst [vmem:[#allocation59_spill] sm:$0xff] %v4565_v61  ;;  %v1708_v61 = vmul.f32 %v4315_v23, %v4288_v15  ;;  %v1940_v11 = vmul.f32 %v4541_v7, %v1801_v52  ;;  %v1703_v35 = vmul.f32 %v4318_v24, %v4290_v16 }
  0xdd   : > { %6045 = vst [vmem:[#allocation60_spill] sm:$0xff] %v4575_v18  ;;  %v4595_v18 = vmul.f32 %v4318_v24, %v4310_v21  ;;  %v4599_v15 = vmul.f32 %v4315_v23, %v4312_v22  ;;  %v4615_v21 = vmul.f32 %v4315_v23, %v1650_v51  ;;  %v4618_v58 = vadd.f32 %v1937_v12, %v4286_v14 }
  0xde   : > { %v4606_v16 = vadd.f32 %v1940_v11, %v4308_v20  ;;  %v1809_v56 = vpop.permute.xlu0 %1808  ;;  %v4621_v22 = vmul.f32 %v4318_v24, %v1650_v51  ;;  %v4624_v20 = vmul.f32 %v4315_v23, %v1665_v6  ;;  %v4627_v11 = vmul.f32 %v4318_v24, %v1665_v6 }
  0xdf   : > { %6049 = vst [vmem:[#allocation64_spill] sm:$0xff] %v4618_v58  ;;  %v1805_v57 = vpop.permute.xlu1 %1804  ;;  %v1946_v14 = vmul.f32 %v4541_v7, %v1809_v56  ;;  %v4638_v12 = vrot.slane %v4269_v9, %v330_v5  ;;  %v1938_v51 = vmul.f32 %v4544_v27, %v1801_v52  ;;  %v1939_v58 = vmul.f32 %v4547_v8, %v1801_v52 }
  0xe0   : > { %6046 = vst [vmem:[#allocation61_spill] sm:$0xff] %v4606_v16  ;;  %6050 = vst [vmem:[#allocation65_spill] sm:$0xff] %v4624_v20  ;;  %v1943_v43 = vmul.f32 %v4541_v7, %v1805_v57  ;;  %v4631_v16 = vmul.f32 %v4315_v23, %v1660_v0  ;;  %v1935_v6 = vmul.f32 %v4544_v27, %v1797_v3 }
  0xe1   : > { %6051 = vst [vmem:[#allocation66_spill] sm:$0xff] %v4627_v11  ;;  %6054 = vst [vmem:[#allocation69_spill] sm:$0xff] %v4638_v12  ;;  %v1936_v20 = vmul.f32 %v4547_v8, %v1797_v3  ;;  %v1942_v0 = vmul.f32 %v4547_v8, %v1805_v57  ;;  %v4650_v53 = vadd.f32 %v1946_v14, %v4294_v17 }
  0xe2   : > { %6052 = vst [vmem:[#allocation67_spill] sm:$0xff] %v4631_v16  ;;  %v4644_v11 = vadd.f32 %v1943_v43, %v4282_v13  ;;  %v1941_v16 = vmul.f32 %v4544_v27, %v1805_v57  ;;  %v1817_v12 = vpop.permute.xlu0 %1816  ;;  %v4658_v52 = vmul.f32 %v4318_v24, %v4502_v44  ;;  %v4662_v13 = vmul.f32 %v4315_v23, %v4504_v60 }
  0xe3   : > { %6056 = vst [vmem:[#allocation71_spill] sm:$0xff] %v4650_v53  ;;  %v1813_v5 = vpop.permute.xlu1 %1812  ;;  %v4667_v17 = vmul.f32 %v4318_v24, %v4504_v60  ;;  %v1944_v57 = vmul.f32 %v4544_v27, %v1809_v56  ;;  %v1945_v43 = vmul.f32 %v4547_v8, %v1809_v56  ;;  %v1952_v14 = vmul.f32 %v4541_v7, %v1817_v12 }
  0xe4   : > { %6055 = vst [vmem:[#allocation70_spill] sm:$0xff] %v4644_v11  ;;  %6058 = vst [vmem:[#allocation73_spill] sm:$0xff] %v4658_v52  ;;  %v1949_v3 = vmul.f32 %v4541_v7, %v1813_v5  ;;  %v4672_v11 = vadd.f32 %v1938_v51, %v1702_v2  ;;  %v4674_v44 = vadd.f32 %v1939_v58, %v1703_v35 }
  0xe5   : > { %6059 = vst [vmem:[#allocation74_spill] sm:$0xff] %v4667_v17  ;;  %v4676_v53 = vadd.f32 %v1935_v6, %v1699_v63  ;;  %v4681_v52 = vadd.f32 %v1936_v20, %v1700_v10  ;;  %v4683_v54 = vadd.f32 %v1941_v16, %v1705_v59  ;;  %v4685_v24 = vadd.f32 %v1942_v0, %v1706_v62 }
  0xe6   : > { %v4679_v23 = vadd.f32 %v1949_v3, %v4326_v26  ;;  %v4688_v60 = vadd.f32 %v1952_v14, %v4322_v25  ;;  %v1825_v17 = vpop.permute.xlu0 %1824  ;;  %v4694_v35 = vadd.f32 %v1944_v57, %v1708_v61  ;;  %v4696_v10 = vadd.f32 %v1945_v43, %v1709_v1 }
  0xe7   : > { %v1821_v56 = vpop.permute.xlu1 %1820  ;;  %v1956_v26 = vmul.f32 %v4544_v27, %v1825_v17  ;;  %v1957_v62 = vmul.f32 %v4547_v8, %v1825_v17  ;;  %v1958_v59 = vmul.f32 %v4541_v7, %v1825_v17  ;;  %v1947_v61 = vmul.f32 %v4544_v27, %v1813_v5 }
  0xe8   : > { %6060 = vst [vmem:[#allocation75_spill] sm:$0xff] %v4679_v23  ;;  %6061 = vst [vmem:[#allocation76_spill] sm:$0xff] %v4688_v60  ;;  %v1953_v2 = vmul.f32 %v4544_v27, %v1821_v56  ;;  %v1954_v58 = vmul.f32 %v4547_v8, %v1821_v56  ;;  %v1955_v63 = vmul.f32 %v4541_v7, %v1821_v56 }
  0xe9   : > { %v4710_v51 = vadd.f32 %v1956_v26, %v4329_v29  ;;  %v1948_v1 = vmul.f32 %v4547_v8, %v1813_v5  ;;  %v4715_v6 = vadd.f32 %v1957_v62, %v4332_v30  ;;  %v1950_v57 = vmul.f32 %v4544_v27, %v1817_v12 }
  0xea   : > { %v4701_v25 = vadd.f32 %v1953_v2, %v4338_v32  ;;  %v4704_v16 = vadd.f32 %v1954_v58, %v4341_v33  ;;  %v4707_v20 = vadd.f32 %v1955_v63, %v4344_v34  ;;  %v4718_v32 = vadd.f32 %v1958_v59, %v4335_v31  ;;  %v1833_v33 = vpop.permute.xlu0 %1832 }
  0xeb   : > { %6065 = vst [vmem:[#allocation80_spill] sm:$0xff] %v4710_v51  ;;  %6066 = vst [vmem:[#allocation81_spill] sm:$0xff] %v4715_v6  ;;  %v1829_v0 = vpop.permute.xlu1 %1828  ;;  %v1962_v29 = vmul.f32 %v4544_v27, %v1833_v33  ;;  %v1951_v5 = vmul.f32 %v4547_v8, %v1817_v12  ;;  %v1963_v30 = vmul.f32 %v4547_v8, %v1833_v33  ;;  %v6137_v6 = vld [vmem:[#allocation57_spill] sm:$0xff] }
  0xec   : > { %6062 = vst [vmem:[#allocation77_spill] sm:$0xff] %v4701_v25  ;;  %6063 = vst [vmem:[#allocation78_spill] sm:$0xff] %v4704_v16  ;;  %v1959_v3 = vmul.f32 %v4544_v27, %v1829_v0  ;;  %v1960_v34 = vmul.f32 %v4547_v8, %v1829_v0  ;;  %v1961_v17 = vmul.f32 %v4541_v7, %v1829_v0 }
  0xed   : > { %6064 = vst [vmem:[#allocation79_spill] sm:$0xff] %v4707_v20  ;;  %6067 = vst [vmem:[#allocation82_spill] sm:$0xff] %v4718_v32  ;;  %v1964_v43 = vmul.f32 %v4541_v7, %v1833_v33  ;;  %v4741_v2 = vadd.f32 %v1962_v29, %v4347_v37  ;;  %v4744_v12 = vadd.f32 %v1947_v61, %v4599_v15 }
  0xee   : > { %v4732_v31 = vadd.f32 %v1959_v3, %v4356_v40  ;;  %v4735_v14 = vadd.f32 %v1960_v34, %v4359_v41  ;;  %v4738_v56 = vadd.f32 %v1961_v17, %v4362_v42  ;;  %v4747_v58 = vadd.f32 %v1948_v1, %v4603_v55  ;;  %v1841_v26 = vpop.permute.xlu0 %1840 }
  0xef   : > { %6071 = vst [vmem:[#allocation86_spill] sm:$0xff] %v4741_v2  ;;  %v4750_v63 = vadd.f32 %v1963_v30, %v4350_v38  ;;  %v4753_v40 = vadd.f32 %v1964_v43, %v4353_v39  ;;  %v1837_v41 = vpop.permute.xlu1 %1836  ;;  %v1968_v15 = vmul.f32 %v4544_v27, %v1841_v26  ;;  %v4761_v55 = vadd.f32 %v1950_v57, %v4590_v19  ;;  %v6082_v43 = vld [vmem:[#allocation11_spill] sm:$0xff]  ;;  %v6134_v2 = vld [vmem:[#allocation36_spill] sm:$0xff] }
  0xf0   : > { %6068 = vst [vmem:[#allocation83_spill] sm:$0xff] %v4732_v31  ;;  %6069 = vst [vmem:[#allocation84_spill] sm:$0xff] %v4735_v14  ;;  %v1965_v42 = vmul.f32 %v4544_v27, %v1837_v41  ;;  %v1966_v62 = vmul.f32 %v4547_v8, %v1837_v41  ;;  %v1967_v37 = vmul.f32 %v4541_v7, %v1837_v41 }
  0xf1   : > { %6070 = vst [vmem:[#allocation85_spill] sm:$0xff] %v4738_v56  ;;  %6072 = vst [vmem:[#allocation87_spill] sm:$0xff] %v4750_v63  ;;  %v4764_v38 = vadd.f32 %v1951_v5, %v4595_v18  ;;  %v1969_v39 = vmul.f32 %v4547_v8, %v1841_v26  ;;  %v1970_v59 = vmul.f32 %v4541_v7, %v1841_v26  ;;  %v6084_v26 = vld [vmem:[#allocation12_spill] sm:$0xff]  ;;  %v6099_v56 = vld [vmem:[#allocation19_spill] sm:$0xff] }
  0xf2   : > { %6073 = vst [vmem:[#allocation88_spill] sm:$0xff] %v4753_v40  ;;  %v4769_v61 = vadd.f32 %v1965_v42, %v4374_v48  ;;  %v4772_v1 = vadd.f32 %v1966_v62, %v4377_v49  ;;  %v4775_v0 = vadd.f32 %v1967_v37, %v4380_v50  ;;  %v4778_v33 = vadd.f32 %v1968_v15, %v4365_v45  ;;  %v1849_v34 = vpop.permute.xlu0 %1848  ;;  %v6086_v62 = vld [vmem:[#allocation13_spill] sm:$0xff]  ;;  %v6088_v15 = vld [vmem:[#allocation8_spill] sm:$0xff] }
  0xf3   : > { %v4781_v19 = vadd.f32 %v1969_v39, %v4368_v46  ;;  %v4784_v18 = vadd.f32 %v1970_v59, %v4371_v47  ;;  %v1845_v3 = vpop.permute.xlu1 %1844  ;;  %v4788_v48 = vrot.slane %v4269_v9, %v4517_v36  ;;  %v4792_v49 = vrot.slane %v4269_v9, %v4520_v28  ;;  %v503_v47 = vpop.f32.mrb[0].mxu0  ;;  %v6090_v59 = vld [vmem:[#allocation9_spill] sm:$0xff] }
  0xf4   : > { %6074 = vst [vmem:[#allocation89_spill] sm:$0xff] %v4769_v61  ;;  %6075 = vst [vmem:[#allocation90_spill] sm:$0xff] %v4772_v1  ;;  %v1971_v50 = vmul.f32 %v4544_v27, %v1845_v3  ;;  %v1972_v45 = vmul.f32 %v4547_v8, %v1845_v3  ;;  %v1973_v46 = vmul.f32 %v4541_v7, %v1845_v3  ;;  %v647_v29 = vpop.f32.mrb[0].mxu1  ;;  %v505_v28 = vpop.f32.mrb[1].mxu0  ;;  %v6123_v1 = vld [vmem:[#allocation31_spill] sm:$0xff]  ;;  %v6131_v61 = vld [vmem:[#allocation56_spill] sm:$0xff] }
  0xf5   : > { %6076 = vst [vmem:[#allocation91_spill] sm:$0xff] %v4775_v0  ;;  %6077 = vst [vmem:[#allocation92_spill] sm:$0xff] %v4778_v33  ;;  %v1974_v17 = vmul.f32 %v4544_v27, %v1849_v34  ;;  %v1975_v57 = vmul.f32 %v4547_v8, %v1849_v34  ;;  %v1976_v36 = vmul.f32 %v4541_v7, %v1849_v34  ;;  %v649_v30 = vpop.f32.mrb[1].mxu1  ;;  %v6092_v34 = vld [vmem:[#allocation10_spill] sm:$0xff] }
  0xf6   : > { %6078 = vst [vmem:[#allocation93_spill] sm:$0xff] %v4781_v19  ;;  %6079 = vst [vmem:[#allocation94_spill] sm:$0xff] %v4784_v18  ;;  %v504_v5 = vadd.f32 %v503_v47, %v4550_v4  ;;  %v648_v9 = vadd.f32 %v647_v29, %v4550_v4  ;;  %v4803_v41 = vadd.f32 %v1971_v50, %v6082_v43  ;;  %v6097_v18 = vld [vmem:[#allocation18_spill] sm:$0xff] }
  0xf7   : > { %6080 = vst [vmem:[#allocation95_spill] sm:$0xff] %v4788_v48  ;;  %6081 = vst [vmem:[#allocation96_spill] sm:$0xff] %v4792_v49  ;;  %v4806_v42 = vadd.f32 %v1972_v45, %v6084_v26  ;;  %v4809_v37 = vadd.f32 %v1973_v46, %v6086_v62  ;;  %v4812_v39 = vadd.f32 %v1974_v17, %v6088_v15  ;;  %v1853_v45 = vpop.permute.xlu1 %1852  ;;  %v1857_v46 = vpop.permute.xlu0 %1856  ;;  %v6094_v17 = vld [vmem:[#allocation58_spill] sm:$0xff] }
  0xf8   : > { %6083 = vst [vmem:[#allocation11_spill] sm:$0xff] %v4803_v41  ;;  %v4815_v3 = vadd.f32 %v1975_v57, %v6090_v59  ;;  %v4818_v47 = vadd.f32 %v1976_v36, %v6092_v34  ;;  %v919_v29 = vsub.f32 0.0, %v504_v5  ;;  %2535 = vst [vmem:[%s4822_s24] sm:$0xff] %v504_v5  ;;  %v991_v50 = vsub.f32 0.0, %v648_v9  ;;  %v509_v62 = vpop.f32.mrb[2].mxu0  ;;  %v653_v15 = vpop.f32.mrb[2].mxu1  ;;  %v6101_v41 = vld [vmem:[#allocation14_spill] sm:$0xff] }
  0xf9   : > { %6085 = vst [vmem:[#allocation12_spill] sm:$0xff] %v4806_v42  ;;  %6087 = vst [vmem:[#allocation13_spill] sm:$0xff] %v4809_v37  ;;  %v506_v43 = vadd.f32 %v505_v28, %v6094_v17  ;;  %v650_v57 = vadd.f32 %v649_v30, %v6094_v17  ;;  %v1977_v36 = vmul.f32 %v4544_v27, %v1853_v45  ;;  %v511_v37 = vpop.f32.mrb[3].mxu0  ;;  %v6095_v28 = vld [vmem:[#allocation17_spill] sm:$0xff] }
  0xfa   : > { %6089 = vst [vmem:[#allocation8_spill] sm:$0xff] %v4812_v39  ;;  %6091 = vst [vmem:[#allocation9_spill] sm:$0xff] %v4815_v3  ;;  %v1978_v26 = vmul.f32 %v4547_v8, %v1853_v45  ;;  %v1015_v59 = vmul.f32 1.442695, %v919_v29  ;;  %v1159_v34 = vmul.f32 1.442695, %v991_v50  ;;  %v1979_v5 = vmul.f32 %v4541_v7, %v1853_v45 }
  0xfb   : > { %6093 = vst [vmem:[#allocation10_spill] sm:$0xff] %v4818_v47  ;;  %2559 = vst [vmem:[%s4822_s24 + $0xc0] sm:$0xff] %v648_v9  ;;  %v1980_v9 = vmul.f32 %v4544_v27, %v1857_v46  ;;  %v655_v47 = vpop.f32.mrb[3].mxu1  ;;  %v920_v0 = vsub.f32 0.0, %v506_v43  ;;  %v992_v3 = vsub.f32 0.0, %v650_v57  ;;  %v4835_v30 = vadd.f32 %v1977_v36, %v6095_v28  ;;  %v1861_v42 = vpop.permute.xlu1 %1860 }
  0xfc   : > { %2971 = vst [vmem:[%s4822_s24 + $0x100] sm:$0xff] %v506_v43  ;;  %2995 = vst [vmem:[%s4822_s24 + $0x1c0] sm:$0xff] %v650_v57  ;;  %v4838_v39 = vadd.f32 %v1978_v26, %v6097_v18  ;;  %3261 = vpow2.f32 %v1015_v59  ;;  %v4841_v29 = vadd.f32 %v1979_v5, %v6099_v56  ;;  %v1981_v50 = vmul.f32 %v4547_v8, %v1857_v46  ;;  %v515_v36 = vpop.f32.mrb[4].mxu0  ;;  %v659_v28 = vpop.f32.mrb[4].mxu1  ;;  %v6103_v18 = vld [vmem:[#allocation15_spill] sm:$0xff]  ;;  %v6105_v56 = vld [vmem:[#allocation16_spill] sm:$0xff] }
  0xfd   : > { %6096 = vst [vmem:[#allocation58_spill] sm:$0xff] %v4835_v30  ;;  %v1982_v45 = vmul.f32 %v4541_v7, %v1857_v46  ;;  %3263 = vpow2.f32 %v1159_v34  ;;  %v1017_v40 = vmul.f32 1.442695, %v920_v0  ;;  %v1161_v43 = vmul.f32 1.442695, %v992_v3  ;;  %v517_v0 = vpop.f32.mrb[5].mxu0 }
  0xfe   : > { %6098 = vst [vmem:[#allocation17_spill] sm:$0xff] %v4838_v39  ;;  %6100 = vst [vmem:[#allocation18_spill] sm:$0xff] %v4841_v29  ;;  %v4846_v57 = vadd.f32 %v1980_v9, %v6101_v41  ;;  %v4849_v26 = vadd.f32 %v1981_v50, %v6103_v18  ;;  %v510_v5 = vadd.f32 %v509_v62, %v4550_v4  ;;  %v661_v3 = vpop.f32.mrb[5].mxu1  ;;  %v1865_v50 = vpop.permute.xlu0 %1864  ;;  %v6107_v29 = vld [vmem:[#allocation23_spill] sm:$0xff]  ;;  %v6111_v30 = vld [vmem:[#allocation25_spill] sm:$0xff] }
  0xff   : > { %v4852_v59 = vadd.f32 %v1982_v45, %v6105_v56  ;;  %v654_v46 = vadd.f32 %v653_v15, %v4550_v4  ;;  %3265 = vpow2.f32 %v1017_v40  ;;  %v512_v41 = vadd.f32 %v511_v37, %v6094_v17 }
 0x100   : > { %6102 = vst [vmem:[#allocation19_spill] sm:$0xff] %v4846_v57  ;;  %6104 = vst [vmem:[#allocation14_spill] sm:$0xff] %v4849_v26  ;;  %v656_v34 = vadd.f32 %v655_v47, %v6094_v17  ;;  %v1983_v9 = vmul.f32 %v4544_v27, %v1861_v42  ;;  %3267 = vpow2.f32 %v1161_v43  ;;  %v922_v18 = vsub.f32 0.0, %v510_v5  ;;  %v4868_v47 = vpop.f32.mrb[6].mxu0  ;;  %v4870_v26 = vpop.f32.mrb[6].mxu1 }
 0x101   : > { %6106 = vst [vmem:[#allocation15_spill] sm:$0xff] %v4852_v59  ;;  %2536 = vst [vmem:[%s4822_s24 + $0x8] sm:$0xff] %v510_v5  ;;  %v994_v45 = vsub.f32 0.0, %v654_v46  ;;  %v1984_v62 = vmul.f32 %v4547_v8, %v1861_v42  ;;  %v923_v56 = vsub.f32 0.0, %v512_v41  ;;  %v1985_v40 = vmul.f32 %v4541_v7, %v1861_v42  ;;  %v6109_v5 = vld [vmem:[#allocation24_spill] sm:$0xff]  ;;  %v4876_v39 = vpop.f32.mrb[7].mxu0 }
 0x102   : > { %2560 = vst [vmem:[%s4822_s24 + $0xc8] sm:$0xff] %v654_v46  ;;  %2972 = vst [vmem:[%s4822_s24 + $0x108] sm:$0xff] %v512_v41  ;;  %v995_v15 = vsub.f32 0.0, %v656_v34  ;;  %v4866_v37 = vadd.f32 %v1983_v9, %v6107_v29  ;;  %v1021_v43 = vmul.f32 1.442695, %v922_v18  ;;  %v1986_v46 = vmul.f32 %v4544_v27, %v1865_v50  ;;  %v4878_v41 = vpop.f32.mrb[7].mxu1 }
 0x103   : > { %2996 = vst [vmem:[%s4822_s24 + $0x1c8] sm:$0xff] %v656_v34  ;;  %v1165_v59 = vmul.f32 1.442695, %v994_v45  ;;  %v4873_v57 = vadd.f32 %v1984_v62, %v6109_v5  ;;  %v1023_v34 = vmul.f32 1.442695, %v923_v56  ;;  %v4881_v29 = vadd.f32 %v1985_v40, %v6111_v30  ;;  %v6113_v45 = vld [vmem:[#allocation20_spill] sm:$0xff] }
 0x104   : > { %6108 = vst [vmem:[#allocation16_spill] sm:$0xff] %v4866_v37  ;;  %v1167_v42 = vmul.f32 1.442695, %v995_v15  ;;  %v1987_v9 = vmul.f32 %v4547_v8, %v1865_v50  ;;  %3269 = vpow2.f32 %v1021_v43  ;;  %v1988_v18 = vmul.f32 %v4541_v7, %v1865_v50  ;;  %v6115_v37 = vld [vmem:[#allocation21_spill] sm:$0xff]  ;;  %v4894_v15 = vpop.f32.mrb[8].mxu0  ;;  %v4896_v40 = vpop.f32.mrb[8].mxu1 }
 0x105   : > { %6110 = vst [vmem:[#allocation23_spill] sm:$0xff] %v4873_v57  ;;  %6112 = vst [vmem:[#allocation24_spill] sm:$0xff] %v4881_v29  ;;  %v4886_v62 = vadd.f32 %v1986_v46, %v6113_v45  ;;  %v516_v5 = vadd.f32 %v515_v36, %v4550_v4  ;;  %v1869_v57 = vpop.permute.xlu1 %1868  ;;  %3271 = vpow2.f32 %v1165_v59  ;;  %v660_v56 = vadd.f32 %v659_v28, %v4550_v4  ;;  %v6117_v43 = vld [vmem:[#allocation22_spill] sm:$0xff]  ;;  %v4905_v28 = vpop.f32.mrb[9].mxu1 }
 0x106   : > { %v4890_v20 = vadd.f32 %v1987_v9, %v6115_v37  ;;  %v518_v30 = vadd.f32 %v517_v0, %v6094_v17  ;;  %v3262_v50 = vpop.eup %3261  ;;  %3273 = vpow2.f32 %v1023_v34  ;;  %v4899_v46 = vadd.f32 %v1988_v18, %v6117_v43  ;;  %v4903_v37 = vpop.f32.mrb[9].mxu0 }
 0x107   : > { %6114 = vst [vmem:[#allocation25_spill] sm:$0xff] %v4886_v62  ;;  %v925_v36 = vsub.f32 0.0, %v516_v5  ;;  %2537 = vst [vmem:[%s4822_s24 + $0x10] sm:$0xff] %v516_v5  ;;  %v662_v59 = vadd.f32 %v661_v3, %v6094_v17  ;;  %v3264_v0 = vpop.eup %3263  ;;  %v1207_v9 = vadd.f32 1.0, %v3262_v50  ;;  %3275 = vpow2.f32 %v1167_v42  ;;  %v1873_v5 = vpop.permute.xlu0 %1872 }
 0x108   : > { %6116 = vst [vmem:[#allocation20_spill] sm:$0xff] %v4890_v20  ;;  %6118 = vst [vmem:[#allocation21_spill] sm:$0xff] %v4899_v46  ;;  %v997_v45 = vsub.f32 0.0, %v660_v56  ;;  %v926_v20 = vsub.f32 0.0, %v518_v30  ;;  %v1279_v34 = vadd.f32 1.0, %v3264_v0  ;;  %v1989_v43 = vmul.f32 %v4544_v27, %v1869_v57  ;;  %v4912_v32 = vpop.f32.mrb[10].mxu0 }
 0x109   : > { %2561 = vst [vmem:[%s4822_s24 + $0xd0] sm:$0xff] %v660_v56  ;;  %2973 = vst [vmem:[%s4822_s24 + $0x110] sm:$0xff] %v518_v30  ;;  %v1027_v62 = vmul.f32 1.442695, %v925_v36  ;;  %v998_v18 = vsub.f32 0.0, %v662_v59  ;;  %v3266_v29 = vpop.eup %3265  ;;  %3277 = vrcp.f32 %v1207_v9  ;;  %v1990_v19 = vmul.f32 %v4547_v8, %v1869_v57  ;;  %v4914_v42 = vpop.f32.mrb[10].mxu1 }
 0x10a   : > { %2997 = vst [vmem:[%s4822_s24 + $0x1d0] sm:$0xff] %v662_v59  ;;  %v1171_v3 = vmul.f32 1.442695, %v997_v45  ;;  %v1029_v46 = vmul.f32 1.442695, %v926_v20  ;;  %v3268_v56 = vpop.eup %3267  ;;  %3279 = vrcp.f32 %v1279_v34  ;;  %v1208_v30 = vadd.f32 1.0, %v3266_v29 }
 0x10b   : > { %v1173_v50 = vmul.f32 1.442695, %v998_v18  ;;  %v1991_v36 = vmul.f32 %v4541_v7, %v1869_v57  ;;  %v4917_v59 = vpop.f32.mrb[11].mxu0  ;;  %v4919_v0 = vpop.f32.mrb[11].mxu1  ;;  %v1280_v33 = vadd.f32 1.0, %v3268_v56  ;;  %3281 = vpow2.f32 %v1027_v62  ;;  %v6119_v9 = vld [vmem:[#allocation29_spill] sm:$0xff] }
 0x10c   : > { %v4922_v20 = vadd.f32 %v1989_v43, %v6119_v9  ;;  %v6121_v45 = vld [vmem:[#allocation30_spill] sm:$0xff]  ;;  %3283 = vrcp.f32 %v1208_v30  ;;  %v1992_v29 = vmul.f32 %v4544_v27, %v1873_v5  ;;  %v1993_v57 = vmul.f32 %v4547_v8, %v1873_v5  ;;  %v4939_v43 = vpop.f32.mrb[12].mxu1 }
 0x10d   : > { %v4925_v23 = vadd.f32 %v1990_v19, %v6121_v45  ;;  %v4928_v60 = vadd.f32 %v1991_v36, %v6123_v1  ;;  %3285 = vrcp.f32 %v1280_v33  ;;  %v1994_v34 = vmul.f32 %v4541_v7, %v1873_v5  ;;  %v4937_v19 = vpop.f32.mrb[12].mxu0  ;;  %v6125_v56 = vld [vmem:[#allocation26_spill] sm:$0xff]  ;;  %v6127_v33 = vld [vmem:[#allocation27_spill] sm:$0xff] }
 0x10e   : > { %6120 = vst [vmem:[#allocation22_spill] sm:$0xff] %v4922_v20  ;;  %v522_v62 = vadd.f32 %v4868_v47, %v4550_v4  ;;  %v666_v18 = vadd.f32 %v4870_v26, %v4550_v4  ;;  %v3270_v1 = vpop.eup %3269  ;;  %3287 = vpow2.f32 %v1171_v3  ;;  %v4942_v30 = vadd.f32 %v1992_v29, %v6125_v56  ;;  %v4949_v5 = vpop.f32.mrb[13].mxu0 }
 0x10f   : > { %6122 = vst [vmem:[#allocation29_spill] sm:$0xff] %v4925_v23  ;;  %6124 = vst [vmem:[#allocation30_spill] sm:$0xff] %v4928_v60  ;;  %v4945_v36 = vadd.f32 %v1993_v57, %v6127_v33  ;;  %v524_v47 = vadd.f32 %v4876_v39, %v6094_v17  ;;  %v4951_v26 = vpop.f32.mrb[13].mxu1  ;;  %v3272_v9 = vpop.eup %3271  ;;  %v1210_v45 = vadd.f32 1.0, %v3270_v1  ;;  %3289 = vpow2.f32 %v1029_v46  ;;  %v6129_v23 = vld [vmem:[#allocation28_spill] sm:$0xff] }
 0x110   : > { %6126 = vst [vmem:[#allocation31_spill] sm:$0xff] %v4942_v30  ;;  %v4954_v20 = vadd.f32 %v1994_v34, %v6129_v23  ;;  %v928_v3 = vsub.f32 0.0, %v522_v62  ;;  %2538 = vst [vmem:[%s4822_s24 + $0x18] sm:$0xff] %v522_v62  ;;  %v3274_v29 = vpop.eup %3273  ;;  %v1282_v57 = vadd.f32 1.0, %v3272_v9  ;;  %3291 = vpow2.f32 %v1173_v50  ;;  %v1877_v39 = vpop.permute.xlu1 %1876 }
 0x111   : > { %6128 = vst [vmem:[#allocation26_spill] sm:$0xff] %v4945_v36  ;;  %2562 = vst [vmem:[%s4822_s24 + $0xd8] sm:$0xff] %v666_v18  ;;  %v1000_v56 = vsub.f32 0.0, %v666_v18  ;;  %v929_v33 = vsub.f32 0.0, %v524_v47  ;;  %v1881_v36 = vpop.permute.xlu0 %1880  ;;  %v3276_v30 = vpop.eup %3275  ;;  %3293 = vrcp.f32 %v1210_v45  ;;  %v1211_v60 = vadd.f32 1.0, %v3274_v29 }
 0x112   : > { %6130 = vst [vmem:[#allocation27_spill] sm:$0xff] %v4954_v20  ;;  %2974 = vst [vmem:[%s4822_s24 + $0x118] sm:$0xff] %v524_v47  ;;  %v1033_v1 = vmul.f32 1.442695, %v928_v3  ;;  %v668_v23 = vadd.f32 %v4878_v41, %v6094_v17  ;;  %v4961_v46 = vpop.f32.mrb[14].mxu0  ;;  %v4963_v34 = vpop.f32.mrb[14].mxu1  ;;  %3295 = vrcp.f32 %v1282_v57  ;;  %v1995_v45 = vmul.f32 %v4544_v27, %v1877_v39 }
 0x113   : > { %v1283_v62 = vadd.f32 1.0, %v3276_v30  ;;  %v1177_v50 = vmul.f32 1.442695, %v1000_v56  ;;  %v1035_v18 = vmul.f32 1.442695, %v929_v33  ;;  %v4965_v9 = vpop.f32.mrb[15].mxu0  ;;  %v3278_v47 = vpop.eup %3277  ;;  %3297 = vrcp.f32 %v1211_v60 }
 0x114   : > { %v1001_v20 = vsub.f32 0.0, %v668_v23  ;;  %2998 = vst [vmem:[%s4822_s24 + $0x1d8] sm:$0xff] %v668_v23  ;;  %v1996_v3 = vmul.f32 %v4547_v8, %v1877_v39  ;;  %v4970_v29 = vpop.f32.mrb[15].mxu1  ;;  %v4972_v41 = vpop.eup %3279  ;;  %v2139_v63 = vmul.f32 %v3278_v47, %v6131_v61  ;;  %v1997_v30 = vmul.f32 %v4541_v7, %v1877_v39  ;;  %v6132_v33 = vld [vmem:[#allocation35_spill] sm:$0xff]  ;;  %v6138_v39 = vld [vmem:[#allocation37_spill] sm:$0xff] }
 0x115   : > { %3299 = vrcp.f32 %v1283_v62  ;;  %v1998_v57 = vmul.f32 %v4544_v27, %v1881_v36  ;;  %v3282_v56 = vpop.eup %3281  ;;  %v4978_v23 = vadd.f32 %v1995_v45, %v6132_v33  ;;  %v4983_v31 = vpop.f32.mrb[16].mxu0  ;;  %v1999_v33 = vmul.f32 %v4547_v8, %v1881_v36 }
 0x116   : > { %3301 = vpow2.f32 %v1033_v1  ;;  %v1179_v60 = vmul.f32 1.442695, %v1001_v20  ;;  %v4981_v14 = vadd.f32 %v1996_v3, %v6134_v2  ;;  %v4985_v49 = vpop.f32.mrb[16].mxu1  ;;  %v3284_v48 = vpop.eup %3283  ;;  %v2247_v62 = vadd.f32 %v6137_v6, %v2139_v63  ;;  %v6142_v2 = vld [vmem:[#allocation59_spill] sm:$0xff] }
 0x117   : > { %6133 = vst [vmem:[#allocation28_spill] sm:$0xff] %v4978_v23  ;;  %6136 = vst [vmem:[#allocation35_spill] sm:$0xff] %v4985_v49  ;;  %v1213_v51 = vadd.f32 1.0, %v3282_v56  ;;  %3303 = vpow2.f32 %v1177_v50  ;;  %v4989_v16 = vadd.f32 %v1997_v30, %v6138_v39  ;;  %v4991_v1 = vpop.f32.mrb[17].mxu0  ;;  %v4993_v20 = vpop.f32.mrb[17].mxu1  ;;  %v2140_v3 = vmul.f32 %v3284_v48, %v6142_v2  ;;  %v6143_v50 = vld [vmem:[#allocation32_spill] sm:$0xff] }
 0x118   : > { %6135 = vst [vmem:[#allocation56_spill] sm:$0xff] %v4981_v14  ;;  %6140 = vst [vmem:[#allocation57_spill] sm:$0xff] %v4991_v1  ;;  %v4995_v45 = vpop.eup %3285  ;;  %3305 = vpow2.f32 %v1035_v18  ;;  %v2000_v14 = vmul.f32 %v4541_v7, %v1881_v36  ;;  %v2343_v63 = vmul.f32 %v3278_v47, %v2247_v62  ;;  %v5001_v30 = vadd.f32 %v1998_v57, %v6143_v50  ;;  %v6146_v18 = vld [vmem:[#allocation33_spill] sm:$0xff]  ;;  %v5009_v49 = vpop.f32.mrb[18].mxu0  ;;  %v6149_v62 = vld [vmem:[#allocation34_spill] sm:$0xff] }
 0x119   : > { %6139 = vst [vmem:[#allocation36_spill] sm:$0xff] %v4989_v16  ;;  %6141 = vst [vmem:[#allocation37_spill] sm:$0xff] %v4993_v20  ;;  %v3288_v23 = vpop.eup %3287  ;;  %3307 = vrcp.f32 %v1213_v51  ;;  %v528_v56 = vadd.f32 %v4894_v15, %v4550_v4  ;;  %v6145_v16 = vld [vmem:[#allocation60_spill] sm:$0xff]  ;;  %v5007_v1 = vadd.f32 %v1999_v33, %v6146_v18  ;;  %v5011_v36 = vpop.f32.mrb[18].mxu1 }
 0x11a   : > { %6144 = vst [vmem:[#allocation59_spill] sm:$0xff] %v5001_v30  ;;  %v3290_v39 = vpop.eup %3289  ;;  %v2248_v25 = vadd.f32 %v6145_v16, %v2140_v3  ;;  %v1285_v20 = vadd.f32 1.0, %v3288_v23  ;;  %3309 = vpow2.f32 %v1179_v60  ;;  %6148 = vst [vmem:[#allocation60_spill] sm:$0xff] %v5011_v36  ;;  %v2439_v47 = vadd.f32 %v2343_v63, %v4676_v53  ;;  %v5018_v3 = vpop.f32.mrb[19].mxu0 }
 0x11b   : > { %6147 = vst [vmem:[#allocation32_spill] sm:$0xff] %v5007_v1  ;;  %v3292_v51 = vpop.eup %3291  ;;  %v1214_v57 = vadd.f32 1.0, %v3290_v39  ;;  %v5015_v50 = vadd.f32 %v2000_v14, %v6149_v62  ;;  %v931_v15 = vsub.f32 0.0, %v528_v56  ;;  %2539 = vst [vmem:[%s4822_s24 + $0x20] sm:$0xff] %v528_v56  ;;  %v5020_v60 = vpop.f32.mrb[19].mxu1  ;;  %v672_v1 = vadd.f32 %v4896_v40, %v4550_v4 }
 0x11c   : > { %6151 = vst [vmem:[#allocation34_spill] sm:$0xff] %v5018_v3  ;;  %6152 = vst [vmem:[#allocation97_spill] sm:$0xff] %v5020_v60  ;;  %v3294_v23 = vpop.eup %3293  ;;  %v2344_v33 = vmul.f32 %v3284_v48, %v2248_v25  ;;  %3311 = vrcp.f32 %v1285_v20  ;;  %v1286_v18 = vadd.f32 1.0, %v3292_v51  ;;  %v530_v25 = vadd.f32 %v4903_v37, %v6094_v17  ;;  %v1885_v48 = vpop.permute.xlu1 %1884 }
 0x11d   : > { %6150 = vst [vmem:[#allocation33_spill] sm:$0xff] %v5015_v50  ;;  %v5024_v30 = vpop.eup %3295  ;;  %2567 = vst [vmem:[%s5028_s25] sm:$0xff] %v2439_v47  ;;  %v2142_v53 = vmul.f32 %v3294_v23, %v6131_v61  ;;  %3313 = vrcp.f32 %v1214_v57  ;;  %v1039_v14 = vmul.f32 1.442695, %v931_v15  ;;  %v5034_v20 = vpop.f32.mrb[20].mxu0  ;;  %v1003_v56 = vsub.f32 0.0, %v672_v1 }
 0x11e   : > { %6153 = vst [vmem:[#allocation98_spill] sm:$0xff] %v5034_v20  ;;  %v3298_v63 = vpop.eup %3297  ;;  %v2440_v40 = vadd.f32 %v2344_v33, %v4681_v52  ;;  %3315 = vrcp.f32 %v1286_v18  ;;  %2563 = vst [vmem:[%s4822_s24 + $0xe0] sm:$0xff] %v672_v1  ;;  %v674_v39 = vadd.f32 %v4905_v28, %v6094_v17  ;;  %v5040_v51 = vpop.f32.mrb[20].mxu1  ;;  %v932_v15 = vsub.f32 0.0, %v530_v25 }
 0x11f   : > { %6154 = vst [vmem:[#allocation99_spill] sm:$0xff] %v5040_v51  ;;  %v5042_v47 = vpop.f32.mrb[21].mxu0  ;;  %v5044_v37 = vpop.eup %3299  ;;  %v2250_v57 = vadd.f32 %v6137_v6, %v2142_v53  ;;  %v2143_v62 = vmul.f32 %v3298_v63, %v6142_v2  ;;  %3317 = vpow2.f32 %v1039_v14  ;;  %2975 = vst [vmem:[%s4822_s24 + $0x120] sm:$0xff] %v530_v25  ;;  %v1183_v1 = vmul.f32 1.442695, %v1003_v56 }
 0x120   : > { %6155 = vst [vmem:[#allocation100_spill] sm:$0xff] %v5042_v47  ;;  %v5049_v52 = vpop.f32.mrb[21].mxu1  ;;  %v3302_v33 = vpop.eup %3301  ;;  %3003 = vst [vmem:[%s5028_s25 + $0x100] sm:$0xff] %v2440_v40  ;;  %v1004_v18 = vsub.f32 0.0, %v674_v39  ;;  %v2001_v28 = vmul.f32 %v4544_v27, %v1885_v48  ;;  %v2002_v50 = vmul.f32 %v4547_v8, %v1885_v48  ;;  %v1041_v60 = vmul.f32 1.442695, %v932_v15 }
 0x121   : > { %6156 = vst [vmem:[#allocation101_spill] sm:$0xff] %v5049_v52  ;;  %2999 = vst [vmem:[%s4822_s24 + $0x1e0] sm:$0xff] %v674_v39  ;;  %v3304_v47 = vpop.eup %3303  ;;  %v2346_v51 = vmul.f32 %v3294_v23, %v2250_v57  ;;  %v2251_v53 = vadd.f32 %v6145_v16, %v2143_v62  ;;  %v1216_v20 = vadd.f32 1.0, %v3302_v33  ;;  %v5056_v14 = vpop.f32.mrb[22].mxu0  ;;  %3319 = vpow2.f32 %v1183_v1  ;;  %v6159_v1 = vld [vmem:[#allocation41_spill] sm:$0xff] }
 0x122   : > { %6157 = vst [vmem:[#allocation102_spill] sm:$0xff] %v5056_v14  ;;  %v3306_v25 = vpop.eup %3305  ;;  %v1288_v3 = vadd.f32 1.0, %v3304_v47  ;;  %v1185_v52 = vmul.f32 1.442695, %v1004_v18  ;;  %v2003_v40 = vmul.f32 %v4541_v7, %v1885_v48  ;;  %v5059_v56 = vpop.f32.mrb[22].mxu1  ;;  %v5068_v18 = vadd.f32 %v2001_v28, %v6159_v1  ;;  %v6161_v48 = vld [vmem:[#allocation42_spill] sm:$0xff] }
 0x123   : > { %6158 = vst [vmem:[#allocation103_spill] sm:$0xff] %v5059_v56  ;;  %v5061_v39 = vpop.f32.mrb[23].mxu0  ;;  %v3308_v36 = vpop.eup %3307  ;;  %v2442_v23 = vadd.f32 %v2346_v51, %v4672_v11  ;;  %v2347_v57 = vmul.f32 %v3298_v63, %v2251_v53  ;;  %3321 = vrcp.f32 %v1216_v20  ;;  %v1217_v62 = vadd.f32 1.0, %v3306_v25  ;;  %v6163_v63 = vld [vmem:[#allocation43_spill] sm:$0xff] }
 0x124   : > { %v1889_v15 = vpop.permute.xlu0 %1888  ;;  %v5064_v33 = vpop.f32.mrb[23].mxu1  ;;  %v2145_v47 = vmul.f32 %v3308_v36, %v6131_v61  ;;  %3323 = vrcp.f32 %v1288_v3  ;;  %6160 = vst [vmem:[#allocation41_spill] sm:$0xff] %v5068_v18  ;;  %v5071_v56 = vadd.f32 %v2002_v50, %v6161_v48  ;;  %v5076_v51 = vadd.f32 %v2003_v40, %v6163_v63 }
 0x125   : > { %v3310_v14 = vpop.eup %3309  ;;  %2568 = vst [vmem:[%s5028_s25 + $0x8] sm:$0xff] %v2442_v23  ;;  %v2443_v11 = vadd.f32 %v2347_v57, %v4674_v44  ;;  %3325 = vrcp.f32 %v1217_v62  ;;  %v5078_v53 = vpop.f32.mrb[24].mxu0  ;;  %v2004_v28 = vmul.f32 %v4544_v27, %v1889_v15  ;;  %v2005_v50 = vmul.f32 %v4547_v8, %v1889_v15 }
 0x126   : > { %6162 = vst [vmem:[#allocation42_spill] sm:$0xff] %v5071_v56  ;;  %v1289_v20 = vadd.f32 1.0, %v3310_v14  ;;  %6164 = vst [vmem:[#allocation43_spill] sm:$0xff] %v5076_v51  ;;  %v5080_v25 = vpop.eup %3311  ;;  %v2253_v3 = vadd.f32 %v6137_v6, %v2145_v47  ;;  %3327 = vpow2.f32 %v1041_v60  ;;  %v5085_v1 = vpop.f32.mrb[24].mxu1  ;;  %v2006_v14 = vmul.f32 %v4541_v7, %v1889_v15  ;;  %v6168_v56 = vld [vmem:[#allocation39_spill] sm:$0xff] }
 0x127   : > { %v5087_v23 = vpop.f32.mrb[25].mxu0  ;;  %v3314_v44 = vpop.eup %3313  ;;  %3004 = vst [vmem:[%s5028_s25 + $0x108] sm:$0xff] %v2443_v11  ;;  %v534_v40 = vadd.f32 %v4912_v32, %v4550_v4  ;;  %v678_v60 = vadd.f32 %v4914_v42, %v4550_v4  ;;  %v6166_v11 = vld [vmem:[#allocation38_spill] sm:$0xff]  ;;  %v5104_v18 = vadd.f32 %v2005_v50, %v6168_v56  ;;  %v6170_v32 = vld [vmem:[#allocation40_spill] sm:$0xff]  ;;  %v536_v56 = vadd.f32 %v4917_v59, %v6094_v17 }
 0x128   : > { %3329 = vrcp.f32 %v1289_v20  ;;  %v5095_v57 = vpop.f32.mrb[25].mxu1  ;;  %v5097_v62 = vpop.eup %3315  ;;  %v2349_v47 = vmul.f32 %v3308_v36, %v2253_v3  ;;  %v2146_v48 = vmul.f32 %v3314_v44, %v6142_v2  ;;  %v5101_v63 = vadd.f32 %v2004_v28, %v6166_v11 }
 0x129   : > { %6165 = vst [vmem:[#allocation104_spill] sm:$0xff] %v5095_v57  ;;  %3331 = vpow2.f32 %v1185_v52  ;;  %v1893_v20 = vpop.permute.xlu1 %1892  ;;  %v3318_v15 = vpop.eup %3317  ;;  %6169 = vst [vmem:[#allocation39_spill] sm:$0xff] %v5104_v18  ;;  %v5107_v51 = vadd.f32 %v2006_v14, %v6170_v32  ;;  %v934_v42 = vsub.f32 0.0, %v534_v40  ;;  %v1006_v57 = vsub.f32 0.0, %v678_v60 }
 0x12a   : > { %6167 = vst [vmem:[#allocation38_spill] sm:$0xff] %v5101_v63  ;;  %2540 = vst [vmem:[%s4822_s24 + $0x28] sm:$0xff] %v534_v40  ;;  %v5111_v36 = vpop.f32.mrb[26].mxu0  ;;  %v2445_v52 = vadd.f32 %v2349_v47, %v4683_v54  ;;  %v2254_v3 = vadd.f32 %v6145_v16, %v2146_v48  ;;  %v1219_v28 = vadd.f32 1.0, %v3318_v15  ;;  %v5117_v50 = vpop.f32.mrb[26].mxu1  ;;  %v2007_v32 = vmul.f32 %v4544_v27, %v1893_v20 }
 0x12b   : > { %6171 = vst [vmem:[#allocation40_spill] sm:$0xff] %v5107_v51  ;;  %2564 = vst [vmem:[%s4822_s24 + $0xe8] sm:$0xff] %v678_v60  ;;  %v5119_v14 = vpop.f32.mrb[27].mxu0  ;;  %v1045_v11 = vmul.f32 1.442695, %v934_v42  ;;  %v680_v60 = vadd.f32 %v4919_v0, %v6094_v17  ;;  %v5124_v54 = vpop.f32.mrb[27].mxu1  ;;  %v2008_v59 = vmul.f32 %v4547_v8, %v1893_v20 }
 0x12c   : > { %6172 = vst [vmem:[#allocation105_spill] sm:$0xff] %v5117_v50  ;;  %6173 = vst [vmem:[#allocation106_spill] sm:$0xff] %v5119_v14  ;;  %v1189_v40 = vmul.f32 1.442695, %v1006_v57  ;;  %v3320_v47 = vpop.eup %3319  ;;  %v2350_v48 = vmul.f32 %v3314_v44, %v2254_v3  ;;  %3333 = vrcp.f32 %v1219_v28  ;;  %v935_v15 = vsub.f32 0.0, %v536_v56  ;;  %v5131_v0 = vpop.f32.mrb[28].mxu0 }
 0x12d   : > { %6174 = vst [vmem:[#allocation107_spill] sm:$0xff] %v5124_v54  ;;  %2569 = vst [vmem:[%s5028_s25 + $0x10] sm:$0xff] %v2445_v52  ;;  %v3322_v18 = vpop.eup %3321  ;;  %v1291_v63 = vadd.f32 1.0, %v3320_v47  ;;  %3335 = vpow2.f32 %v1045_v11  ;;  %v1007_v42 = vsub.f32 0.0, %v680_v60  ;;  %v2009_v57 = vmul.f32 %v4541_v7, %v1893_v20  ;;  %v5137_v28 = vpop.f32.mrb[28].mxu1 }
 0x12e   : > { %2976 = vst [vmem:[%s4822_s24 + $0x128] sm:$0xff] %v536_v56  ;;  %3000 = vst [vmem:[%s4822_s24 + $0x1e8] sm:$0xff] %v680_v60  ;;  %v5133_v51 = vpop.eup %3323  ;;  %v2446_v52 = vadd.f32 %v2350_v48, %v4685_v24  ;;  %v2148_v44 = vmul.f32 %v3322_v18, %v6131_v61  ;;  %3337 = vpow2.f32 %v1189_v40  ;;  %v1047_v3 = vmul.f32 1.442695, %v935_v15  ;;  %v5139_v56 = vpop.f32.mrb[29].mxu0  ;;  %v6179_v48 = vld [vmem:[#allocation45_spill] sm:$0xff] }
 0x12f   : > { %6175 = vst [vmem:[#allocation108_spill] sm:$0xff] %v5131_v0  ;;  %6176 = vst [vmem:[#allocation109_spill] sm:$0xff] %v5137_v28  ;;  %v3326_v11 = vpop.eup %3325  ;;  %3339 = vrcp.f32 %v1291_v63  ;;  %v1191_v60 = vmul.f32 1.442695, %v1007_v42  ;;  %v2103_v20 = vadd.f32 %v2007_v32, %v4615_v21  ;;  %v2104_v47 = vadd.f32 %v2008_v59, %v4621_v22  ;;  %v1897_v0 = vpop.permute.xlu0 %1896  ;;  %v6185_v28 = vld [vmem:[#allocation62_spill] sm:$0xff] }
 0x130   : > { %6177 = vst [vmem:[#allocation110_spill] sm:$0xff] %v5139_v56  ;;  %v5143_v54 = vpop.f32.mrb[29].mxu1  ;;  %v3328_v14 = vpop.eup %3327  ;;  %3005 = vst [vmem:[%s5028_s25 + $0x110] sm:$0xff] %v2446_v52  ;;  %v2256_v24 = vadd.f32 %v6137_v6, %v2148_v44  ;;  %v2149_v40 = vmul.f32 %v3326_v11, %v6142_v2  ;;  %3341 = vpow2.f32 %v1047_v3  ;;  %v5149_v15 = vadd.f32 %v2009_v57, %v6179_v48 }
 0x131   : > { %6178 = vst [vmem:[#allocation111_spill] sm:$0xff] %v5143_v54  ;;  %v1220_v63 = vadd.f32 1.0, %v3328_v14  ;;  %3343 = vpow2.f32 %v1191_v60  ;;  %v2211_v21 = vmul.f32 %v4972_v41, %v6131_v61  ;;  %v2212_v22 = vmul.f32 %v4995_v45, %v6142_v2  ;;  %v5160_v57 = vpop.f32.mrb[30].mxu0  ;;  %v5162_v3 = vpop.f32.mrb[30].mxu1 }
 0x132   : > { %6180 = vst [vmem:[#allocation45_spill] sm:$0xff] %v5149_v15  ;;  %v5151_v56 = vpop.eup %3329  ;;  %v2352_v59 = vmul.f32 %v3322_v18, %v2256_v24  ;;  %v2257_v42 = vadd.f32 %v6145_v16, %v2149_v40  ;;  %v2010_v52 = vmul.f32 %v4544_v27, %v1897_v0  ;;  %v2011_v44 = vmul.f32 %v4547_v8, %v1897_v0  ;;  %v5166_v15 = vpop.f32.mrb[31].mxu0 }
 0x133   : > { %v3332_v32 = vpop.eup %3331  ;;  %6181 = vst [vmem:[#allocation112_spill] sm:$0xff] %v5160_v57  ;;  %6182 = vst [vmem:[#allocation113_spill] sm:$0xff] %v5162_v3  ;;  %3345 = vrcp.f32 %v1220_v63  ;;  %v2319_v60 = vadd.f32 %v6137_v6, %v2211_v21  ;;  %v2320_v48 = vadd.f32 %v6145_v16, %v2212_v22  ;;  %v5168_v18 = vpop.f32.mrb[31].mxu1  ;;  %v2012_v54 = vmul.f32 %v4541_v7, %v1897_v0 }
 0x134   : > { %v1292_v14 = vadd.f32 1.0, %v3332_v32  ;;  %6183 = vst [vmem:[#allocation114_spill] sm:$0xff] %v5166_v15  ;;  %6184 = vst [vmem:[#allocation115_spill] sm:$0xff] %v5168_v18  ;;  %v2448_v24 = vadd.f32 %v2352_v59, %v4694_v35  ;;  %v2353_v40 = vmul.f32 %v3326_v11, %v2257_v42  ;;  %v2106_v57 = vadd.f32 %v2010_v52, %v6185_v28  ;;  %v6186_v32 = vld [vmem:[#allocation63_spill] sm:$0xff]  ;;  %v6187_v18 = vld [vmem:[#allocation44_spill] sm:$0xff]  ;;  %v5185_v28 = vpop.f32.mrb[32].mxu0 }
 0x135   : > { %v2415_v3 = vmul.f32 %v4972_v41, %v2319_v60  ;;  %v2416_v63 = vmul.f32 %v4995_v45, %v2320_v48  ;;  %v2107_v21 = vadd.f32 %v2011_v44, %v6186_v32  ;;  %v5179_v15 = vadd.f32 %v2012_v54, %v6187_v18  ;;  %v5187_v41 = vpop.f32.mrb[32].mxu1  ;;  %v5192_v42 = vpop.f32.mrb[33].mxu0 }
 0x136   : > { %3347 = vrcp.f32 %v1292_v14  ;;  %v3334_v50 = vpop.eup %3333  ;;  %2570 = vst [vmem:[%s5028_s25 + $0x18] sm:$0xff] %v2448_v24  ;;  %v2449_v22 = vadd.f32 %v2353_v40, %v4696_v10  ;;  %v2214_v35 = vmul.f32 %v5024_v30, %v6131_v61  ;;  %v2215_v0 = vmul.f32 %v5044_v37, %v6142_v2  ;;  %v5194_v52 = vpop.f32.mrb[33].mxu1 }
 0x137   : > { %6188 = vst [vmem:[#allocation62_spill] sm:$0xff] %v5179_v15  ;;  %v3336_v45 = vpop.eup %3335  ;;  %v2151_v11 = vmul.f32 %v3334_v50, %v6131_v61  ;;  %v2511_v59 = vadd.f32 %v2415_v3, %v2103_v20  ;;  %v2512_v10 = vadd.f32 %v2416_v63, %v2104_v47  ;;  %v540_v54 = vadd.f32 %v4937_v19, %v4550_v4  ;;  %v1901_v40 = vpop.permute.xlu1 %1900 }
 0x138   : > { %v3338_v44 = vpop.eup %3337  ;;  %3006 = vst [vmem:[%s5028_s25 + $0x118] sm:$0xff] %v2449_v22  ;;  %v1222_v14 = vadd.f32 1.0, %v3336_v45  ;;  %v2322_v60 = vadd.f32 %v6137_v6, %v2214_v35  ;;  %v2323_v48 = vadd.f32 %v6145_v16, %v2215_v0  ;;  %v684_v20 = vadd.f32 %v4939_v43, %v4550_v4  ;;  %v5212_v35 = vpop.f32.mrb[34].mxu0 }
 0x139   : > { %v5201_v47 = vpop.eup %3339  ;;  %v2259_v3 = vadd.f32 %v6137_v6, %v2151_v11  ;;  %v1294_v19 = vadd.f32 1.0, %v3338_v44  ;;  %2591 = vst [vmem:[%s5028_s25 + $0xc0] sm:$0xff] %v2511_v59  ;;  %3027 = vst [vmem:[%s5028_s25 + $0x1c0] sm:$0xff] %v2512_v10  ;;  %v937_v18 = vsub.f32 0.0, %v540_v54  ;;  %v542_v24 = vadd.f32 %v4949_v5, %v6094_v17  ;;  %v5214_v0 = vpop.f32.mrb[34].mxu1 }
 0x13a   : > { %2541 = vst [vmem:[%s4822_s24 + $0x30] sm:$0xff] %v540_v54  ;;  %v3342_v63 = vpop.eup %3341  ;;  %3349 = vrcp.f32 %v1222_v14  ;;  %v2418_v32 = vmul.f32 %v5024_v30, %v2322_v60  ;;  %v2419_v43 = vmul.f32 %v5044_v37, %v2323_v48  ;;  %v1009_v22 = vsub.f32 0.0, %v684_v20  ;;  %2565 = vst [vmem:[%s4822_s24 + $0xf0] sm:$0xff] %v684_v20  ;;  %v5217_v5 = vpop.f32.mrb[35].mxu0 }
 0x13b   : > { %v3344_v45 = vpop.eup %3343  ;;  %v2355_v11 = vmul.f32 %v3334_v50, %v2259_v3  ;;  %3351 = vrcp.f32 %v1294_v19  ;;  %v1223_v59 = vadd.f32 1.0, %v3342_v63  ;;  %v1051_v10 = vmul.f32 1.442695, %v937_v18  ;;  %2977 = vst [vmem:[%s4822_s24 + $0x130] sm:$0xff] %v542_v24  ;;  %v5219_v54 = vpop.f32.mrb[35].mxu1 }
 0x13c   : > { %v1295_v30 = vadd.f32 1.0, %v3344_v45  ;;  %v2514_v37 = vadd.f32 %v2418_v32, %v2106_v57  ;;  %v2515_v44 = vadd.f32 %v2419_v43, %v2107_v21  ;;  %v1195_v14 = vmul.f32 1.442695, %v1009_v22  ;;  %v1905_v3 = vpop.permute.xlu0 %1904  ;;  %v5229_v18 = vpop.f32.mrb[36].mxu0 }
 0x13d   : > { %v3346_v60 = vpop.eup %3345  ;;  %v2451_v48 = vadd.f32 %v2355_v11, %v4744_v12  ;;  %3353 = vrcp.f32 %v1223_v59  ;;  %v938_v50 = vsub.f32 0.0, %v542_v24  ;;  %v686_v20 = vadd.f32 %v4951_v26, %v6094_v17  ;;  %v5231_v63 = vpop.f32.mrb[36].mxu1  ;;  %v6191_v11 = vld [vmem:[#allocation67_spill] sm:$0xff] }
 0x13e   : > { %v2152_v19 = vmul.f32 %v3346_v60, %v6142_v2  ;;  %3355 = vrcp.f32 %v1295_v30  ;;  %2592 = vst [vmem:[%s5028_s25 + $0xc8] sm:$0xff] %v2514_v37  ;;  %3028 = vst [vmem:[%s5028_s25 + $0x1c8] sm:$0xff] %v2515_v44  ;;  %v2013_v57 = vmul.f32 %v4544_v27, %v1901_v40  ;;  %v2014_v21 = vmul.f32 %v4547_v8, %v1901_v40  ;;  %v5238_v43 = vpop.f32.mrb[37].mxu0  ;;  %v5240_v22 = vpop.f32.mrb[37].mxu1  ;;  %v6192_v30 = vld [vmem:[#allocation68_spill] sm:$0xff] }
 0x13f   : > { %2571 = vst [vmem:[%s5028_s25 + $0x20] sm:$0xff] %v2451_v48  ;;  %3357 = vpow2.f32 %v1051_v10  ;;  %v1053_v24 = vmul.f32 1.442695, %v938_v50  ;;  %v1010_v26 = vsub.f32 0.0, %v686_v20  ;;  %3001 = vst [vmem:[%s4822_s24 + $0x1f0] sm:$0xff] %v686_v20  ;;  %v2015_v32 = vmul.f32 %v4541_v7, %v1901_v40  ;;  %v6193_v48 = vld [vmem:[#allocation47_spill] sm:$0xff] }
 0x140   : > { %v5233_v12 = vpop.eup %3347  ;;  %6189 = vst [vmem:[#allocation63_spill] sm:$0xff] %v5238_v43  ;;  %6190 = vst [vmem:[#allocation44_spill] sm:$0xff] %v5240_v22  ;;  %v2260_v45 = vadd.f32 %v6145_v16, %v2152_v19  ;;  %3359 = vpow2.f32 %v1195_v14  ;;  %v2109_v59 = vadd.f32 %v2013_v57, %v6191_v11  ;;  %v2110_v37 = vadd.f32 %v2014_v21, %v6192_v30  ;;  %v5254_v19 = vpop.f32.mrb[38].mxu0  ;;  %v6197_v11 = vld [vmem:[#allocation65_spill] sm:$0xff] }
 0x141   : > { %3361 = vpow2.f32 %v1053_v24  ;;  %v1197_v44 = vmul.f32 1.442695, %v1010_v26  ;;  %v5246_v10 = vadd.f32 %v2015_v32, %v6193_v48  ;;  %v2217_v50 = vmul.f32 %v5080_v25, %v6131_v61  ;;  %6195 = vst [vmem:[#allocation68_spill] sm:$0xff] %v5254_v19  ;;  %v5256_v57 = vpop.f32.mrb[38].mxu1  ;;  %v6198_v48 = vld [vmem:[#allocation66_spill] sm:$0xff]  ;;  %v5275_v43 = vpop.f32.mrb[39].mxu0 }
 0x142   : > { %v2356_v40 = vmul.f32 %v3346_v60, %v2260_v45  ;;  %v2218_v20 = vmul.f32 %v5097_v62, %v6142_v2  ;;  %v2016_v15 = vmul.f32 %v4544_v27, %v1905_v3  ;;  %v2017_v14 = vmul.f32 %v4547_v8, %v1905_v3  ;;  %6196 = vst [vmem:[#allocation47_spill] sm:$0xff] %v5256_v57  ;;  %v6199_v57 = vld [vmem:[#allocation46_spill] sm:$0xff] }
 0x143   : > { %6194 = vst [vmem:[#allocation67_spill] sm:$0xff] %v5246_v10  ;;  %3363 = vpow2.f32 %v1197_v44  ;;  %v2325_v21 = vadd.f32 %v6137_v6, %v2217_v50  ;;  %v2018_v24 = vmul.f32 %v4541_v7, %v1905_v3  ;;  %v2220_v60 = vmul.f32 %v5133_v51, %v6131_v61 }
 0x144   : > { %v3350_v26 = vpop.eup %3349  ;;  %v2452_v32 = vadd.f32 %v2356_v40, %v4747_v58  ;;  %v2326_v45 = vadd.f32 %v6145_v16, %v2218_v20  ;;  %v2112_v30 = vadd.f32 %v2016_v15, %v6197_v11  ;;  %v2113_v10 = vadd.f32 %v2017_v14, %v6198_v48  ;;  %v5284_v20 = vpop.f32.mrb[39].mxu1 }
 0x145   : > { %v5266_v19 = vpop.eup %3351  ;;  %v2154_v44 = vmul.f32 %v3350_v26, %v6131_v61  ;;  %v2421_v50 = vmul.f32 %v5080_v25, %v2325_v21  ;;  %v5271_v3 = vadd.f32 %v2018_v24, %v6199_v57  ;;  %v2221_v22 = vmul.f32 %v5151_v56, %v6142_v2 }
 0x146   : > { %3007 = vst [vmem:[%s5028_s25 + $0x120] sm:$0xff] %v2452_v32  ;;  %v2422_v58 = vmul.f32 %v5097_v62, %v2326_v45  ;;  %v2328_v15 = vadd.f32 %v6137_v6, %v2220_v60  ;;  %v546_v40 = vadd.f32 %v4961_v46, %v4550_v4  ;;  %v690_v25 = vadd.f32 %v4963_v34, %v4550_v4 }
 0x147   : > { %6200 = vst [vmem:[#allocation65_spill] sm:$0xff] %v5271_v3  ;;  %v3354_v14 = vpop.eup %3353  ;;  %v2262_v57 = vadd.f32 %v6137_v6, %v2154_v44  ;;  %v2517_v21 = vadd.f32 %v2421_v50, %v2109_v59  ;;  %v2329_v24 = vadd.f32 %v6145_v16, %v2221_v22  ;;  %v548_v62 = vadd.f32 %v4965_v9, %v6094_v17 }
 0x148   : > { %v5290_v60 = vpop.eup %3355  ;;  %v2155_v46 = vmul.f32 %v3354_v14, %v6142_v2  ;;  %v2518_v32 = vadd.f32 %v2422_v58, %v2110_v37  ;;  %v2424_v34 = vmul.f32 %v5133_v51, %v2328_v15  ;;  %v940_v45 = vsub.f32 0.0, %v546_v40  ;;  %2542 = vst [vmem:[%s4822_s24 + $0x38] sm:$0xff] %v546_v40  ;;  %2566 = vst [vmem:[%s4822_s24 + $0xf8] sm:$0xff] %v690_v25  ;;  %v1909_v58 = vpop.permute.xlu1 %1908 }
 0x149   : > { %v3358_v11 = vpop.eup %3357  ;;  %v2358_v48 = vmul.f32 %v3350_v26, %v2262_v57  ;;  %2593 = vst [vmem:[%s5028_s25 + $0xd0] sm:$0xff] %v2517_v21  ;;  %v2425_v59 = vmul.f32 %v5151_v56, %v2329_v24  ;;  %v1012_v22 = vsub.f32 0.0, %v690_v25  ;;  %v941_v44 = vsub.f32 0.0, %v548_v62  ;;  %2978 = vst [vmem:[%s4822_s24 + $0x138] sm:$0xff] %v548_v62  ;;  %v5302_v25 = vpop.f32.mrb[40].mxu0 }
 0x14a   : > { %v3360_v9 = vpop.eup %3359  ;;  %v2263_v50 = vadd.f32 %v6145_v16, %v2155_v46  ;;  %v1225_v3 = vadd.f32 1.0, %v3358_v11  ;;  %3029 = vst [vmem:[%s5028_s25 + $0x1d0] sm:$0xff] %v2518_v32  ;;  %v2520_v37 = vadd.f32 %v2424_v34, %v2112_v30  ;;  %v1057_v51 = vmul.f32 1.442695, %v940_v45  ;;  %v5304_v21 = vpop.f32.mrb[40].mxu1 }
 0x14b   : > { %v3362_v15 = vpop.eup %3361  ;;  %v2454_v26 = vadd.f32 %v2358_v48, %v4761_v55  ;;  %v1297_v40 = vadd.f32 1.0, %v3360_v9  ;;  %v2521_v57 = vadd.f32 %v2425_v59, %v2113_v10  ;;  %v1201_v56 = vmul.f32 1.442695, %v1012_v22  ;;  %v1913_v45 = vpop.permute.xlu0 %1912  ;;  %v6201_v59 = vld [vmem:[#allocation74_spill] sm:$0xff] }
 0x14c   : > { %v2359_v24 = vmul.f32 %v3354_v14, %v2263_v50  ;;  %3365 = vrcp.f32 %v1225_v3  ;;  %v1226_v62 = vadd.f32 1.0, %v3362_v15  ;;  %2594 = vst [vmem:[%s5028_s25 + $0xd8] sm:$0xff] %v2520_v37  ;;  %v1059_v30 = vmul.f32 1.442695, %v941_v44  ;;  %v5326_v50 = vpop.f32.mrb[41].mxu0  ;;  %v5328_v37 = vpop.f32.mrb[41].mxu1 }
 0x14d   : > { %v3364_v46 = vpop.eup %3363  ;;  %2572 = vst [vmem:[%s5028_s25 + $0x28] sm:$0xff] %v2454_v26  ;;  %3367 = vrcp.f32 %v1297_v40  ;;  %3030 = vst [vmem:[%s5028_s25 + $0x1d8] sm:$0xff] %v2521_v57  ;;  %v692_v55 = vadd.f32 %v4970_v29, %v6094_v17  ;;  %v2019_v10 = vmul.f32 %v4544_v27, %v1909_v58  ;;  %v2020_v32 = vmul.f32 %v4547_v8, %v1909_v58  ;;  %v6202_v29 = vld [vmem:[#allocation49_spill] sm:$0xff]  ;;  %v6204_v57 = vld [vmem:[#allocation72_spill] sm:$0xff] }
 0x14e   : > { %v2455_v34 = vadd.f32 %v2359_v24, %v4764_v38  ;;  %3369 = vrcp.f32 %v1226_v62  ;;  %v1298_v3 = vadd.f32 1.0, %v3364_v46  ;;  %v2021_v14 = vmul.f32 %v4541_v7, %v1909_v58  ;;  %v6205_v62 = vld [vmem:[#allocation73_spill] sm:$0xff] }
 0x14f   : > { %3371 = vpow2.f32 %v1057_v51  ;;  %v1013_v11 = vsub.f32 0.0, %v692_v55  ;;  %3002 = vst [vmem:[%s4822_s24 + $0x1f8] sm:$0xff] %v692_v55  ;;  %v2115_v48 = vadd.f32 %v2019_v10, %v4662_v13  ;;  %v2116_v22 = vadd.f32 %v2020_v32, %v6201_v59  ;;  %v6206_v32 = vld [vmem:[#allocation48_spill] sm:$0xff]  ;;  %v6209_v59 = vld [vmem:[#allocation35_spill] sm:$0xff] }
 0x150   : > { %3008 = vst [vmem:[%s5028_s25 + $0x128] sm:$0xff] %v2455_v34  ;;  %3373 = vrcp.f32 %v1298_v3  ;;  %v5320_v44 = vadd.f32 %v2021_v14, %v6202_v29  ;;  %v2223_v38 = vmul.f32 %v5201_v47, %v6131_v61  ;;  %v2224_v9 = vmul.f32 %v5233_v12, %v6142_v2  ;;  %v1917_v3 = vpop.permute.xlu1 %1916 }
 0x151   : > { %3375 = vpow2.f32 %v1201_v56  ;;  %v1203_v51 = vmul.f32 1.442695, %v1013_v11  ;;  %v2022_v13 = vmul.f32 %v4544_v27, %v1913_v45  ;;  %v2023_v58 = vmul.f32 %v4547_v8, %v1913_v45  ;;  %v6208_v11 = vld [vmem:[#allocation69_spill] sm:$0xff] }
 0x152   : > { %6203 = vst [vmem:[#allocation66_spill] sm:$0xff] %v5320_v44  ;;  %3377 = vpow2.f32 %v1059_v30  ;;  %v2331_v15 = vadd.f32 %v6137_v6, %v2223_v38  ;;  %v2332_v26 = vadd.f32 %v6145_v16, %v2224_v9  ;;  %v2024_v40 = vmul.f32 %v4541_v7, %v1913_v45  ;;  %v5353_v38 = vpop.f32.mrb[42].mxu0  ;;  %v5355_v9 = vpop.f32.mrb[42].mxu1 }
 0x153   : > { %3379 = vpow2.f32 %v1203_v51  ;;  %v2118_v24 = vadd.f32 %v2022_v13, %v6204_v57  ;;  %v2119_v46 = vadd.f32 %v2023_v58, %v6205_v62  ;;  %v2226_v56 = vmul.f32 %v5266_v19, %v6131_v61 }
 0x154   : > { %v2427_v55 = vmul.f32 %v5201_v47, %v2331_v15  ;;  %v2428_v10 = vmul.f32 %v5233_v12, %v2332_v26  ;;  %v5342_v30 = vadd.f32 %v2024_v40, %v6206_v32  ;;  %v2227_v34 = vmul.f32 %v5290_v60, %v6142_v2  ;;  %v6210_v47 = vld [vmem:[#allocation57_spill] sm:$0xff] }
 0x155   : > { %v2334_v14 = vadd.f32 %v6137_v6, %v2226_v56  ;;  %v552_v45 = vadd.f32 %v4983_v31, %v4550_v4  ;;  %v766_v29 = vadd.f32 %v6209_v59, %v6208_v11  ;;  %v554_v12 = vadd.f32 %v6210_v47, %v6094_v17  ;;  %v6211_v31 = vld [vmem:[#allocation37_spill] sm:$0xff] }
 0x156   : > { %6207 = vst [vmem:[#allocation46_spill] sm:$0xff] %v5342_v30  ;;  %v3366_v51 = vpop.eup %3365  ;;  %v2523_v13 = vadd.f32 %v2427_v55, %v2115_v48  ;;  %v2524_v58 = vadd.f32 %v2428_v10, %v2116_v22  ;;  %v2335_v15 = vadd.f32 %v6145_v16, %v2227_v34  ;;  %v761_v26 = vadd.f32 %v6211_v31, %v6208_v11  ;;  %v5372_v34 = vpop.f32.mrb[43].mxu0 }
 0x157   : > { %v5360_v40 = vpop.eup %3367  ;;  %v2157_v57 = vmul.f32 %v3366_v51, %v6131_v61  ;;  %v2430_v62 = vmul.f32 %v5266_v19, %v2334_v14  ;;  %v943_v56 = vsub.f32 0.0, %v552_v45  ;;  %2543 = vst [vmem:[%s4822_s24 + $0x40] sm:$0xff] %v552_v45  ;;  %v924_v32 = vsub.f32 0.0, %v766_v29  ;;  %3036 = vst [vmem:[%s4822_s24 + $0x208] sm:$0xff] %v766_v29 }
 0x158   : > { %2979 = vst [vmem:[%s4822_s24 + $0x140] sm:$0xff] %v554_v12  ;;  %v3370_v59 = vpop.eup %3369  ;;  %2595 = vst [vmem:[%s5028_s25 + $0xe0] sm:$0xff] %v2523_v13  ;;  %v2431_v48 = vmul.f32 %v5290_v60, %v2335_v15  ;;  %v944_v22 = vsub.f32 0.0, %v554_v12  ;;  %v921_v55 = vsub.f32 0.0, %v761_v26  ;;  %v2025_v10 = vmul.f32 %v4544_v27, %v1917_v3 }
 0x159   : > { %3031 = vst [vmem:[%s5028_s25 + $0x1e0] sm:$0xff] %v2524_v58  ;;  %3035 = vst [vmem:[%s4822_s24 + $0x200] sm:$0xff] %v761_v26  ;;  %v3372_v47 = vpop.eup %3371  ;;  %v2265_v19 = vadd.f32 %v6137_v6, %v2157_v57  ;;  %v2158_v14 = vmul.f32 %v3370_v59, %v6142_v2  ;;  %v2526_v45 = vadd.f32 %v2430_v62, %v2118_v24  ;;  %v1063_v29 = vmul.f32 1.442695, %v943_v56 }
 0x15a   : > { %6212 = vst [vmem:[#allocation74_spill] sm:$0xff] %v5372_v34  ;;  %v3374_v13 = vpop.eup %3373  ;;  %v1228_v58 = vadd.f32 1.0, %v3372_v47  ;;  %v2527_v31 = vadd.f32 %v2431_v48, %v2119_v46  ;;  %v1025_v60 = vmul.f32 1.442695, %v924_v32  ;;  %v1065_v12 = vmul.f32 1.442695, %v944_v22  ;;  %v1921_v47 = vpop.permute.xlu0 %1920 }
 0x15b   : > { %v3376_v15 = vpop.eup %3375  ;;  %v2361_v26 = vmul.f32 %v3366_v51, %v2265_v19  ;;  %v2266_v44 = vadd.f32 %v6145_v16, %v2158_v14  ;;  %2596 = vst [vmem:[%s5028_s25 + $0xe8] sm:$0xff] %v2526_v45  ;;  %3381 = vpow2.f32 %v1063_v29  ;;  %v1019_v30 = vmul.f32 1.442695, %v921_v55  ;;  %v5378_v34 = vpop.f32.mrb[43].mxu1  ;;  %v6213_v32 = vld [vmem:[#allocation77_spill] sm:$0xff]  ;;  %v6215_v45 = vld [vmem:[#allocation54_spill] sm:$0xff] }
 0x15c   : > { %v3378_v57 = vpop.eup %3377  ;;  %3383 = vrcp.f32 %v1228_v58  ;;  %v1300_v24 = vadd.f32 1.0, %v3376_v15  ;;  %3032 = vst [vmem:[%s5028_s25 + $0x1e8] sm:$0xff] %v2527_v31  ;;  %v2026_v62 = vmul.f32 %v4547_v8, %v1917_v3  ;;  %v2027_v46 = vmul.f32 %v4541_v7, %v1917_v3  ;;  %v6214_v19 = vld [vmem:[#allocation53_spill] sm:$0xff]  ;;  %v6216_v58 = vld [vmem:[#allocation78_spill] sm:$0xff]  ;;  %v6217_v15 = vld [vmem:[#allocation55_spill] sm:$0xff] }
 0x15d   : > { %v3380_v56 = vpop.eup %3379  ;;  %v2457_v48 = vadd.f32 %v2361_v26, %v6213_v32  ;;  %v2362_v51 = vmul.f32 %v3370_v59, %v2266_v44  ;;  %v1229_v22 = vadd.f32 1.0, %v3378_v57  ;;  %3385 = vpow2.f32 %v1025_v60 }
 0x15e   : > { %3387 = vrcp.f32 %v1300_v24  ;;  %v1301_v55 = vadd.f32 1.0, %v3380_v56  ;;  %v2121_v14 = vadd.f32 %v2025_v10, %v6214_v19  ;;  %v2122_v29 = vadd.f32 %v2026_v62, %v6215_v45  ;;  %v5401_v62 = vpop.f32.mrb[44].mxu0  ;;  %v6225_v45 = vld [vmem:[#allocation97_spill] sm:$0xff] }
 0x15f   : > { %2573 = vst [vmem:[%s5028_s25 + $0x30] sm:$0xff] %v2457_v48  ;;  %v2458_v31 = vadd.f32 %v2362_v51, %v6216_v58  ;;  %3389 = vrcp.f32 %v1229_v22  ;;  %v5389_v3 = vadd.f32 %v2027_v46, %v6217_v15  ;;  %v2229_v44 = vmul.f32 %v5360_v40, %v6131_v61  ;;  %v5403_v46 = vpop.f32.mrb[44].mxu1  ;;  %v6223_v22 = vld [vmem:[#allocation60_spill] sm:$0xff]  ;;  %v5425_v15 = vpop.f32.mrb[45].mxu0 }
 0x160   : > { %3391 = vrcp.f32 %v1301_v55  ;;  %v2230_v59 = vmul.f32 %v3374_v13, %v6142_v2  ;;  %v2028_v60 = vmul.f32 %v4544_v27, %v1921_v47  ;;  %v2029_v10 = vmul.f32 %v4547_v8, %v1921_v47  ;;  %v6219_v27 = vld [vmem:[#allocation50_spill] sm:$0xff]  ;;  %v6220_v8 = vld [vmem:[#allocation51_spill] sm:$0xff] }
 0x161   : > { %6218 = vst [vmem:[#allocation49_spill] sm:$0xff] %v5389_v3  ;;  %3009 = vst [vmem:[%s5028_s25 + $0x130] sm:$0xff] %v2458_v31  ;;  %3393 = vpow2.f32 %v1065_v12  ;;  %v2337_v26 = vadd.f32 %v6137_v6, %v2229_v44  ;;  %v2030_v57 = vmul.f32 %v4541_v7, %v1921_v47  ;;  %v558_v24 = vadd.f32 %v5009_v49, %v4550_v4  ;;  %v6221_v7 = vld [vmem:[#allocation52_spill] sm:$0xff]  ;;  %v6224_v55 = vld [vmem:[#allocation34_spill] sm:$0xff] }
 0x162   : > { %3395 = vpow2.f32 %v1019_v30  ;;  %v2338_v56 = vadd.f32 %v6145_v16, %v2230_v59  ;;  %v5407_v32 = vadd.f32 %v2028_v60, %v6219_v27  ;;  %v5410_v12 = vadd.f32 %v2029_v10, %v6220_v8  ;;  %v6226_v31 = vld [vmem:[#allocation98_spill] sm:$0xff] }
 0x163   : > { %v2433_v48 = vmul.f32 %v5360_v40, %v2337_v26  ;;  %v5414_v51 = vadd.f32 %v2030_v57, %v6221_v7  ;;  %v946_v49 = vsub.f32 0.0, %v558_v24  ;;  %2544 = vst [vmem:[%s4822_s24 + $0x48] sm:$0xff] %v558_v24  ;;  %v776_v47 = vadd.f32 %v6223_v22, %v6208_v11  ;;  %v5430_v57 = vpop.f32.mrb[45].mxu1 }
 0x164   : > { %v2434_v30 = vmul.f32 %v3374_v13, %v2338_v56  ;;  %v560_v19 = vadd.f32 %v6224_v55, %v6094_v17  ;;  %v771_v58 = vadd.f32 %v6225_v45, %v6208_v11  ;;  %v564_v40 = vadd.f32 %v6226_v31, %v4550_v4  ;;  %v6227_v13 = vld [vmem:[#allocation99_spill] sm:$0xff] }
 0x165   : > { %6222 = vst [vmem:[#allocation72_spill] sm:$0xff] %v5414_v51  ;;  %v3382_v44 = vpop.eup %3381  ;;  %v2529_v59 = vadd.f32 %v2433_v48, %v2121_v14  ;;  %v1069_v60 = vmul.f32 1.442695, %v946_v49  ;;  %v930_v10 = vsub.f32 0.0, %v776_v47  ;;  %3038 = vst [vmem:[%s4822_s24 + $0x218] sm:$0xff] %v776_v47  ;;  %v786_v26 = vadd.f32 %v6227_v13, %v6208_v11  ;;  %v6229_v13 = vld [vmem:[#allocation100_spill] sm:$0xff] }
 0x166   : > { %v3384_v24 = vpop.eup %3383  ;;  %v1231_v56 = vadd.f32 1.0, %v3382_v44  ;;  %v2530_v27 = vadd.f32 %v2434_v30, %v2122_v29  ;;  %v947_v8 = vsub.f32 0.0, %v560_v19  ;;  %2980 = vst [vmem:[%s4822_s24 + $0x148] sm:$0xff] %v560_v19  ;;  %v927_v7 = vsub.f32 0.0, %v771_v58  ;;  %3037 = vst [vmem:[%s4822_s24 + $0x210] sm:$0xff] %v771_v58  ;;  %v5441_v44 = vpop.f32.mrb[46].mxu0 }
 0x167   : > { %2545 = vst [vmem:[%s4822_s24 + $0x50] sm:$0xff] %v564_v40  ;;  %v3386_v14 = vpop.eup %3385  ;;  %v2160_v48 = vmul.f32 %v3384_v24, %v6131_v61  ;;  %2597 = vst [vmem:[%s5028_s25 + $0xf0] sm:$0xff] %v2529_v59  ;;  %3397 = vpow2.f32 %v1069_v60  ;;  %v1037_v49 = vmul.f32 1.442695, %v930_v10  ;;  %v949_v22 = vsub.f32 0.0, %v564_v40  ;;  %v5443_v59 = vpop.f32.mrb[46].mxu1 }
 0x168   : > { %3040 = vst [vmem:[%s4822_s24 + $0x228] sm:$0xff] %v786_v26  ;;  %v3388_v47 = vpop.eup %3387  ;;  %3399 = vrcp.f32 %v1231_v56  ;;  %v1212_v55 = vadd.f32 1.0, %v3386_v14  ;;  %3033 = vst [vmem:[%s5028_s25 + $0x1f0] sm:$0xff] %v2530_v27  ;;  %v1071_v45 = vmul.f32 1.442695, %v947_v8  ;;  %v936_v10 = vsub.f32 0.0, %v786_v26 }
 0x169   : > { %v1031_v29 = vmul.f32 1.442695, %v927_v7  ;;  %v3390_v30 = vpop.eup %3389  ;;  %v2268_v19 = vadd.f32 %v6137_v6, %v2160_v48  ;;  %v2232_v58 = vmul.f32 %v3388_v47, %v6131_v61  ;;  %3401 = vpow2.f32 %v1037_v49  ;;  %6228 = vst [vmem:[#allocation73_spill] sm:$0xff] %v5443_v59  ;;  %v5448_v27 = vpop.f32.mrb[47].mxu0 }
 0x16a   : > { %v1075_v31 = vmul.f32 1.442695, %v949_v22  ;;  %v3392_v60 = vpop.eup %3391  ;;  %v2161_v40 = vmul.f32 %v3390_v30, %v6142_v2  ;;  %3403 = vrcp.f32 %v1212_v55  ;;  %v566_v56 = vadd.f32 %v6229_v13, %v6094_v17  ;;  %6230 = vst [vmem:[#allocation48_spill] sm:$0xff] %v5448_v27  ;;  %v5450_v8 = vpop.f32.mrb[47].mxu1  ;;  %v6232_v13 = vld [vmem:[#allocation80_spill] sm:$0xff] }
 0x16b   : > { %6231 = vst [vmem:[#allocation69_spill] sm:$0xff] %v5450_v8  ;;  %v3394_v7 = vpop.eup %3393  ;;  %v2364_v14 = vmul.f32 %v3384_v24, %v2268_v19  ;;  %v2233_v48 = vmul.f32 %v3392_v60, %v6142_v2  ;;  %v2340_v49 = vadd.f32 %v6137_v6, %v2232_v58  ;;  %3405 = vpow2.f32 %v1071_v45  ;;  %v6233_v45 = vld [vmem:[#allocation101_spill] sm:$0xff] }
 0x16c   : > { %v3396_v22 = vpop.eup %3395  ;;  %v2269_v3 = vadd.f32 %v6145_v16, %v2161_v40  ;;  %v1232_v55 = vadd.f32 1.0, %v3394_v7  ;;  %3407 = vpow2.f32 %v1031_v29  ;;  %v1049_v26 = vmul.f32 1.442695, %v936_v10  ;;  %2981 = vst [vmem:[%s4822_s24 + $0x150] sm:$0xff] %v566_v56  ;;  %v6234_v10 = vld [vmem:[#allocation102_spill] sm:$0xff] }
 0x16d   : > { %v2460_v51 = vadd.f32 %v2364_v14, %v6232_v13  ;;  %v1209_v27 = vadd.f32 1.0, %v3396_v22  ;;  %v2341_v8 = vadd.f32 %v6145_v16, %v2233_v48  ;;  %v2436_v24 = vmul.f32 %v3388_v47, %v2340_v49  ;;  %v6235_v14 = vld [vmem:[#allocation81_spill] sm:$0xff] }
 0x16e   : > { %v2365_v19 = vmul.f32 %v3390_v30, %v2269_v3  ;;  %3409 = vrcp.f32 %v1232_v55  ;;  %v950_v58 = vsub.f32 0.0, %v566_v56  ;;  %v781_v59 = vadd.f32 %v6233_v45, %v6208_v11 }
 0x16f   : > { %2574 = vst [vmem:[%s5028_s25 + $0x38] sm:$0xff] %v2460_v51  ;;  %3411 = vrcp.f32 %v1209_v27  ;;  %v2437_v29 = vmul.f32 %v3392_v60, %v2341_v8  ;;  %v2532_v40 = vadd.f32 %v2436_v24, %v5407_v32  ;;  %v570_v7 = vadd.f32 %v6234_v10, %v4550_v4  ;;  %v6236_v32 = vld [vmem:[#allocation103_spill] sm:$0xff] }
 0x170   : > { %v2461_v48 = vadd.f32 %v2365_v19, %v6235_v14  ;;  %3413 = vpow2.f32 %v1075_v31  ;;  %v1077_v3 = vmul.f32 1.442695, %v950_v58  ;;  %v933_v47 = vsub.f32 0.0, %v781_v59  ;;  %3039 = vst [vmem:[%s4822_s24 + $0x220] sm:$0xff] %v781_v59 }
 0x171   : > { %v3398_v30 = vpop.eup %3397  ;;  %v2533_v56 = vadd.f32 %v2437_v29, %v5410_v12  ;;  %2598 = vst [vmem:[%s5028_s25 + $0xf8] sm:$0xff] %v2532_v40  ;;  %3415 = vpow2.f32 %v1049_v26  ;;  %v952_v51 = vsub.f32 0.0, %v570_v7  ;;  %2546 = vst [vmem:[%s4822_s24 + $0x58] sm:$0xff] %v570_v7  ;;  %v796_v60 = vadd.f32 %v6236_v32, %v6208_v11  ;;  %v6237_v29 = vld [vmem:[#allocation95_spill] sm:$0xff] }
 0x172   : > { %v3400_v27 = vpop.eup %3399  ;;  %3010 = vst [vmem:[%s5028_s25 + $0x138] sm:$0xff] %v2461_v48  ;;  %v1234_v8 = vadd.f32 1.0, %v3398_v30  ;;  %3417 = vpow2.f32 %v1077_v3  ;;  %v1043_v31 = vmul.f32 1.442695, %v933_v47  ;;  %v572_v59 = vadd.f32 %v5061_v39, %v6094_v17  ;;  %v6238_v47 = vld [vmem:[#allocation96_spill] sm:$0xff] }
 0x173   : > { %v3402_v49 = vpop.eup %3401  ;;  %v2163_v12 = vmul.f32 %v3400_v27, %v6131_v61  ;;  %3034 = vst [vmem:[%s5028_s25 + $0x1f8] sm:$0xff] %v2533_v56  ;;  %v1081_v22 = vmul.f32 1.442695, %v952_v51  ;;  %v942_v55 = vsub.f32 0.0, %v796_v60  ;;  %3042 = vst [vmem:[%s4822_s24 + $0x238] sm:$0xff] %v796_v60  ;;  %v791_v26 = vadd.f32 %v5064_v33, %v6208_v11 }
 0x174   : > { %v3404_v13 = vpop.eup %3403  ;;  %3419 = vrcp.f32 %v1234_v8  ;;  %v1218_v24 = vadd.f32 1.0, %v3402_v49  ;;  %v953_v19 = vsub.f32 0.0, %v572_v59  ;;  %2982 = vst [vmem:[%s4822_s24 + $0x158] sm:$0xff] %v572_v59  ;;  %v576_v39 = vadd.f32 %v5078_v53, %v4550_v4 }
 0x175   : > { %v3406_v58 = vpop.eup %3405  ;;  %v2271_v45 = vadd.f32 %v6137_v6, %v2163_v12  ;;  %v2144_v40 = vmul.f32 %v3404_v13, %v6237_v29  ;;  %3421 = vpow2.f32 %v1043_v31  ;;  %v1061_v10 = vmul.f32 1.442695, %v942_v55  ;;  %3041 = vst [vmem:[%s4822_s24 + $0x230] sm:$0xff] %v791_v26  ;;  %v6239_v31 = vld [vmem:[#allocation83_spill] sm:$0xff] }
 0x176   : > { %v3408_v7 = vpop.eup %3407  ;;  %3423 = vrcp.f32 %v1218_v24  ;;  %v1235_v33 = vadd.f32 1.0, %v3406_v58  ;;  %v1083_v14 = vmul.f32 1.442695, %v953_v19  ;;  %v939_v48 = vsub.f32 0.0, %v791_v26  ;;  %2547 = vst [vmem:[%s4822_s24 + $0x60] sm:$0xff] %v576_v39  ;;  %v6240_v19 = vld [vmem:[#allocation61_spill] sm:$0xff] }
 0x177   : > { %v2367_v3 = vmul.f32 %v3400_v27, %v2271_v45  ;;  %v2252_v30 = vadd.f32 %v6238_v47, %v2144_v40  ;;  %v1215_v56 = vadd.f32 1.0, %v3408_v7  ;;  %3425 = vpow2.f32 %v1081_v22 }
 0x178   : > { %v3410_v53 = vpop.eup %3409  ;;  %3427 = vrcp.f32 %v1235_v33  ;;  %v1055_v51 = vmul.f32 1.442695, %v939_v48  ;;  %v955_v32 = vsub.f32 0.0, %v576_v39  ;;  %v806_v60 = vadd.f32 %v5085_v1, %v6208_v11 }
 0x179   : > { %v3412_v8 = vpop.eup %3411  ;;  %v2463_v59 = vadd.f32 %v2367_v3, %v6239_v31  ;;  %v2348_v49 = vmul.f32 %v3404_v13, %v2252_v30  ;;  %v2164_v12 = vmul.f32 %v3410_v53, %v6142_v2  ;;  %3429 = vrcp.f32 %v1215_v56 }
 0x17a   : > { %v3414_v27 = vpop.eup %3413  ;;  %v2141_v55 = vmul.f32 %v3412_v8, %v6237_v29  ;;  %3431 = vpow2.f32 %v1061_v10  ;;  %v1087_v22 = vmul.f32 1.442695, %v955_v32  ;;  %v948_v26 = vsub.f32 0.0, %v806_v60  ;;  %3044 = vst [vmem:[%s4822_s24 + $0x248] sm:$0xff] %v806_v60  ;;  %v6242_v60 = vld [vmem:[#allocation84_spill] sm:$0xff] }
 0x17b   : > { %v3416_v24 = vpop.eup %3415  ;;  %2575 = vst [vmem:[%s5028_s25 + $0x40] sm:$0xff] %v2463_v59  ;;  %v2444_v39 = vadd.f32 %v2348_v49, %v6240_v19  ;;  %v2272_v1 = vadd.f32 %v6145_v16, %v2164_v12  ;;  %v1237_v58 = vadd.f32 1.0, %v3414_v27  ;;  %3433 = vpow2.f32 %v1083_v14  ;;  %v6241_v14 = vld [vmem:[#allocation104_spill] sm:$0xff] }
 0x17c   : > { %v3418_v13 = vpop.eup %3417  ;;  %v2249_v45 = vadd.f32 %v6238_v47, %v2141_v55  ;;  %v1224_v40 = vadd.f32 1.0, %v3416_v24  ;;  %3435 = vpow2.f32 %v1055_v51  ;;  %v1073_v7 = vmul.f32 1.442695, %v948_v26 }
 0x17d   : > { %3068 = vst [vmem:[%s5028_s25 + $0x208] sm:$0xff] %v2444_v39  ;;  %v2368_v10 = vmul.f32 %v3410_v53, %v2272_v1  ;;  %3437 = vrcp.f32 %v1237_v58  ;;  %v1238_v33 = vadd.f32 1.0, %v3418_v13  ;;  %v578_v48 = vadd.f32 %v5087_v23, %v6094_v17 }
 0x17e   : > { %v3420_v3 = vpop.eup %3419  ;;  %v2345_v30 = vmul.f32 %v3412_v8, %v2249_v45  ;;  %3439 = vrcp.f32 %v1224_v40  ;;  %v801_v56 = vadd.f32 %v6241_v14, %v6208_v11  ;;  %v582_v51 = vadd.f32 %v5111_v36, %v4550_v4  ;;  %v6243_v8 = vld [vmem:[#allocation64_spill] sm:$0xff] }
 0x17f   : > { %v3422_v32 = vpop.eup %3421  ;;  %v2464_v53 = vadd.f32 %v2368_v10, %v6242_v60  ;;  %v2166_v31 = vmul.f32 %v3420_v3, %v6131_v61  ;;  %3441 = vrcp.f32 %v1238_v33  ;;  %v956_v59 = vsub.f32 0.0, %v578_v48  ;;  %2983 = vst [vmem:[%s4822_s24 + $0x160] sm:$0xff] %v578_v48  ;;  %v6244_v48 = vld [vmem:[#allocation105_spill] sm:$0xff] }
 0x180   : > { %v3424_v23 = vpop.eup %3423  ;;  %v2441_v49 = vadd.f32 %v2345_v30, %v6243_v8  ;;  %v1221_v12 = vadd.f32 1.0, %v3422_v32  ;;  %3443 = vpow2.f32 %v1087_v22  ;;  %v945_v27 = vsub.f32 0.0, %v801_v56  ;;  %3043 = vst [vmem:[%s4822_s24 + $0x240] sm:$0xff] %v801_v56  ;;  %2548 = vst [vmem:[%s4822_s24 + $0x68] sm:$0xff] %v582_v51  ;;  %v6245_v56 = vld [vmem:[#allocation86_spill] sm:$0xff] }
 0x181   : > { %v3426_v55 = vpop.eup %3425  ;;  %3011 = vst [vmem:[%s5028_s25 + $0x140] sm:$0xff] %v2464_v53  ;;  %v2274_v36 = vadd.f32 %v6137_v6, %v2166_v31  ;;  %v2150_v26 = vmul.f32 %v3424_v23, %v6237_v29  ;;  %3445 = vpow2.f32 %v1073_v7  ;;  %v1089_v24 = vmul.f32 1.442695, %v956_v59 }
 0x182   : > { %v3428_v19 = vpop.eup %3427  ;;  %3067 = vst [vmem:[%s5028_s25 + $0x200] sm:$0xff] %v2441_v49  ;;  %3447 = vrcp.f32 %v1221_v12  ;;  %v1240_v39 = vadd.f32 1.0, %v3426_v55  ;;  %v1067_v1 = vmul.f32 1.442695, %v945_v27  ;;  %v958_v58 = vsub.f32 0.0, %v582_v51  ;;  %v6246_v12 = vld [vmem:[#allocation71_spill] sm:$0xff] }
 0x183   : > { %v3430_v13 = vpop.eup %3429  ;;  %v2370_v45 = vmul.f32 %v3420_v3, %v2274_v36  ;;  %v2258_v22 = vadd.f32 %v6238_v47, %v2150_v26  ;;  %v2167_v40 = vmul.f32 %v3428_v19, %v6142_v2  ;;  %3449 = vpow2.f32 %v1089_v24 }
 0x184   : > { %v3432_v10 = vpop.eup %3431  ;;  %v2147_v33 = vmul.f32 %v3430_v13, %v6237_v29  ;;  %3451 = vrcp.f32 %v1240_v39  ;;  %v1093_v7 = vmul.f32 1.442695, %v958_v58  ;;  %v816_v30 = vadd.f32 %v6244_v48, %v6208_v11 }
 0x185   : > { %v3434_v14 = vpop.eup %3433  ;;  %v2466_v51 = vadd.f32 %v2370_v45, %v6245_v56  ;;  %v2354_v32 = vmul.f32 %v3424_v23, %v2258_v22  ;;  %v2275_v3 = vadd.f32 %v6145_v16, %v2167_v40  ;;  %v1230_v60 = vadd.f32 1.0, %v3432_v10  ;;  %v6247_v45 = vld [vmem:[#allocation87_spill] sm:$0xff] }
 0x186   : > { %v3436_v53 = vpop.eup %3435  ;;  %v2255_v31 = vadd.f32 %v6238_v47, %v2147_v33  ;;  %v1241_v59 = vadd.f32 1.0, %v3434_v14  ;;  %3453 = vpow2.f32 %v1067_v1  ;;  %v954_v8 = vsub.f32 0.0, %v816_v30  ;;  %3046 = vst [vmem:[%s4822_s24 + $0x258] sm:$0xff] %v816_v30  ;;  %v6249_v33 = vld [vmem:[#allocation70_spill] sm:$0xff] }
 0x187   : > { %v3438_v49 = vpop.eup %3437  ;;  %2576 = vst [vmem:[%s5028_s25 + $0x48] sm:$0xff] %v2466_v51  ;;  %v2450_v27 = vadd.f32 %v2354_v32, %v6246_v12  ;;  %v2371_v55 = vmul.f32 %v3428_v19, %v2275_v3  ;;  %3455 = vrcp.f32 %v1230_v60  ;;  %v1227_v36 = vadd.f32 1.0, %v3436_v53  ;;  %v6248_v19 = vld [vmem:[#allocation106_spill] sm:$0xff] }
 0x188   : > { %v3440_v26 = vpop.eup %3439  ;;  %v2351_v23 = vmul.f32 %v3430_v13, %v2255_v31  ;;  %v2169_v24 = vmul.f32 %v3438_v49, %v6131_v61  ;;  %3457 = vrcp.f32 %v1241_v59  ;;  %v1085_v39 = vmul.f32 1.442695, %v954_v8  ;;  %v6250_v59 = vld [vmem:[#allocation107_spill] sm:$0xff] }
 0x189   : > { %v3442_v58 = vpop.eup %3441  ;;  %3070 = vst [vmem:[%s5028_s25 + $0x218] sm:$0xff] %v2450_v27  ;;  %v2467_v1 = vadd.f32 %v2371_v55, %v6247_v45  ;;  %v2156_v22 = vmul.f32 %v3440_v26, %v6237_v29  ;;  %3459 = vrcp.f32 %v1227_v36  ;;  %v584_v40 = vadd.f32 %v6248_v19, %v6094_v17  ;;  %v6252_v45 = vld [vmem:[#allocation76_spill] sm:$0xff] }
 0x18a   : > { %v3444_v10 = vpop.eup %3443  ;;  %v2447_v13 = vadd.f32 %v2351_v23, %v6249_v33  ;;  %v2277_v48 = vadd.f32 %v6137_v6, %v2169_v24  ;;  %v2170_v30 = vmul.f32 %v3442_v58, %v6142_v2  ;;  %3461 = vpow2.f32 %v1093_v7  ;;  %v6251_v23 = vld [vmem:[#allocation89_spill] sm:$0xff] }
 0x18b   : > { %v3446_v14 = vpop.eup %3445  ;;  %3012 = vst [vmem:[%s5028_s25 + $0x148] sm:$0xff] %v2467_v1  ;;  %v2264_v56 = vadd.f32 %v6238_v47, %v2156_v22  ;;  %v1243_v51 = vadd.f32 1.0, %v3444_v10  ;;  %3463 = vpow2.f32 %v1085_v39  ;;  %v959_v32 = vsub.f32 0.0, %v584_v40  ;;  %2984 = vst [vmem:[%s4822_s24 + $0x168] sm:$0xff] %v584_v40  ;;  %v6253_v40 = vld [vmem:[#allocation90_spill] sm:$0xff] }
 0x18c   : > { %v3448_v3 = vpop.eup %3447  ;;  %3069 = vst [vmem:[%s5028_s25 + $0x210] sm:$0xff] %v2447_v13  ;;  %v2373_v60 = vmul.f32 %v3438_v49, %v2277_v48  ;;  %v2278_v53 = vadd.f32 %v6145_v16, %v2170_v30  ;;  %v1236_v31 = vadd.f32 1.0, %v3446_v14  ;;  %v811_v8 = vadd.f32 %v6250_v59, %v6208_v11 }
 0x18d   : > { %v3450_v12 = vpop.eup %3449  ;;  %v2360_v7 = vmul.f32 %v3440_v26, %v2264_v56  ;;  %v2153_v27 = vmul.f32 %v3448_v3, %v6237_v29  ;;  %3465 = vrcp.f32 %v1243_v51  ;;  %v1095_v55 = vmul.f32 1.442695, %v959_v32  ;;  %v6255_v51 = vld [vmem:[#allocation109_spill] sm:$0xff] }
 0x18e   : > { %v3452_v36 = vpop.eup %3451  ;;  %v2469_v24 = vadd.f32 %v2373_v60, %v6251_v23  ;;  %v2374_v39 = vmul.f32 %v3442_v58, %v2278_v53  ;;  %3467 = vrcp.f32 %v1236_v31  ;;  %v1244_v49 = vadd.f32 1.0, %v3450_v12  ;;  %3045 = vst [vmem:[%s4822_s24 + $0x250] sm:$0xff] %v811_v8  ;;  %v6254_v58 = vld [vmem:[#allocation108_spill] sm:$0xff] }
 0x18f   : > { %v2456_v1 = vadd.f32 %v2360_v7, %v6252_v45  ;;  %v2261_v22 = vadd.f32 %v6238_v47, %v2153_v27  ;;  %v2172_v19 = vmul.f32 %v3452_v36, %v6131_v61  ;;  %3469 = vpow2.f32 %v1095_v55  ;;  %v6257_v7 = vld [vmem:[#allocation75_spill] sm:$0xff] }
 0x190   : > { %v3454_v26 = vpop.eup %3453  ;;  %2577 = vst [vmem:[%s5028_s25 + $0x50] sm:$0xff] %v2469_v24  ;;  %v2470_v10 = vadd.f32 %v2374_v39, %v6253_v40  ;;  %3471 = vrcp.f32 %v1244_v49  ;;  %v951_v33 = vsub.f32 0.0, %v811_v8  ;;  %v588_v13 = vadd.f32 %v6254_v58, %v4550_v4  ;;  %v6256_v8 = vld [vmem:[#allocation110_spill] sm:$0xff] }
 0x191   : > { %v3456_v48 = vpop.eup %3455  ;;  %3072 = vst [vmem:[%s5028_s25 + $0x228] sm:$0xff] %v2456_v1  ;;  %v2357_v30 = vmul.f32 %v3448_v3, %v2261_v22  ;;  %v2280_v14 = vadd.f32 %v6137_v6, %v2172_v19  ;;  %v1233_v56 = vadd.f32 1.0, %v3454_v26  ;;  %v826_v32 = vadd.f32 %v6255_v51, %v6208_v11  ;;  %v6258_v22 = vld [vmem:[#allocation92_spill] sm:$0xff] }
 0x192   : > { %v3458_v60 = vpop.eup %3457  ;;  %3013 = vst [vmem:[%s5028_s25 + $0x150] sm:$0xff] %v2470_v10  ;;  %v2162_v53 = vmul.f32 %v3456_v48, %v6237_v29  ;;  %v1079_v31 = vmul.f32 1.442695, %v951_v33  ;;  %v961_v59 = vsub.f32 0.0, %v588_v13  ;;  %2549 = vst [vmem:[%s4822_s24 + $0x70] sm:$0xff] %v588_v13  ;;  %v590_v12 = vadd.f32 %v6256_v8, %v6094_v17 }
 0x193   : > { %v3460_v3 = vpop.eup %3459  ;;  %v2453_v27 = vadd.f32 %v2357_v30, %v6257_v7  ;;  %v2376_v55 = vmul.f32 %v3452_v36, %v2280_v14  ;;  %v2173_v23 = vmul.f32 %v3458_v60, %v6142_v2  ;;  %3473 = vrcp.f32 %v1233_v56  ;;  %3048 = vst [vmem:[%s4822_s24 + $0x268] sm:$0xff] %v826_v32 }
 0x194   : > { %v3462_v24 = vpop.eup %3461  ;;  %v2270_v39 = vadd.f32 %v6238_v47, %v2162_v53  ;;  %v2159_v49 = vmul.f32 %v3460_v3, %v6237_v29  ;;  %3475 = vpow2.f32 %v1079_v31  ;;  %v1099_v45 = vmul.f32 1.442695, %v961_v59  ;;  %2985 = vst [vmem:[%s4822_s24 + $0x170] sm:$0xff] %v590_v12  ;;  %v6259_v53 = vld [vmem:[#allocation82_spill] sm:$0xff] }
 0x195   : > { %v3464_v1 = vpop.eup %3463  ;;  %3071 = vst [vmem:[%s5028_s25 + $0x220] sm:$0xff] %v2453_v27  ;;  %v2472_v19 = vadd.f32 %v2376_v55, %v6258_v22  ;;  %v2281_v26 = vadd.f32 %v6145_v16, %v2173_v23  ;;  %v1246_v36 = vadd.f32 1.0, %v3462_v24  ;;  %v960_v40 = vsub.f32 0.0, %v826_v32  ;;  %v6260_v32 = vld [vmem:[#allocation93_spill] sm:$0xff]  ;;  %v6263_v22 = vld [vmem:[#allocation112_spill] sm:$0xff] }
 0x196   : > { %v2366_v10 = vmul.f32 %v3456_v48, %v2270_v39  ;;  %v2267_v33 = vadd.f32 %v6238_v47, %v2159_v49  ;;  %v1242_v58 = vadd.f32 1.0, %v3464_v1  ;;  %3477 = vpow2.f32 %v1099_v45 }
 0x197   : > { %v3466_v13 = vpop.eup %3465  ;;  %2578 = vst [vmem:[%s5028_s25 + $0x58] sm:$0xff] %v2472_v19  ;;  %v2377_v30 = vmul.f32 %v3458_v60, %v2281_v26  ;;  %3479 = vrcp.f32 %v1246_v36  ;;  %v1097_v14 = vmul.f32 1.442695, %v960_v40  ;;  %v962_v56 = vsub.f32 0.0, %v590_v12  ;;  %v6261_v12 = vld [vmem:[#allocation79_spill] sm:$0xff]  ;;  %v6264_v40 = vld [vmem:[#allocation113_spill] sm:$0xff] }
 0x198   : > { %v3468_v51 = vpop.eup %3467  ;;  %v2462_v31 = vadd.f32 %v2366_v10, %v6259_v53  ;;  %v2363_v59 = vmul.f32 %v3460_v3, %v2267_v33  ;;  %v2175_v8 = vmul.f32 %v3466_v13, %v6131_v61  ;;  %3481 = vrcp.f32 %v1242_v58  ;;  %v6262_v3 = vld [vmem:[#allocation111_spill] sm:$0xff] }
 0x199   : > { %v3470_v48 = vpop.eup %3469  ;;  %v2473_v7 = vadd.f32 %v2377_v30, %v6260_v32  ;;  %v2168_v27 = vmul.f32 %v3468_v51, %v6237_v29  ;;  %3483 = vpow2.f32 %v1097_v14  ;;  %v1101_v55 = vmul.f32 1.442695, %v962_v56  ;;  %v6265_v56 = vld [vmem:[#allocation114_spill] sm:$0xff] }
 0x19a   : > { %v3472_v60 = vpop.eup %3471  ;;  %3074 = vst [vmem:[%s5028_s25 + $0x238] sm:$0xff] %v2462_v31  ;;  %v2459_v23 = vadd.f32 %v2363_v59, %v6261_v12  ;;  %v2283_v24 = vadd.f32 %v6137_v6, %v2175_v8  ;;  %v1247_v39 = vadd.f32 1.0, %v3470_v48  ;;  %v821_v49 = vadd.f32 %v6262_v3, %v6208_v11 }
 0x19b   : > { %3014 = vst [vmem:[%s5028_s25 + $0x158] sm:$0xff] %v2473_v7  ;;  %v2276_v45 = vadd.f32 %v6238_v47, %v2168_v27  ;;  %v2176_v1 = vmul.f32 %v3472_v60, %v6142_v2  ;;  %3485 = vpow2.f32 %v1101_v55  ;;  %v594_v19 = vadd.f32 %v6263_v22, %v4550_v4  ;;  %v6267_v7 = vld [vmem:[#allocation88_spill] sm:$0xff] }
 0x19c   : > { %3073 = vst [vmem:[%s5028_s25 + $0x230] sm:$0xff] %v2459_v23  ;;  %v2379_v26 = vmul.f32 %v3466_v13, %v2283_v24  ;;  %3487 = vrcp.f32 %v1247_v39  ;;  %v957_v36 = vsub.f32 0.0, %v821_v49  ;;  %3047 = vst [vmem:[%s4822_s24 + $0x260] sm:$0xff] %v821_v49  ;;  %v836_v10 = vadd.f32 %v6264_v40, %v6208_v11  ;;  %v6266_v13 = vld [vmem:[#allocation11_spill] sm:$0xff] }
 0x19d   : > { %v3474_v33 = vpop.eup %3473  ;;  %v2372_v58 = vmul.f32 %v3468_v51, %v2276_v45  ;;  %v2284_v30 = vadd.f32 %v6145_v16, %v2176_v1  ;;  %v964_v14 = vsub.f32 0.0, %v594_v19  ;;  %2550 = vst [vmem:[%s4822_s24 + $0x78] sm:$0xff] %v594_v19  ;;  %v596_v53 = vadd.f32 %v6265_v56, %v6094_v17  ;;  %v6268_v45 = vld [vmem:[#allocation12_spill] sm:$0xff] }
 0x19e   : > { %v3476_v31 = vpop.eup %3475  ;;  %v2475_v59 = vadd.f32 %v2379_v26, %v6266_v13  ;;  %v2165_v8 = vmul.f32 %v3474_v33, %v6237_v29  ;;  %v1091_v48 = vmul.f32 1.442695, %v957_v36  ;;  %v966_v32 = vsub.f32 0.0, %v836_v10  ;;  %3050 = vst [vmem:[%s4822_s24 + $0x278] sm:$0xff] %v836_v10 }
 0x19f   : > { %v2468_v27 = vadd.f32 %v2372_v58, %v6267_v7  ;;  %v2380_v51 = vmul.f32 %v3472_v60, %v2284_v30  ;;  %v1239_v55 = vadd.f32 1.0, %v3476_v31  ;;  %v1105_v12 = vmul.f32 1.442695, %v964_v14  ;;  %2986 = vst [vmem:[%s4822_s24 + $0x178] sm:$0xff] %v596_v53  ;;  %v6269_v60 = vld [vmem:[#allocation115_spill] sm:$0xff] }
 0x1a0   : > { %v3478_v23 = vpop.eup %3477  ;;  %2579 = vst [vmem:[%s5028_s25 + $0x60] sm:$0xff] %v2475_v59  ;;  %v2273_v24 = vadd.f32 %v6238_v47, %v2165_v8  ;;  %3489 = vpow2.f32 %v1091_v48  ;;  %v1109_v39 = vmul.f32 1.442695, %v966_v32  ;;  %v965_v3 = vsub.f32 0.0, %v596_v53  ;;  %v6270_v53 = vld [vmem:[#allocation85_spill] sm:$0xff] }
 0x1a1   : > { %v3480_v49 = vpop.eup %3479  ;;  %3076 = vst [vmem:[%s5028_s25 + $0x248] sm:$0xff] %v2468_v27  ;;  %v2476_v1 = vadd.f32 %v2380_v51, %v6268_v45  ;;  %3491 = vrcp.f32 %v1239_v55  ;;  %v1249_v22 = vadd.f32 1.0, %v3478_v23  ;;  %v831_v19 = vadd.f32 %v6269_v60, %v6208_v11  ;;  %v6272_v45 = vld [vmem:[#allocation94_spill] sm:$0xff] }
 0x1a2   : > { %v3482_v26 = vpop.eup %3481  ;;  %v2369_v36 = vmul.f32 %v3474_v33, %v2273_v24  ;;  %v2178_v40 = vmul.f32 %v3480_v49, %v6131_v61  ;;  %3493 = vpow2.f32 %v1105_v12  ;;  %v1107_v10 = vmul.f32 1.442695, %v965_v3  ;;  %v6271_v24 = vld [vmem:[#allocation8_spill] sm:$0xff] }
 0x1a3   : > { %v3484_v58 = vpop.eup %3483  ;;  %3015 = vst [vmem:[%s5028_s25 + $0x160] sm:$0xff] %v2476_v1  ;;  %v2174_v30 = vmul.f32 %v3482_v26, %v6237_v29  ;;  %3495 = vrcp.f32 %v1249_v22  ;;  %v963_v14 = vsub.f32 0.0, %v831_v19  ;;  %3049 = vst [vmem:[%s4822_s24 + $0x270] sm:$0xff] %v831_v19  ;;  %v600_v56 = vadd.f32 %v5185_v28, %v4550_v4 }
 0x1a4   : > { %v2465_v31 = vadd.f32 %v2369_v36, %v6270_v53  ;;  %v2286_v33 = vadd.f32 %v6137_v6, %v2178_v40  ;;  %v1248_v13 = vadd.f32 1.0, %v3484_v58  ;;  %3497 = vpow2.f32 %v1109_v39 }
 0x1a5   : > { %v3486_v59 = vpop.eup %3485  ;;  %v2282_v8 = vadd.f32 %v6238_v47, %v2174_v30  ;;  %3499 = vpow2.f32 %v1107_v10  ;;  %v1103_v48 = vmul.f32 1.442695, %v963_v14  ;;  %v967_v32 = vsub.f32 0.0, %v600_v56  ;;  %2551 = vst [vmem:[%s4822_s24 + $0x80] sm:$0xff] %v600_v56 }
 0x1a6   : > { %v3488_v7 = vpop.eup %3487  ;;  %3075 = vst [vmem:[%s5028_s25 + $0x240] sm:$0xff] %v2465_v31  ;;  %v2382_v27 = vmul.f32 %v3480_v49, %v2286_v33  ;;  %3501 = vrcp.f32 %v1248_v13  ;;  %v1250_v51 = vadd.f32 1.0, %v3486_v59  ;;  %v846_v28 = vadd.f32 %v5187_v41, %v6208_v11  ;;  %v6273_v31 = vld [vmem:[#allocation9_spill] sm:$0xff] }
 0x1a7   : > { %v2378_v55 = vmul.f32 %v3482_v26, %v2282_v8  ;;  %v2179_v12 = vmul.f32 %v3488_v7, %v6142_v2  ;;  %3503 = vpow2.f32 %v1103_v48  ;;  %v1111_v23 = vmul.f32 1.442695, %v967_v32 }
 0x1a8   : > { %v2478_v39 = vadd.f32 %v2382_v27, %v6271_v24  ;;  %3505 = vrcp.f32 %v1250_v51  ;;  %v972_v3 = vsub.f32 0.0, %v846_v28  ;;  %3052 = vst [vmem:[%s4822_s24 + $0x288] sm:$0xff] %v846_v28  ;;  %v602_v49 = vadd.f32 %v5192_v42, %v6094_v17 }
 0x1a9   : > { %v2474_v1 = vadd.f32 %v2378_v55, %v6272_v45  ;;  %v2287_v41 = vadd.f32 %v6145_v16, %v2179_v12  ;;  %3507 = vpow2.f32 %v1111_v23  ;;  %v841_v22 = vadd.f32 %v5194_v52, %v6208_v11 }
 0x1aa   : > { %v3490_v60 = vpop.eup %3489  ;;  %2580 = vst [vmem:[%s5028_s25 + $0x68] sm:$0xff] %v2478_v39  ;;  %v1121_v19 = vmul.f32 1.442695, %v972_v3  ;;  %v968_v26 = vsub.f32 0.0, %v602_v49  ;;  %2987 = vst [vmem:[%s4822_s24 + $0x180] sm:$0xff] %v602_v49  ;;  %v606_v36 = vadd.f32 %v5212_v35, %v4550_v4  ;;  %v856_v42 = vadd.f32 %v5214_v0, %v6208_v11 }
 0x1ab   : > { %v3492_v40 = vpop.eup %3491  ;;  %3078 = vst [vmem:[%s5028_s25 + $0x258] sm:$0xff] %v2474_v1  ;;  %v2383_v10 = vmul.f32 %v3488_v7, %v2287_v41  ;;  %v1245_v58 = vadd.f32 1.0, %v3490_v60  ;;  %v969_v30 = vsub.f32 0.0, %v841_v22  ;;  %3051 = vst [vmem:[%s4822_s24 + $0x280] sm:$0xff] %v841_v22  ;;  %v608_v52 = vadd.f32 %v5217_v5, %v6094_v17  ;;  %v6274_v41 = vld [vmem:[#allocation91_spill] sm:$0xff] }
 0x1ac   : > { %v3494_v14 = vpop.eup %3493  ;;  %v2171_v56 = vmul.f32 %v3492_v40, %v6237_v29  ;;  %3509 = vpow2.f32 %v1121_v19  ;;  %v1113_v53 = vmul.f32 1.442695, %v968_v26  ;;  %v970_v35 = vsub.f32 0.0, %v606_v36  ;;  %2552 = vst [vmem:[%s4822_s24 + $0x88] sm:$0xff] %v606_v36  ;;  %3054 = vst [vmem:[%s4822_s24 + $0x298] sm:$0xff] %v856_v42 }
 0x1ad   : > { %v3496_v0 = vpop.eup %3495  ;;  %v2479_v33 = vadd.f32 %v2383_v10, %v6273_v31  ;;  %3511 = vrcp.f32 %v1245_v58  ;;  %v1252_v13 = vadd.f32 1.0, %v3494_v14  ;;  %v1115_v59 = vmul.f32 1.442695, %v969_v30  ;;  %2988 = vst [vmem:[%s4822_s24 + $0x188] sm:$0xff] %v608_v52  ;;  %v6275_v10 = vld [vmem:[#allocation58_spill] sm:$0xff]  ;;  %v6276_v31 = vld [vmem:[#allocation63_spill] sm:$0xff] }
 0x1ae   : > { %v3498_v8 = vpop.eup %3497  ;;  %v2279_v48 = vadd.f32 %v6238_v47, %v2171_v56  ;;  %v2181_v5 = vmul.f32 %v3496_v0, %v6131_v61  ;;  %3513 = vpow2.f32 %v1113_v53  ;;  %v1117_v32 = vmul.f32 1.442695, %v970_v35 }
 0x1af   : > { %v3500_v7 = vpop.eup %3499  ;;  %3016 = vst [vmem:[%s5028_s25 + $0x168] sm:$0xff] %v2479_v33  ;;  %3515 = vrcp.f32 %v1252_v13  ;;  %v1254_v27 = vadd.f32 1.0, %v3498_v8  ;;  %v978_v51 = vsub.f32 0.0, %v856_v42  ;;  %v971_v28 = vsub.f32 0.0, %v608_v52  ;;  %v6277_v13 = vld [vmem:[#allocation10_spill] sm:$0xff] }
 0x1b0   : > { %v3502_v55 = vpop.eup %3501  ;;  %v2375_v12 = vmul.f32 %v3492_v40, %v2279_v48  ;;  %v2289_v23 = vadd.f32 %v6137_v6, %v2181_v5  ;;  %v1253_v24 = vadd.f32 1.0, %v3500_v7  ;;  %3517 = vpow2.f32 %v1115_v59 }
 0x1b1   : > { %v3504_v39 = vpop.eup %3503  ;;  %v2180_v3 = vmul.f32 %v3502_v55, %v6237_v29  ;;  %3519 = vrcp.f32 %v1254_v27  ;;  %v1133_v49 = vmul.f32 1.442695, %v978_v51  ;;  %v1119_v45 = vmul.f32 1.442695, %v971_v28 }
 0x1b2   : > { %v3506_v1 = vpop.eup %3505  ;;  %v2471_v22 = vadd.f32 %v2375_v12, %v6274_v41  ;;  %v2385_v60 = vmul.f32 %v3496_v0, %v2289_v23  ;;  %3521 = vrcp.f32 %v1253_v24  ;;  %v1251_v19 = vadd.f32 1.0, %v3504_v39 }
 0x1b3   : > { %v3508_v26 = vpop.eup %3507  ;;  %v2288_v36 = vadd.f32 %v6238_v47, %v2180_v3  ;;  %v2182_v42 = vmul.f32 %v3506_v1, %v6142_v2  ;;  %3523 = vpow2.f32 %v1117_v32  ;;  %v851_v40 = vadd.f32 %v5219_v54, %v6208_v11 }
 0x1b4   : > { %3077 = vst [vmem:[%s5028_s25 + $0x250] sm:$0xff] %v2471_v22  ;;  %v2481_v58 = vadd.f32 %v2385_v60, %v6275_v10  ;;  %3525 = vrcp.f32 %v1251_v19  ;;  %v1255_v30 = vadd.f32 1.0, %v3508_v26  ;;  %v612_v52 = vadd.f32 %v5229_v18, %v4550_v4  ;;  %v6279_v22 = vld [vmem:[#allocation44_spill] sm:$0xff] }
 0x1b5   : > { %v2384_v14 = vmul.f32 %v3502_v55, %v2288_v36  ;;  %v2290_v56 = vadd.f32 %v6145_v16, %v2182_v42  ;;  %3527 = vpow2.f32 %v1133_v49  ;;  %v975_v53 = vsub.f32 0.0, %v851_v40  ;;  %3053 = vst [vmem:[%s4822_s24 + $0x290] sm:$0xff] %v851_v40 }
 0x1b6   : > { %v3510_v35 = vpop.eup %3509  ;;  %2581 = vst [vmem:[%s5028_s25 + $0x70] sm:$0xff] %v2481_v58  ;;  %3529 = vrcp.f32 %v1255_v30  ;;  %v973_v54 = vsub.f32 0.0, %v612_v52  ;;  %2553 = vst [vmem:[%s4822_s24 + $0x90] sm:$0xff] %v612_v52  ;;  %v866_v0 = vadd.f32 %v5231_v63, %v6208_v11  ;;  %v614_v18 = vadd.f32 %v6276_v31, %v6094_v17  ;;  %v6278_v63 = vld [vmem:[#allocation17_spill] sm:$0xff]  ;;  %v6280_v30 = vld [vmem:[#allocation68_spill] sm:$0xff] }
 0x1b7   : > { %v3512_v33 = vpop.eup %3511  ;;  %v2480_v59 = vadd.f32 %v2384_v14, %v6277_v13  ;;  %v2386_v8 = vmul.f32 %v3506_v1, %v2290_v56  ;;  %v1260_v48 = vadd.f32 1.0, %v3510_v35  ;;  %3531 = vpow2.f32 %v1119_v45  ;;  %v6281_v56 = vld [vmem:[#allocation13_spill] sm:$0xff] }
 0x1b8   : > { %v3514_v5 = vpop.eup %3513  ;;  %v2177_v32 = vmul.f32 %v3512_v33, %v6237_v29  ;;  %v1127_v7 = vmul.f32 1.442695, %v975_v53  ;;  %v1123_v27 = vmul.f32 1.442695, %v973_v54  ;;  %v984_v51 = vsub.f32 0.0, %v866_v0  ;;  %3056 = vst [vmem:[%s4822_s24 + $0x2a8] sm:$0xff] %v866_v0 }
 0x1b9   : > { %2989 = vst [vmem:[%s4822_s24 + $0x190] sm:$0xff] %v614_v18  ;;  %v3516_v28 = vpop.eup %3515  ;;  %3080 = vst [vmem:[%s5028_s25 + $0x268] sm:$0xff] %v2480_v59  ;;  %v2482_v55 = vadd.f32 %v2386_v8, %v6278_v63  ;;  %3533 = vrcp.f32 %v1260_v48  ;;  %v1256_v12 = vadd.f32 1.0, %v3514_v5  ;;  %v974_v23 = vsub.f32 0.0, %v614_v18  ;;  %v6282_v8 = vld [vmem:[#allocation19_spill] sm:$0xff] }
 0x1ba   : > { %v3518_v24 = vpop.eup %3517  ;;  %v2285_v39 = vadd.f32 %v6238_v47, %v2177_v32  ;;  %v2184_v3 = vmul.f32 %v3516_v28, %v6131_v61  ;;  %3535 = vpow2.f32 %v1127_v7  ;;  %v1145_v49 = vmul.f32 1.442695, %v984_v51  ;;  %v6283_v63 = vld [vmem:[#allocation15_spill] sm:$0xff] }
 0x1bb   : > { %v3520_v45 = vpop.eup %3519  ;;  %3017 = vst [vmem:[%s5028_s25 + $0x170] sm:$0xff] %v2482_v55  ;;  %3537 = vrcp.f32 %v1256_v12  ;;  %v1257_v1 = vadd.f32 1.0, %v3518_v24  ;;  %v1125_v41 = vmul.f32 1.442695, %v974_v23  ;;  %v861_v60 = vadd.f32 %v6279_v22, %v6208_v11 }
 0x1bc   : > { %v3522_v19 = vpop.eup %3521  ;;  %v2381_v26 = vmul.f32 %v3512_v33, %v2285_v39  ;;  %v2292_v36 = vadd.f32 %v6137_v6, %v2184_v3  ;;  %v2186_v42 = vmul.f32 %v3520_v45, %v6237_v29  ;;  %3539 = vpow2.f32 %v1123_v27  ;;  %v6284_v39 = vld [vmem:[#allocation14_spill] sm:$0xff] }
 0x1bd   : > { %v3524_v40 = vpop.eup %3523  ;;  %v2185_v10 = vmul.f32 %v3522_v19, %v6142_v2  ;;  %3541 = vrcp.f32 %v1257_v1  ;;  %v981_v58 = vsub.f32 0.0, %v861_v60  ;;  %3055 = vst [vmem:[%s4822_s24 + $0x2a0] sm:$0xff] %v861_v60  ;;  %v618_v52 = vadd.f32 %v6280_v30, %v4550_v4  ;;  %v6285_v60 = vld [vmem:[#allocation47_spill] sm:$0xff] }
 0x1be   : > { %v3526_v14 = vpop.eup %3525  ;;  %v2477_v53 = vadd.f32 %v2381_v26, %v6281_v56  ;;  %v2388_v35 = vmul.f32 %v3516_v28, %v2292_v36  ;;  %v2294_v54 = vadd.f32 %v6238_v47, %v2186_v42  ;;  %v1258_v0 = vadd.f32 1.0, %v3524_v40  ;;  %v6286_v36 = vld [vmem:[#allocation18_spill] sm:$0xff] }
 0x1bf   : > { %v3528_v31 = vpop.eup %3527  ;;  %v2293_v18 = vadd.f32 %v6145_v16, %v2185_v10  ;;  %v2183_v33 = vmul.f32 %v3526_v14, %v6237_v29  ;;  %3543 = vpow2.f32 %v1145_v49  ;;  %v1139_v13 = vmul.f32 1.442695, %v981_v58  ;;  %2554 = vst [vmem:[%s4822_s24 + $0x98] sm:$0xff] %v618_v52 }
 0x1c0   : > { %v3530_v59 = vpop.eup %3529  ;;  %3079 = vst [vmem:[%s5028_s25 + $0x260] sm:$0xff] %v2477_v53  ;;  %v2484_v48 = vadd.f32 %v2388_v35, %v6282_v8  ;;  %v2390_v5 = vmul.f32 %v3520_v45, %v2294_v54  ;;  %3545 = vrcp.f32 %v1258_v0  ;;  %v1266_v32 = vadd.f32 1.0, %v3528_v31  ;;  %v6287_v35 = vld [vmem:[#allocation16_spill] sm:$0xff] }
 0x1c1   : > { %v3532_v7 = vpop.eup %3531  ;;  %v2389_v27 = vmul.f32 %v3522_v19, %v2293_v18  ;;  %v2291_v51 = vadd.f32 %v6238_v47, %v2183_v33  ;;  %v2187_v28 = vmul.f32 %v3530_v59, %v6131_v61  ;;  %3547 = vpow2.f32 %v1125_v41 }
 0x1c2   : > { %2582 = vst [vmem:[%s5028_s25 + $0x78] sm:$0xff] %v2484_v48  ;;  %v2486_v55 = vadd.f32 %v2390_v5, %v6283_v63  ;;  %3549 = vrcp.f32 %v1266_v32  ;;  %v1259_v12 = vadd.f32 1.0, %v3532_v7  ;;  %v976_v23 = vsub.f32 0.0, %v618_v52  ;;  %v6288_v7 = vld [vmem:[#allocation21_spill] sm:$0xff] }
 0x1c3   : > { %v3534_v24 = vpop.eup %3533  ;;  %v2485_v3 = vadd.f32 %v2389_v27, %v6284_v39  ;;  %v2387_v49 = vmul.f32 %v3526_v14, %v2291_v51  ;;  %v2295_v45 = vadd.f32 %v6137_v6, %v2187_v28  ;;  %3551 = vpow2.f32 %v1139_v13  ;;  %v6289_v39 = vld [vmem:[#allocation23_spill] sm:$0xff] }
 0x1c4   : > { %v3536_v1 = vpop.eup %3535  ;;  %3082 = vst [vmem:[%s5028_s25 + $0x278] sm:$0xff] %v2486_v55  ;;  %v2192_v22 = vmul.f32 %v3534_v24, %v6237_v29  ;;  %3553 = vrcp.f32 %v1259_v12  ;;  %v1129_v41 = vmul.f32 1.442695, %v976_v23  ;;  %v876_v19 = vadd.f32 %v6285_v60, %v6208_v11 }
 0x1c5   : > { %v3538_v26 = vpop.eup %3537  ;;  %3018 = vst [vmem:[%s5028_s25 + $0x178] sm:$0xff] %v2485_v3  ;;  %v2483_v42 = vadd.f32 %v2387_v49, %v6286_v36  ;;  %v2391_v40 = vmul.f32 %v3530_v59, %v2295_v45  ;;  %v1263_v10 = vadd.f32 1.0, %v3536_v1  ;;  %v620_v58 = vadd.f32 %v5275_v43, %v6094_v17 }
 0x1c6   : > { %v3540_v30 = vpop.eup %3539  ;;  %v2300_v52 = vadd.f32 %v6238_v47, %v2192_v22  ;;  %v2188_v14 = vmul.f32 %v3538_v26, %v6142_v2  ;;  %3555 = vpow2.f32 %v1129_v41  ;;  %v990_v56 = vsub.f32 0.0, %v876_v19  ;;  %3058 = vst [vmem:[%s4822_s24 + $0x2b8] sm:$0xff] %v876_v19  ;;  %v6290_v19 = vld [vmem:[#allocation24_spill] sm:$0xff] }
 0x1c7   : > { %v3542_v53 = vpop.eup %3541  ;;  %3081 = vst [vmem:[%s5028_s25 + $0x270] sm:$0xff] %v2483_v42  ;;  %v2487_v54 = vadd.f32 %v2391_v40, %v6287_v35  ;;  %3557 = vrcp.f32 %v1263_v10  ;;  %v1261_v0 = vadd.f32 1.0, %v3540_v30  ;;  %v977_v31 = vsub.f32 0.0, %v620_v58  ;;  %2990 = vst [vmem:[%s4822_s24 + $0x198] sm:$0xff] %v620_v58  ;;  %v6291_v35 = vld [vmem:[#allocation25_spill] sm:$0xff] }
 0x1c8   : > { %v2396_v18 = vmul.f32 %v3534_v24, %v2300_v52  ;;  %v2296_v43 = vadd.f32 %v6145_v16, %v2188_v14  ;;  %v2189_v33 = vmul.f32 %v3542_v53, %v6237_v29  ;;  %v1157_v13 = vmul.f32 1.442695, %v990_v56 }
 0x1c9   : > { %v3544_v59 = vpop.eup %3543  ;;  %2583 = vst [vmem:[%s5028_s25 + $0x80] sm:$0xff] %v2487_v54  ;;  %3559 = vrcp.f32 %v1261_v0  ;;  %v1131_v8 = vmul.f32 1.442695, %v977_v31  ;;  %v871_v48 = vadd.f32 %v5284_v20, %v6208_v11  ;;  %v624_v5 = vadd.f32 %v5302_v25, %v4550_v4 }
 0x1ca   : > { %v3546_v32 = vpop.eup %3545  ;;  %v2492_v27 = vadd.f32 %v2396_v18, %v6288_v7  ;;  %v2392_v51 = vmul.f32 %v3538_v26, %v2296_v43  ;;  %v2297_v28 = vadd.f32 %v6238_v47, %v2189_v33  ;;  %v1272_v63 = vadd.f32 1.0, %v3544_v59 }
 0x1cb   : > { %v3548_v55 = vpop.eup %3547  ;;  %v2190_v12 = vmul.f32 %v3546_v32, %v6131_v61  ;;  %3561 = vpow2.f32 %v1157_v13  ;;  %v987_v23 = vsub.f32 0.0, %v871_v48  ;;  %3057 = vst [vmem:[%s4822_s24 + $0x2b0] sm:$0xff] %v871_v48  ;;  %v979_v24 = vsub.f32 0.0, %v624_v5  ;;  %2555 = vst [vmem:[%s4822_s24 + $0xa0] sm:$0xff] %v624_v5  ;;  %v6292_v13 = vld [vmem:[#allocation27_spill] sm:$0xff] }
 0x1cc   : > { %v3550_v20 = vpop.eup %3549  ;;  %3084 = vst [vmem:[%s5028_s25 + $0x288] sm:$0xff] %v2492_v27  ;;  %v2488_v25 = vadd.f32 %v2392_v51, %v6289_v39  ;;  %v2393_v3 = vmul.f32 %v3542_v53, %v2297_v28  ;;  %3563 = vrcp.f32 %v1272_v63  ;;  %v1262_v49 = vadd.f32 1.0, %v3548_v55  ;;  %v6293_v51 = vld [vmem:[#allocation20_spill] sm:$0xff] }
 0x1cd   : > { %v3552_v45 = vpop.eup %3551  ;;  %v2298_v1 = vadd.f32 %v6137_v6, %v2190_v12  ;;  %v2198_v22 = vmul.f32 %v3550_v20, %v6237_v29  ;;  %3565 = vpow2.f32 %v1131_v8  ;;  %v1151_v41 = vmul.f32 1.442695, %v987_v23 }
 0x1ce   : > { %v3554_v60 = vpop.eup %3553  ;;  %3019 = vst [vmem:[%s5028_s25 + $0x180] sm:$0xff] %v2488_v25  ;;  %v2489_v26 = vadd.f32 %v2393_v3, %v6290_v19  ;;  %3567 = vrcp.f32 %v1262_v49  ;;  %v1269_v36 = vadd.f32 1.0, %v3552_v45  ;;  %v1135_v42 = vmul.f32 1.442695, %v979_v24 }
 0x1cf   : > { %v2394_v40 = vmul.f32 %v3546_v32, %v2298_v1  ;;  %v2306_v10 = vadd.f32 %v6238_v47, %v2198_v22  ;;  %v2191_v58 = vmul.f32 %v3554_v60, %v6142_v2  ;;  %3569 = vpow2.f32 %v1151_v41  ;;  %v6294_v1 = vld [vmem:[#allocation30_spill] sm:$0xff] }
 0x1d0   : > { %v3556_v30 = vpop.eup %3555  ;;  %3083 = vst [vmem:[%s5028_s25 + $0x280] sm:$0xff] %v2489_v26  ;;  %3571 = vrcp.f32 %v1269_v36  ;;  %v886_v52 = vadd.f32 %v5304_v21, %v6208_v11  ;;  %v626_v14 = vadd.f32 %v5326_v50, %v6094_v17  ;;  %v881_v56 = vadd.f32 %v5328_v37, %v6208_v11 }
 0x1d1   : > { %v3558_v53 = vpop.eup %3557  ;;  %v2490_v54 = vadd.f32 %v2394_v40, %v6291_v35  ;;  %v2402_v0 = vmul.f32 %v3550_v20, %v2306_v10  ;;  %v2299_v31 = vadd.f32 %v6145_v16, %v2191_v58  ;;  %v1264_v18 = vadd.f32 1.0, %v3556_v30  ;;  %v6295_v40 = vld [vmem:[#allocation22_spill] sm:$0xff] }
 0x1d2   : > { %v2195_v43 = vmul.f32 %v3558_v53, %v6237_v29  ;;  %3573 = vpow2.f32 %v1135_v42  ;;  %v996_v33 = vsub.f32 0.0, %v886_v52  ;;  %3060 = vst [vmem:[%s4822_s24 + $0x2c8] sm:$0xff] %v886_v52  ;;  %v980_v21 = vsub.f32 0.0, %v626_v14  ;;  %2991 = vst [vmem:[%s4822_s24 + $0x1a0] sm:$0xff] %v626_v14  ;;  %v6296_v35 = vld [vmem:[#allocation74_spill] sm:$0xff] }
 0x1d3   : > { %3059 = vst [vmem:[%s4822_s24 + $0x2c0] sm:$0xff] %v881_v56  ;;  %v3560_v50 = vpop.eup %3559  ;;  %2584 = vst [vmem:[%s5028_s25 + $0x88] sm:$0xff] %v2490_v54  ;;  %v2498_v37 = vadd.f32 %v2402_v0, %v6292_v13  ;;  %v2395_v59 = vmul.f32 %v3554_v60, %v2299_v31  ;;  %3575 = vrcp.f32 %v1264_v18  ;;  %v993_v8 = vsub.f32 0.0, %v881_v56 }
 0x1d4   : > { %v2303_v48 = vadd.f32 %v6238_v47, %v2195_v43  ;;  %v2193_v5 = vmul.f32 %v3560_v50, %v6131_v61  ;;  %v1169_v32 = vmul.f32 1.442695, %v996_v33  ;;  %v1137_v7 = vmul.f32 1.442695, %v980_v21  ;;  %v6297_v43 = vld [vmem:[#allocation33_spill] sm:$0xff] }
 0x1d5   : > { %v3562_v27 = vpop.eup %3561  ;;  %3086 = vst [vmem:[%s5028_s25 + $0x298] sm:$0xff] %v2498_v37  ;;  %v2491_v28 = vadd.f32 %v2395_v59, %v6293_v51  ;;  %v1163_v63 = vmul.f32 1.442695, %v993_v8  ;;  %v630_v55 = vadd.f32 %v5353_v38, %v4550_v4  ;;  %v896_v12 = vadd.f32 %v5355_v9, %v6208_v11 }
 0x1d6   : > { %v3564_v23 = vpop.eup %3563  ;;  %v2399_v24 = vmul.f32 %v3558_v53, %v2303_v48  ;;  %v2301_v20 = vadd.f32 %v6137_v6, %v2193_v5  ;;  %v1278_v39 = vadd.f32 1.0, %v3562_v27  ;;  %3577 = vpow2.f32 %v1169_v32 }
 0x1d7   : > { %v3566_v25 = vpop.eup %3565  ;;  %3020 = vst [vmem:[%s5028_s25 + $0x188] sm:$0xff] %v2491_v28  ;;  %v2204_v3 = vmul.f32 %v3564_v23, %v6237_v29  ;;  %3579 = vpow2.f32 %v1137_v7  ;;  %v982_v49 = vsub.f32 0.0, %v630_v55  ;;  %2556 = vst [vmem:[%s4822_s24 + $0xa8] sm:$0xff] %v630_v55  ;;  %v1002_v45 = vsub.f32 0.0, %v896_v12  ;;  %v6299_v55 = vld [vmem:[#allocation36_spill] sm:$0xff] }
 0x1d8   : > { %3062 = vst [vmem:[%s4822_s24 + $0x2d8] sm:$0xff] %v896_v12  ;;  %v3568_v38 = vpop.eup %3567  ;;  %v2495_v22 = vadd.f32 %v2399_v24, %v6294_v1  ;;  %v2397_v9 = vmul.f32 %v3560_v50, %v2301_v20  ;;  %3581 = vrcp.f32 %v1278_v39  ;;  %v1265_v41 = vadd.f32 1.0, %v3566_v25 }
 0x1d9   : > { %v3570_v60 = vpop.eup %3569  ;;  %v2312_v19 = vadd.f32 %v6238_v47, %v2204_v3  ;;  %v2194_v26 = vmul.f32 %v3568_v38, %v6142_v2  ;;  %3583 = vpow2.f32 %v1163_v63  ;;  %v1141_v36 = vmul.f32 1.442695, %v982_v49 }
 0x1da   : > { %v3572_v42 = vpop.eup %3571  ;;  %3085 = vst [vmem:[%s5028_s25 + $0x290] sm:$0xff] %v2495_v22  ;;  %v2493_v10 = vadd.f32 %v2397_v9, %v6295_v40  ;;  %3585 = vrcp.f32 %v1265_v41  ;;  %v1275_v58 = vadd.f32 1.0, %v3570_v60  ;;  %v1181_v30 = vmul.f32 1.442695, %v1002_v45 }
 0x1db   : > { %v2408_v52 = vmul.f32 %v3564_v23, %v2312_v19  ;;  %v2302_v14 = vadd.f32 %v6145_v16, %v2194_v26  ;;  %v2201_v56 = vmul.f32 %v3572_v42, %v6237_v29  ;;  %3587 = vpow2.f32 %v1141_v36 }
 0x1dc   : > { %v3574_v53 = vpop.eup %3573  ;;  %2585 = vst [vmem:[%s5028_s25 + $0x90] sm:$0xff] %v2493_v10  ;;  %3589 = vrcp.f32 %v1275_v58  ;;  %v632_v54 = vadd.f32 %v6296_v35, %v6094_v17  ;;  %v891_v0 = vadd.f32 %v5378_v34, %v6208_v11  ;;  %v636_v31 = vadd.f32 %v5401_v62, %v4550_v4  ;;  %v6298_v34 = vld [vmem:[#allocation29_spill] sm:$0xff] }
 0x1dd   : > { %v3576_v18 = vpop.eup %3575  ;;  %v2504_v33 = vadd.f32 %v2408_v52, %v6297_v43  ;;  %v2398_v21 = vmul.f32 %v3568_v38, %v2302_v14  ;;  %v2309_v50 = vadd.f32 %v6238_v47, %v2201_v56  ;;  %v1267_v13 = vadd.f32 1.0, %v3574_v53 }
 0x1de   : > { %v2196_v37 = vmul.f32 %v3576_v18, %v6131_v61  ;;  %3591 = vpow2.f32 %v1181_v30  ;;  %v983_v59 = vsub.f32 0.0, %v632_v54  ;;  %2992 = vst [vmem:[%s4822_s24 + $0x1a8] sm:$0xff] %v632_v54  ;;  %v999_v8 = vsub.f32 0.0, %v891_v0  ;;  %3061 = vst [vmem:[%s4822_s24 + $0x2d0] sm:$0xff] %v891_v0  ;;  %v6301_v54 = vld [vmem:[#allocation73_spill] sm:$0xff] }
 0x1df   : > { %2557 = vst [vmem:[%s4822_s24 + $0xb0] sm:$0xff] %v636_v31  ;;  %3088 = vst [vmem:[%s5028_s25 + $0x2a8] sm:$0xff] %v2504_v33  ;;  %v2494_v48 = vadd.f32 %v2398_v21, %v6298_v34  ;;  %v2405_v62 = vmul.f32 %v3572_v42, %v2309_v50  ;;  %3593 = vrcp.f32 %v1267_v13  ;;  %v985_v5 = vsub.f32 0.0, %v636_v31  ;;  %v6304_v34 = vld [vmem:[#allocation48_spill] sm:$0xff] }
 0x1e0   : > { %v3578_v32 = vpop.eup %3577  ;;  %v2304_v7 = vadd.f32 %v6137_v6, %v2196_v37  ;;  %v1143_v27 = vmul.f32 1.442695, %v983_v59  ;;  %v1175_v51 = vmul.f32 1.442695, %v999_v8  ;;  %v906_v28 = vadd.f32 %v5403_v46, %v6208_v11  ;;  %v6303_v37 = vld [vmem:[#allocation26_spill] sm:$0xff] }
 0x1e1   : > { %v3580_v63 = vpop.eup %3579  ;;  %3021 = vst [vmem:[%s5028_s25 + $0x190] sm:$0xff] %v2494_v48  ;;  %v2501_v12 = vadd.f32 %v2405_v62, %v6299_v55  ;;  %v1284_v23 = vadd.f32 1.0, %v3578_v32  ;;  %v1147_v24 = vmul.f32 1.442695, %v985_v5  ;;  %v638_v20 = vadd.f32 %v5425_v15, %v6094_v17  ;;  %v6300_v15 = vld [vmem:[#allocation31_spill] sm:$0xff] }
 0x1e2   : > { %v3582_v39 = vpop.eup %3581  ;;  %v2400_v25 = vmul.f32 %v3576_v18, %v2304_v7  ;;  %v1268_v3 = vadd.f32 1.0, %v3580_v63  ;;  %3595 = vpow2.f32 %v1143_v27  ;;  %v1008_v49 = vsub.f32 0.0, %v906_v28  ;;  %3064 = vst [vmem:[%s4822_s24 + $0x2e8] sm:$0xff] %v906_v28  ;;  %v6305_v7 = vld [vmem:[#allocation69_spill] sm:$0xff] }
 0x1e3   : > { %v3584_v45 = vpop.eup %3583  ;;  %3087 = vst [vmem:[%s5028_s25 + $0x2a0] sm:$0xff] %v2501_v12  ;;  %v2210_v46 = vmul.f32 %v3582_v39, %v6237_v29  ;;  %3597 = vrcp.f32 %v1284_v23  ;;  %v986_v38 = vsub.f32 0.0, %v638_v20  ;;  %2993 = vst [vmem:[%s4822_s24 + $0x1b0] sm:$0xff] %v638_v20  ;;  %v901_v1 = vadd.f32 %v5430_v57, %v6208_v11 }
 0x1e4   : > { %v3586_v22 = vpop.eup %3585  ;;  %v2496_v9 = vadd.f32 %v2400_v25, %v6300_v15  ;;  %3599 = vrcp.f32 %v1268_v3  ;;  %v1281_v41 = vadd.f32 1.0, %v3584_v45  ;;  %v1193_v60 = vmul.f32 1.442695, %v1008_v49 }
 0x1e5   : > { %v3588_v19 = vpop.eup %3587  ;;  %v2318_v26 = vadd.f32 %v6238_v47, %v2210_v46  ;;  %v2197_v36 = vmul.f32 %v3586_v22, %v6142_v2  ;;  %3601 = vpow2.f32 %v1175_v51  ;;  %v1149_v42 = vmul.f32 1.442695, %v986_v38  ;;  %3063 = vst [vmem:[%s4822_s24 + $0x2e0] sm:$0xff] %v901_v1 }
 0x1e6   : > { %v3590_v40 = vpop.eup %3589  ;;  %2586 = vst [vmem:[%s5028_s25 + $0x98] sm:$0xff] %v2496_v9  ;;  %3603 = vrcp.f32 %v1281_v41  ;;  %v1270_v57 = vadd.f32 1.0, %v3588_v19  ;;  %v1005_v10 = vsub.f32 0.0, %v901_v1  ;;  %v642_v58 = vadd.f32 %v5441_v44, %v4550_v4  ;;  %v6302_v44 = vld [vmem:[#allocation40_spill] sm:$0xff] }
 0x1e7   : > { %v2414_v30 = vmul.f32 %v3582_v39, %v2318_v26  ;;  %v2305_v52 = vadd.f32 %v6145_v16, %v2197_v36  ;;  %v2207_v14 = vmul.f32 %v3590_v40, %v6237_v29  ;;  %3605 = vpow2.f32 %v1147_v24 }
 0x1e8   : > { %v3592_v56 = vpop.eup %3591  ;;  %3607 = vrcp.f32 %v1270_v57  ;;  %v1187_v53 = vmul.f32 1.442695, %v1005_v10  ;;  %v988_v35 = vsub.f32 0.0, %v642_v58  ;;  %2558 = vst [vmem:[%s4822_s24 + $0xb8] sm:$0xff] %v642_v58  ;;  %v916_v0 = vadd.f32 %v6301_v54, %v6208_v11 }
 0x1e9   : > { %v3594_v4 = vpop.eup %3593  ;;  %v2510_v31 = vadd.f32 %v2414_v30, %v6302_v44  ;;  %v2401_v18 = vmul.f32 %v3586_v22, %v2305_v52  ;;  %v2315_v43 = vadd.f32 %v6238_v47, %v2207_v14  ;;  %v1290_v33 = vadd.f32 1.0, %v3592_v56 }
 0x1ea   : > { %v2199_v21 = vmul.f32 %v3594_v4, %v6131_v61  ;;  %3609 = vpow2.f32 %v1193_v60  ;;  %v1153_v50 = vmul.f32 1.442695, %v988_v35  ;;  %v1014_v13 = vsub.f32 0.0, %v916_v0  ;;  %3066 = vst [vmem:[%s4822_s24 + $0x2f8] sm:$0xff] %v916_v0 }
 0x1eb   : > { %3090 = vst [vmem:[%s5028_s25 + $0x2b8] sm:$0xff] %v2510_v31  ;;  %v2497_v59 = vadd.f32 %v2401_v18, %v6303_v37  ;;  %v2411_v8 = vmul.f32 %v3590_v40, %v2315_v43  ;;  %3611 = vrcp.f32 %v1290_v33  ;;  %v644_v48 = vadd.f32 %v6304_v34, %v6094_v17  ;;  %v6306_v17 = vld [vmem:[#allocation43_spill] sm:$0xff] }
 0x1ec   : > { %v3596_v62 = vpop.eup %3595  ;;  %v2307_v5 = vadd.f32 %v6137_v6, %v2199_v21  ;;  %3613 = vpow2.f32 %v1149_v42  ;;  %v1205_v32 = vmul.f32 1.442695, %v1014_v13  ;;  %v911_v27 = vadd.f32 %v6305_v7, %v6208_v11 }
 0x1ed   : > { %v3598_v51 = vpop.eup %3597  ;;  %3022 = vst [vmem:[%s5028_s25 + $0x198] sm:$0xff] %v2497_v59  ;;  %v2507_v28 = vadd.f32 %v2411_v8, %v6306_v17  ;;  %v1271_v63 = vadd.f32 1.0, %v3596_v62  ;;  %3615 = vpow2.f32 %v1187_v53  ;;  %v989_v55 = vsub.f32 0.0, %v644_v48  ;;  %2994 = vst [vmem:[%s4822_s24 + $0x1b8] sm:$0xff] %v644_v48 }
 0x1ee   : > { %v3600_v12 = vpop.eup %3599  ;;  %v2403_v23 = vmul.f32 %v3594_v4, %v2307_v5  ;;  %v2216_v24 = vmul.f32 %v3598_v51, %v6237_v29  ;;  %3617 = vpow2.f32 %v1153_v50  ;;  %v1011_v20 = vsub.f32 0.0, %v911_v27  ;;  %3065 = vst [vmem:[%s4822_s24 + $0x2f0] sm:$0xff] %v911_v27 }
 0x1ef   : > { %v3602_v11 = vpop.eup %3601  ;;  %3089 = vst [vmem:[%s5028_s25 + $0x2b0] sm:$0xff] %v2507_v28  ;;  %v2200_v39 = vmul.f32 %v3600_v12, %v6142_v2  ;;  %3619 = vrcp.f32 %v1271_v63  ;;  %v1155_v25 = vmul.f32 1.442695, %v989_v55 }
 0x1f0   : > { %3658 = shalt.err (!%p3655_p5)
}
 0x1f1   : > { %s3659_s15 = scalar_lea.hbm %s5817_s9, 12288  ;;  %s3663_s7 = scalar_lea.hbm %s5981_s4, 24576 }
 0x1f2   : > { %p3660_p6 = scmp.ne.s32.totalorder %s5817_s9, %s3659_s15  ;;  %p3664_p10 = scmp.lt.u32.totalorder %s5817_s9, %s5981_s4 }
 0x1f3   : > { %p3665_p11 = scmp.lt.u32.totalorder %s3663_s7, %s3659_s15  ;;  %p3667_p13 = scmp.lt.u32.totalorder %s3659_s15, %s5817_s9 }
 0x1f4   : > { %p3661_p7 = pnand %p3660_p6, %p3834_p4 }
 0x1f5   : > { %p3666_p12 = por %p3665_p11, %p3664_p10 }
 0x1f6   : > { %p3662_p9 = pneg %p3661_p7 }
 0x1f7   : > { %p3668_p0 = por %p3667_p13, %p3666_p12 }
 0x1f9   : > { %p3669_p1 = pnand %p3668_p0, %p3662_p9 }
 0x1fb   : > { %3672 = shalt.err (!%p3669_p1)
}
 0x1fc   : > { %s3761_s11 = smov 128   ;;  %s3762_s13 = smov 8   ;;  %v3604_v3 = vpop.eup %3603  ;;  %v6307_v49 = vld [vmem:[#allocation28_spill] sm:$0xff]  ;;  %v2324_v46 = vadd.f32 %v6238_v47, %v2216_v24  ;;  %v1287_v38 = vadd.f32 1.0, %v3602_v11  ;;  %3621 = vpow2.f32 %v1205_v32  ;;  %v2308_v22 = vadd.f32 %v6145_v16, %v2200_v39  ;;  %v6308_v57 = vld [vmem:[#allocation62_spill] sm:$0xff]  ;;  %v6310_v4 = vld [vmem:[#allocation45_spill] sm:$0xff] }
 0x1fd   : > { %3192 = dma.vmem_to_hbm [thread:$0]  (%p3834_p4), %s5819_s29, 12288, %s5817_s9, %s2732_s10, %s3761_s11, %s3761_s11, %s3762_s13   ;;  %v2499_v45 = vadd.f32 %v2403_v23, %v6307_v49  ;;  %v3606_v1 = vpop.eup %3605  ;;  %v2213_v15 = vmul.f32 %v3604_v3, %v6237_v29  ;;  %3623 = vpow2.f32 %v1155_v25  ;;  %v1199_v9 = vmul.f32 1.442695, %v1011_v20  ;;  %v6309_v30 = vld [vmem:[#allocation56_spill] sm:$0xff]  ;;  %v6311_v13 = vld [vmem:[#allocation59_spill] sm:$0xff]  ;;  %v6312_v7 = vld [vmem:[#allocation65_spill] sm:$0xff] }
 0x1fe   : > { %v3608_v41 = vpop.eup %3607  ;;  %v2420_v60 = vmul.f32 %v3598_v51, %v2324_v46  ;;  %3625 = vrcp.f32 %v1287_v38  ;;  %v1273_v19 = vadd.f32 1.0, %v3606_v1  ;;  %v2404_v26 = vmul.f32 %v3600_v12, %v2308_v22  ;;  %v6313_v11 = vld [vmem:[#allocation32_spill] sm:$0xff]  ;;  %v6314_v38 = vld [vmem:[#allocation67_spill] sm:$0xff]  ;;  %s2770_s29 = sshll.u32 %s5028_s25, 4  ;;  %s5923_s14 = scalar_lea.hbm %s5982_s5, %s3190_s27  ;;  %s5925_s29 = int_to_ptr.vmem [resolvable:$true] %s2770_s29 }
 0x1ff   : > { %2587 = vst [vmem:[%s5028_s25 + $0xa0] sm:$0xff] %v2499_v45  ;;  %v2321_v36 = vadd.f32 %v6238_v47, %v2213_v15  ;;  %v2202_v42 = vmul.f32 %v3608_v41, %v6131_v61  ;;  %3627 = vpow2.f32 %v1199_v9  ;;  %v3610_v40 = vpop.eup %3609  ;;  %s2737_s15 = scalar_lea.sflag [#allocation5], %s4729_s16  ;;  %s3673_s17 = scalar_lea.vmem %s5925_s29, 12288 }
 0x200   : > { %v2516_v10 = vadd.f32 %v2420_v60, %v6308_v57  ;;  %3629 = vrcp.f32 %v1273_v19  ;;  %v3612_v58 = vpop.eup %3611  ;;  %v2500_v52 = vadd.f32 %v2404_v26, %v6309_v30  ;;  %v1296_v53 = vadd.f32 1.0, %v3610_v40  ;;  %v6315_v19 = vld [vmem:[#allocation41_spill] sm:$0xff]  ;;  %p3674_p2 = scmp.ne.s32.totalorder %s5925_s29, %s3673_s17  ;;  %s3763_s24 = smov [#allocation4]  }
 0x201   : > { %v2417_v14 = vmul.f32 %v3604_v3, %v2321_v36  ;;  %v2310_v56 = vadd.f32 %v6137_v6, %v2202_v42  ;;  %v3614_v35 = vpop.eup %3613  ;;  %v2222_v54 = vmul.f32 %v3612_v58, %v6237_v29  ;;  %s3677_s7 = sshll.u32 %s3763_s24, 4  ;;  %s3678_s7 = int_to_ptr.vmem [resolvable:$false] %s3677_s7 }
 0x202   : > { %3092 = vst [vmem:[%s5028_s25 + $0x2c8] sm:$0xff] %v2516_v10  ;;  %v3616_v0 = vpop.eup %3615  ;;  %3023 = vst [vmem:[%s5028_s25 + $0x1a0] sm:$0xff] %v2500_v52  ;;  %3631 = vrcp.f32 %v1296_v53  ;;  %v1274_v18 = vadd.f32 1.0, %v3614_v35  ;;  %v6316_v52 = vld [vmem:[#allocation46_spill] sm:$0xff]  ;;  %p3675_p3 = pnand %p3674_p2, %p3834_p4  ;;  %s3679_s21 = scalar_lea.vmem %s3678_s7, 24576 }
 0x203   : > { %v2513_v44 = vadd.f32 %v2417_v14, %v6310_v4  ;;  %v2406_v31 = vmul.f32 %v3608_v41, %v2310_v56  ;;  %v3618_v43 = vpop.eup %3617  ;;  %v2330_v33 = vadd.f32 %v6238_v47, %v2222_v54  ;;  %v1293_v21 = vadd.f32 1.0, %v3616_v0  ;;  %p3680_p6 = scmp.lt.s32.totalorder %s5925_s29, %s3678_s7  ;;  %p3681_p7 = scmp.lt.s32.totalorder %s3679_s21, %s3673_s17 }
 0x204   : > { %v3620_v50 = vpop.eup %3619  ;;  %3633 = vrcp.f32 %v1274_v18  ;;  %v1276_v59 = vadd.f32 1.0, %v3618_v43  ;;  %v6318_v43 = vld [vmem:[#allocation66_spill] sm:$0xff]  ;;  %p3676_p5 = pneg %p3675_p3 }
 0x205   : > { %3091 = vst [vmem:[%s5028_s25 + $0x2c0] sm:$0xff] %v2513_v44  ;;  %v2502_v37 = vadd.f32 %v2406_v31, %v6311_v13  ;;  %v2426_v34 = vmul.f32 %v3612_v58, %v2330_v33  ;;  %v2203_v48 = vmul.f32 %v3620_v50, %v6142_v2  ;;  %3635 = vrcp.f32 %v1293_v21  ;;  %p3682_p9 = por %p3681_p7, %p3680_p6 }
 0x206   : > { %v3622_v8 = vpop.eup %3621  ;;  %3637 = vrcp.f32 %v1276_v59 }
 0x207   : > { %v3624_v62 = vpop.eup %3623  ;;  %2588 = vst [vmem:[%s5028_s25 + $0xa8] sm:$0xff] %v2502_v37  ;;  %v1302_v5 = vadd.f32 1.0, %v3622_v8  ;;  %v2522_v27 = vadd.f32 %v2426_v34, %v6312_v7  ;;  %v2311_v51 = vadd.f32 %v6145_v16, %v2203_v48  ;;  %v6320_v8 = vld [vmem:[#allocation72_spill] sm:$0xff]  ;;  %v6321_v48 = vld [vmem:[#allocation39_spill] sm:$0xff]  ;;  %p3683_p10 = pnand %p3682_p9, %p3676_p5 }
 0x208   : > { %v3626_v32 = vpop.eup %3625  ;;  %v1277_v17 = vadd.f32 1.0, %v3624_v62 }
 0x209   : > { %v3628_v28 = vpop.eup %3627  ;;  %v2219_v63 = vmul.f32 %v3626_v32, %v6237_v29  ;;  %3639 = vrcp.f32 %v1302_v5  ;;  %3094 = vst [vmem:[%s5028_s25 + $0x2d8] sm:$0xff] %v2522_v27  ;;  %v2407_v12 = vmul.f32 %v3620_v50, %v2311_v51  ;;  %v6319_v50 = vld [vmem:[#allocation38_spill] sm:$0xff] }
 0x20a   : > { %v3630_v55 = vpop.eup %3629  ;;  %3641 = vrcp.f32 %v1277_v17  ;;  %v1299_v23 = vadd.f32 1.0, %v3628_v28 }
 0x20b   : > { %v2327_v24 = vadd.f32 %v6238_v47, %v2219_v63  ;;  %v2205_v20 = vmul.f32 %v3630_v55, %v6131_v61  ;;  %v2503_v39 = vadd.f32 %v2407_v12, %v6313_v11 }
 0x20c   : > { %3643 = vrcp.f32 %v1299_v23  ;;  %v3632_v25 = vpop.eup %3631 }
 0x20d   : > { %v2423_v3 = vmul.f32 %v3626_v32, %v2327_v24  ;;  %v2313_v49 = vadd.f32 %v6137_v6, %v2205_v20  ;;  %3024 = vst [vmem:[%s5028_s25 + $0x1a8] sm:$0xff] %v2503_v39  ;;  %v2228_v45 = vmul.f32 %v3632_v25, %v6237_v29 }
 0x20e   : > { %v3634_v46 = vpop.eup %3633 }
 0x20f   : > { %v2519_v1 = vadd.f32 %v2423_v3, %v6314_v38  ;;  %v2409_v22 = vmul.f32 %v3630_v55, %v2313_v49  ;;  %v3636_v15 = vpop.eup %3635  ;;  %v2336_v9 = vadd.f32 %v6238_v47, %v2228_v45  ;;  %v2206_v41 = vmul.f32 %v3634_v46, %v6142_v2 }
 0x210   : > { %v3638_v60 = vpop.eup %3637  ;;  %v2225_v36 = vmul.f32 %v3636_v15, %v6237_v29 }
 0x211   : > { %3093 = vst [vmem:[%s5028_s25 + $0x2d0] sm:$0xff] %v2519_v1  ;;  %v2505_v26 = vadd.f32 %v2409_v22, %v6315_v19  ;;  %v2432_v42 = vmul.f32 %v3632_v25, %v2336_v9  ;;  %v2314_v40 = vadd.f32 %v6145_v16, %v2206_v41  ;;  %v2208_v57 = vmul.f32 %v3638_v60, %v6131_v61  ;;  %v6317_v61 = vld [vmem:[#allocation42_spill] sm:$0xff] }
 0x212   : > { %v2333_v58 = vadd.f32 %v6238_v47, %v2225_v36 }
 0x213   : > { %v3640_v10 = vpop.eup %3639  ;;  %2589 = vst [vmem:[%s5028_s25 + $0xb0] sm:$0xff] %v2505_v26  ;;  %v2528_v14 = vadd.f32 %v2432_v42, %v6316_v52  ;;  %v2410_v56 = vmul.f32 %v3634_v46, %v2314_v40  ;;  %v2316_v53 = vadd.f32 %v6137_v6, %v2208_v57 }
 0x214   : > { %v3642_v30 = vpop.eup %3641  ;;  %v2234_v35 = vmul.f32 %v3640_v10, %v6237_v29  ;;  %v2429_v54 = vmul.f32 %v3636_v15, %v2333_v58 }
 0x215   : > { %v2209_v0 = vmul.f32 %v3642_v30, %v6142_v2  ;;  %3096 = vst [vmem:[%s5028_s25 + $0x2e8] sm:$0xff] %v2528_v14  ;;  %v2506_v44 = vadd.f32 %v2410_v56, %v6317_v61  ;;  %v2412_v31 = vmul.f32 %v3638_v60, %v2316_v53 }
 0x216   : > { %v3644_v4 = vpop.eup %3643  ;;  %v2342_v18 = vadd.f32 %v6238_v47, %v2234_v35  ;;  %v2525_v33 = vadd.f32 %v2429_v54, %v6318_v43 }
 0x217   : > { %v2317_v6 = vadd.f32 %v6145_v16, %v2209_v0  ;;  %v2231_v21 = vmul.f32 %v3644_v4, %v6237_v29  ;;  %3025 = vst [vmem:[%s5028_s25 + $0x1b0] sm:$0xff] %v2506_v44  ;;  %v2508_v2 = vadd.f32 %v2412_v31, %v6319_v50  ;;  %v6322_v29 = vld [vmem:[#allocation49_spill] sm:$0xff] }
 0x218   : > { %v2438_v13 = vmul.f32 %v3640_v10, %v2342_v18  ;;  %3095 = vst [vmem:[%s5028_s25 + $0x2e0] sm:$0xff] %v2525_v33 }
 0x219   : > { %v2413_v37 = vmul.f32 %v3642_v30, %v2317_v6  ;;  %v2339_v59 = vadd.f32 %v6238_v47, %v2231_v21  ;;  %2590 = vst [vmem:[%s5028_s25 + $0xb8] sm:$0xff] %v2508_v2 }
 0x21a   : > { %v2534_v34 = vadd.f32 %v2438_v13, %v6320_v8 }
 0x21b   : > { %v2509_v16 = vadd.f32 %v2413_v37, %v6321_v48  ;;  %v2435_v62 = vmul.f32 %v3644_v4, %v2339_v59 }
 0x21c   : > { %3098 = vst [vmem:[%s5028_s25 + $0x2f8] sm:$0xff] %v2534_v34 }
 0x21d   : > { %3026 = vst [vmem:[%s5028_s25 + $0x1b8] sm:$0xff] %v2509_v16  ;;  %v2531_v5 = vadd.f32 %v2435_v62, %v6322_v29 }
 0x21f   : > { %3097 = vst [vmem:[%s5028_s25 + $0x2f0] sm:$0xff] %v2531_v5 }
 0x220   : > { %3686 = shalt.err (!%p3683_p10)
}
 0x221   : > { %s3687_s25 = scalar_lea.hbm %s5923_s14, 12288  ;;  %s3691_s12 = scalar_lea.hbm %s5982_s5, 24576 }
 0x222   : > { %p3688_p11 = scmp.ne.s32.totalorder %s5923_s14, %s3687_s25  ;;  %p3692_p0 = scmp.lt.u32.totalorder %s5923_s14, %s5982_s5 }
 0x223   : > { %p3693_p1 = scmp.lt.u32.totalorder %s3691_s12, %s3687_s25  ;;  %p3695_p3 = scmp.lt.u32.totalorder %s3687_s25, %s5923_s14 }
 0x224   : > { %p3689_p12 = pnand %p3688_p11, %p3834_p4 }
 0x225   : > { %p3694_p2 = por %p3693_p1, %p3692_p0 }
 0x226   : > { %p3690_p13 = pneg %p3689_p12 }
 0x227   : > { %p3696_p5 = por %p3695_p3, %p3694_p2 }
 0x229   : > { %p3697_p6 = pnand %p3696_p5, %p3690_p13 }
 0x22b   : > { %3700 = shalt.err (!%p3697_p6)
}
 0x22c   : > { %3193 = dma.vmem_to_hbm [thread:$0]  (%p3834_p4), %s5925_s29, 12288, %s5923_s14, %s2737_s15, %s3761_s11, %s3761_s11, %s3762_s13  }
 0x22d PF: > { %p3203_p7 = scmp.ge.s32.totalorder %s3755_s23, 2  ;;  %s2785_s17 = sand.u32 1, %s3735_s18  }
 0x22e   : > { %s2786_s24 = scalar_lea.sflag [#allocation3], %s2785_s17 }
 0x22f   : > { %p3197_p9 = pnand %p3203_p7, %p3841_p8 }
 0x231   : > { %3726 = dma.done.wait (!%p3197_p9), %s2786_s24, 12288  }
 0x232   : > { %3728 = vsyncadd (!%p3197_p9), %s2786_s24, 4294955008  ;;  %s2795_s28 = scalar_lea.sflag [#allocation5], %s2785_s17 }
 0x233   : > { %3730 = dma.done.wait (!%p3197_p9), %s2795_s28, 12288  }
 0x234   : > { %3732 = vsyncadd (!%p3197_p9), %s2795_s28, 4294955008  ;;  %s22_s23 = sadd.s32 1, %s3755_s23   ;;  %s6323_s18 = smov %s3739_s19 }
 0x235   : > { %p19_p10 = scmp.ge.s32.totalorder %s22_s23, 4   ;;  %s6324_s19 = smov %s3743_s20 }
 0x236   : > { %s6325_s20 = smov %s3847_s6  ;;  %s6326_s21 = smov %s3751_s22 }
 0x237   : > { %s6327_s22 = smov %s6329_s26  ;;  %21 = sbr.rel (!%p19_p10) target bundleno = 6 (0x6), region = 95 }
 0x23e   :  { %2800 = vsyncpa [#allocation3], 1 }
 0x23f   :  { %2802 = vsyncpa [#allocation3 + $0x1], 1 }
 0x240   :  { %2803 = vsyncpa [#allocation5], 1 }
 0x241   :  { %2805 = vsyncpa [#allocation5 + $0x1], 1 }

</bundles_post_ra>
